<compile_context>
chip_gen: v5e
topology: v5e:2x2
jax: 0.10.0
libtpu: 0.0.40
codegen_flags: <defaults>
</compile_context>

<pallas_src>
import functools

import jax
import jax.numpy as jnp
from jax import lax
from jax.experimental import pallas as pl
from jax.experimental.pallas import tpu as pltpu

EMB_DIM = 100     # torch.nn.Embedding(vocab, 100)
EMB_PAD = 128     # padded feature dim (zero-padded; W_ih rows padded to match)
HIDDEN = 128      # LSTM hidden size


def _round_up(x, m):
    return ((x + m - 1) // m) * m


def _lstm_attn_kernel(emb_ref, wih_ref, whh_ref, b_ref, wv_ref, wlin_ref, blin_ref,
                      out_ref, h_sc, c_sc, hsum_sc, gx_sc,
                      *, seq_len, padded_len, unroll):
    """Grid = (batch_block ["parallel"], time_chunk ["arbitrary"]).

    emb_ref : (Tc*Bblk, EMB_PAD) compute-dtype; rows [t0:b0..bBblk-1, t1:.., ...]
              for this (batch block, time chunk)
    wih_ref : (EMB_PAD, 4H) compute-dtype input->gate weights (transposed, i|f|g|o)
    whh_ref : (H, 4H)       compute-dtype hidden->gate weights (transposed)
    b_ref   : (1, 4H)  f32  b_ih + b_hh
    wv_ref  : (1, H)   f32  attention vector
    wlin_ref: (H, 1)   f32  final linear weight (transposed)
    blin_ref: (1, 1)   f32  final linear bias
    out_ref : (Bblk, 1) f32 written on the last time chunk only
    h_sc/c_sc/hsum_sc : (Bblk, H) f32 persist across time chunks
    gx_sc   : (Tc*Bblk, 4H) f32 hoisted input projection for the chunk
    """
    t_chunk = pl.program_id(1)
    n_chunks = pl.num_programs(1)
    Bblk, H = h_sc.shape
    Tc = emb_ref.shape[0] // Bblk

    @pl.when(t_chunk == 0)
    def _():
        h_sc[...] = jnp.zeros_like(h_sc)
        c_sc[...] = jnp.zeros_like(c_sc)
        hsum_sc[...] = jnp.zeros_like(hsum_sc)

    # Hoisted input projection: ONE (Tc*Bblk, 128) @ (128, 512) MXU matmul per
    # chunk (bias folded in); only h @ W_hh stays on the serial critical path.
    gx_sc[...] = (
        jnp.dot(emb_ref[...], wih_ref[...], preferred_element_type=jnp.float32)
        + b_ref[...]
    )                                                               # (Tc*Bblk, 4H)

    mask_tail = padded_len != seq_len                # static python bool

    def step(t, carry):
        row0 = pl.multiple_of(t * Bblk, Bblk)
        # whh_ref[...] goes straight into the dot (no vreg hoist across the loop).
        gates = gx_sc[pl.ds(row0, Bblk), :] + jnp.dot(
            h_sc[...].astype(whh_ref.dtype), whh_ref[...],
            preferred_element_type=jnp.float32)                     # (Bblk, 4H)
        # sigmoid(x) = 0.5*tanh(0.5*x) + 0.5 -> one EUP push per gate.
        i_g = 0.5 * jnp.tanh(0.5 * gates[:, 0 * H:1 * H]) + 0.5
        f_g = 0.5 * jnp.tanh(0.5 * gates[:, 1 * H:2 * H]) + 0.5
        g_g = jnp.tanh(gates[:, 2 * H:3 * H])
        o_g = 0.5 * jnp.tanh(0.5 * gates[:, 3 * H:4 * H]) + 0.5
        c_new = f_g * c_sc[...] + i_g * g_g
        h_new = o_g * jnp.tanh(c_new)
        if mask_tail:
            valid = (t_chunk * Tc + t) < seq_len     # mask padded tail timesteps
            c_sc[...] = jnp.where(valid, c_new, c_sc[...])
            h_sc[...] = jnp.where(valid, h_new, h_sc[...])
            hsum_sc[...] = jnp.where(valid, hsum_sc[...] + h_new, hsum_sc[...])
        else:
            c_sc[...] = c_new
            h_sc[...] = h_new
            hsum_sc[...] = hsum_sc[...] + h_new      # running sum_t h_t
        return carry

    lax.fori_loop(0, Tc, step, 0, unroll=unroll)

    @pl.when(t_chunk == n_chunks - 1)
    def _():
        h_final = h_sc[...]                          # (Bblk, H) == lstm_hidden[0]
        # att[b] = sum_t sum_h h_fin[b,h]*out[b,t,h]*wv[h]
        #        = sum_h h_fin[b,h]*wv[h]*(sum_t out[b,t,h])
        att = jnp.sum(h_final * hsum_sc[...] * wv_ref[...], axis=-1,
                      keepdims=True)                                # (Bblk, 1)
        product = att * h_final                                     # (Bblk, H)
        out_ref[...] = (
            jnp.dot(product, wlin_ref[...], preferred_element_type=jnp.float32)
            + blin_ref[...]
        )                                                           # (Bblk, 1)


def init_params(key, vocab_size):
    """Deterministic parameter init mirroring the torch module's shapes."""
    ks = jax.random.split(key, 8)
    k = 1.0 / jnp.sqrt(jnp.float32(HIDDEN))
    return {
        "emb": jax.random.normal(ks[0], (vocab_size, EMB_DIM), jnp.float32),
        "w_ih": jax.random.uniform(ks[1], (4 * HIDDEN, EMB_DIM), jnp.float32, -k, k),
        "w_hh": jax.random.uniform(ks[2], (4 * HIDDEN, HIDDEN), jnp.float32, -k, k),
        "b_ih": jax.random.uniform(ks[3], (4 * HIDDEN,), jnp.float32, -k, k),
        "b_hh": jax.random.uniform(ks[4], (4 * HIDDEN,), jnp.float32, -k, k),
        "att_wv": jax.random.uniform(ks[5], (HIDDEN, 1), jnp.float32),  # torch.rand
        "lin_w": jax.random.uniform(ks[6], (1, HIDDEN), jnp.float32, -k, k),
        "lin_b": jax.random.uniform(ks[7], (1,), jnp.float32, -k, k),
    }


def lstm_attention_forward(X, params, compute_dtype=jnp.bfloat16,
                           max_time_chunk=None, max_batch_block=None):
    B, T = X.shape

    # Batch blocking (leading "parallel" grid axis; feeds the 2nd TC on v7x).
    Bblk = min(_round_up(B, 8), 128)
    if max_batch_block is not None:
        Bblk = min(Bblk, max(8, (max_batch_block // 8) * 8))
    n_bblk = -(-B // Bblk)
    Bp = n_bblk * Bblk

    # Time chunking: fixed Tc (multiple of 8, no divisor-of-T constraint);
    # the ragged tail is masked inside the kernel.
    gx_budget = 12 * 1024 * 1024                    # f32 gates_x scratch budget
    tc_cap = max(8, (gx_budget // (Bblk * 4 * HIDDEN * 4)) // 8 * 8)
    if max_time_chunk is not None:
        tc_cap = min(tc_cap, max(8, (max_time_chunk // 8) * 8))
    Tc = min(tc_cap, _round_up(T, 8))
    n_chunks = -(-T // Tc)
    Tpad = n_chunks * Tc

    # Glue (plain JAX): embedding gather + pad + (block, time, batch)-major layout.
    emb = jnp.take(params["emb"], X, axis=0)                        # (B, T, 100)
    emb = jnp.pad(emb, ((0, Bp - B), (0, Tpad - T), (0, EMB_PAD - EMB_DIM)))
    emb = emb.reshape(n_bblk, Bblk, Tpad, EMB_PAD)
    emb = jnp.transpose(emb, (0, 2, 1, 3))                          # (nb,Tp,Bblk,E)
    emb_tm = emb.reshape(n_bblk * Tpad * Bblk, EMB_PAD).astype(compute_dtype)

    wih_t = jnp.pad(params["w_ih"].T,
                    ((0, EMB_PAD - EMB_DIM), (0, 0))).astype(compute_dtype)
    whh_t = params["w_hh"].T.astype(compute_dtype)                  # (128, 512)
    bias = (params["b_ih"] + params["b_hh"]).reshape(1, 4 * HIDDEN).astype(jnp.float32)
    wv = params["att_wv"].reshape(1, HIDDEN).astype(jnp.float32)
    wlin = params["lin_w"].T.astype(jnp.float32)                    # (128, 1)
    blin = params["lin_b"].reshape(1, 1).astype(jnp.float32)

    # Explicit VMEM accounting (double-buffered inputs + scratch) with margin.
    esz = jnp.dtype(compute_dtype).itemsize
    vmem_bytes = (
        2 * Tc * Bblk * EMB_PAD * esz               # emb chunk (double-buffered)
        + 2 * EMB_PAD * 4 * HIDDEN * esz            # W_ih
        + 2 * HIDDEN * 4 * HIDDEN * esz             # W_hh
        + Tc * Bblk * 4 * HIDDEN * 4                # gates_x scratch
        + 3 * Bblk * HIDDEN * 4                     # h, c, hsum
        + 2 * (4 * HIDDEN + 2 * HIDDEN + 1 + Bblk) * 4
    )
    vmem_limit = min(max(int(vmem_bytes * 1.5) + (2 << 20), 32 << 20), 48 << 20)

    kernel = functools.partial(_lstm_attn_kernel, seq_len=T, padded_len=Tpad,
                               unroll=(True if Tc <= 8 else 8))

    out = pl.pallas_call(
        kernel,
        out_shape=jax.ShapeDtypeStruct((Bp, 1), jnp.float32),
        grid=(n_bblk, n_chunks),
        in_specs=[
            pl.BlockSpec((Tc * Bblk, EMB_PAD), lambda b, t: (b * n_chunks + t, 0)),
            pl.BlockSpec((EMB_PAD, 4 * HIDDEN), lambda b, t: (0, 0)),
            pl.BlockSpec((HIDDEN, 4 * HIDDEN), lambda b, t: (0, 0)),
            pl.BlockSpec((1, 4 * HIDDEN), lambda b, t: (0, 0)),
            pl.BlockSpec((1, HIDDEN), lambda b, t: (0, 0)),
            pl.BlockSpec((HIDDEN, 1), lambda b, t: (0, 0)),
            pl.BlockSpec((1, 1), lambda b, t: (0, 0)),
        ],
        out_specs=pl.BlockSpec((Bblk, 1), lambda b, t: (b, 0)),
        scratch_shapes=[
            pltpu.VMEM((Bblk, HIDDEN), jnp.float32),             # h
            pltpu.VMEM((Bblk, HIDDEN), jnp.float32),             # c
            pltpu.VMEM((Bblk, HIDDEN), jnp.float32),             # sum_t h_t
            pltpu.VMEM((Tc * Bblk, 4 * HIDDEN), jnp.float32),    # gates_x chunk
        ],
        compiler_params=pltpu.CompilerParams(
            dimension_semantics=("parallel", "arbitrary"),
            vmem_limit_bytes=vmem_limit,
        ),
    )(emb_tm, wih_t, whh_t, bias, wv, wlin, blin)

    return out[:B]


def reference_forward(X, params, compute_dtype=jnp.float32):
    """Pure-JAX reference. compute_dtype=float32 reproduces the torch forward
    exactly; bfloat16 emulates the kernel's mixed-precision MXU inputs
    (bf16 matmul inputs, f32 accumulation and f32 h/c state)."""
    emb = jnp.take(params["emb"], X, axis=0).astype(compute_dtype)  # (B, T, 100)
    w_ih_t = params["w_ih"].T.astype(compute_dtype)
    w_hh_t = params["w_hh"].T.astype(compute_dtype)
    bias = (params["b_ih"] + params["b_hh"]).astype(jnp.float32)
    H = HIDDEN

    def cell(carry, x_t):
        h, c = carry
        gates = (jnp.dot(x_t, w_ih_t, preferred_element_type=jnp.float32) + bias
                 + jnp.dot(h.astype(compute_dtype), w_hh_t,
                           preferred_element_type=jnp.float32))
        i_g = jax.nn.sigmoid(gates[:, 0 * H:1 * H])
        f_g = jax.nn.sigmoid(gates[:, 1 * H:2 * H])
        g_g = jnp.tanh(gates[:, 2 * H:3 * H])
        o_g = jax.nn.sigmoid(gates[:, 3 * H:4 * H])
        c = f_g * c + i_g * g_g
        h = o_g * jnp.tanh(c)
        return (h, c), h

    B = X.shape[0]
    init = (jnp.zeros((B, H), jnp.float32), jnp.zeros((B, H), jnp.float32))
    (h_fin, _), outs = lax.scan(cell, init, jnp.swapaxes(emb, 0, 1))
    outs = jnp.swapaxes(outs, 0, 1)                                 # (B, T, H)
    score_hidden = h_fin[:, None, :] * outs                         # (B, T, H)
    score = (score_hidden @ params["att_wv"])[:, :, 0]              # (B, T)
    att = jnp.sum(score, axis=1, keepdims=True)                     # (B, 1)
    product = att * h_fin                                           # (B, H)
    return product @ params["lin_w"].T + params["lin_b"]            # (B, 1)


if __name__ == "__main__":
    VOCAB = 500
    key = jax.random.PRNGKey(0)
    k_tok, k_par, k_tok2 = jax.random.split(key, 3)
    params = init_params(k_par, VOCAB)

    # Case 1: canonical small shapes; default bf16 MXU path.
    B, T = 2, 8
    X = jax.random.randint(k_tok, (B, T), 0, VOCAB, dtype=jnp.int32)
    out_bf16 = jax.block_until_ready(lstm_attention_forward(X, params))
    ref_bf16 = reference_forward(X, params, compute_dtype=jnp.bfloat16)
    assert out_bf16.shape == (B, 1)
    assert jnp.allclose(out_bf16, ref_bf16, rtol=5e-3, atol=5e-3), (out_bf16, ref_bf16)

    # Same shapes, f32 MXU path vs. exact torch-semantics reference.
    out_f32 = jax.block_until_ready(
        lstm_attention_forward(X, params, compute_dtype=jnp.float32))
    ref_f32 = reference_forward(X, params)
    assert jnp.allclose(out_f32, ref_f32, rtol=2e-3, atol=2e-3), (out_f32, ref_f32)

    # Case 2: ragged T (tail masking), multiple time chunks and batch blocks.
    B2, T2 = 10, 20
    X2 = jax.random.randint(k_tok2, (B2, T2), 0, VOCAB, dtype=jnp.int32)
    out2 = jax.block_until_ready(lstm_attention_forward(
        X2, params, compute_dtype=jnp.float32, max_time_chunk=8, max_batch_block=8))
    ref2 = reference_forward(X2, params)
    assert out2.shape == (B2, 1)
    assert jnp.allclose(out2, ref2, rtol=2e-3, atol=2e-3), (out2, ref2)

    print("KERNEL_OK")
</pallas_src>

<mosaic_0001>
module attributes {stable_mosaic.version = 11 : i64} {
  func.func @_lstm_attn_kernel(%arg0: i32, %arg1: i32, %arg2: memref<64x128xbf16, #tpu.memory_space<vmem>>, %arg3: memref<128x512xbf16, #tpu.memory_space<vmem>>, %arg4: memref<128x512xbf16, #tpu.memory_space<vmem>>, %arg5: memref<1x512xf32, #tpu.memory_space<vmem>>, %arg6: memref<1x128xf32, #tpu.memory_space<vmem>>, %arg7: memref<128x1xf32, #tpu.memory_space<vmem>>, %arg8: memref<1x1xf32, #tpu.memory_space<vmem>>, %arg9: memref<8x1xf32, #tpu.memory_space<vmem>>, %arg10: memref<8x128xf32, #tpu.memory_space<vmem>>, %arg11: memref<8x128xf32, #tpu.memory_space<vmem>>, %arg12: memref<8x128xf32, #tpu.memory_space<vmem>>, %arg13: memref<64x512xf32, #tpu.memory_space<vmem>>) attributes {dimension_semantics = [#tpu.dimension_semantics<parallel>, #tpu.dimension_semantics<arbitrary>], iteration_bounds = array<i64: 1, 1>, scalar_prefetch = 0 : i64, scratch_operands = 4 : i64, tpu.core_type = #tpu.core_type<tc>, window_params = [{transform_indices = @transform_0, window_bounds = array<i64: 64, 128>}, {pipeline_mode = #tpu.pipeline_mode<synchronous>, transform_indices = @transform_1, window_bounds = array<i64: 128, 512>}, {pipeline_mode = #tpu.pipeline_mode<synchronous>, transform_indices = @transform_2, window_bounds = array<i64: 128, 512>}, {pipeline_mode = #tpu.pipeline_mode<synchronous>, transform_indices = @transform_3, window_bounds = array<i64: 1, 512>}, {pipeline_mode = #tpu.pipeline_mode<synchronous>, transform_indices = @transform_4, window_bounds = array<i64: 1, 128>}, {pipeline_mode = #tpu.pipeline_mode<synchronous>, transform_indices = @transform_5, window_bounds = array<i64: 128, 1>}, {pipeline_mode = #tpu.pipeline_mode<synchronous>, transform_indices = @transform_6, window_bounds = array<i64: 1, 1>}, {transform_indices = @transform_7, window_bounds = array<i64: 8, 1>}]} {
    %c0_i32 = arith.constant 0 : i32
    %0 = arith.cmpi eq, %arg1, %c0_i32 : i32
    %1 = arith.extui %0 : i1 to i32
    %c0_i32_0 = arith.constant 0 : i32
    %2 = arith.cmpi ne, %1, %c0_i32_0 : i32
    scf.if %2 {
      %cst_219 = arith.constant 0.000000e+00 : f32
      %381 = vector.broadcast %cst_219 : f32 to vector<8x128xf32>
      %c0_220 = arith.constant 0 : index
      %c0_221 = arith.constant 0 : index
      %382 = vector.load %arg10[%c0_220, %c0_221] : memref<8x128xf32, #tpu.memory_space<vmem>>, vector<8x128xf32>
      tpu.vector_store %arg10[%c0_220, %c0_221], %381 {strides = array<i32>} : memref<8x128xf32, #tpu.memory_space<vmem>>, vector<8x128xf32>,
      %cst_222 = arith.constant 0.000000e+00 : f32
      %383 = vector.broadcast %cst_222 : f32 to vector<8x128xf32>
      %c0_223 = arith.constant 0 : index
      %c0_224 = arith.constant 0 : index
      %384 = vector.load %arg11[%c0_223, %c0_224] : memref<8x128xf32, #tpu.memory_space<vmem>>, vector<8x128xf32>
      tpu.vector_store %arg11[%c0_223, %c0_224], %383 {strides = array<i32>} : memref<8x128xf32, #tpu.memory_space<vmem>>, vector<8x128xf32>,
      %cst_225 = arith.constant 0.000000e+00 : f32
      %385 = vector.broadcast %cst_225 : f32 to vector<8x128xf32>
      %c0_226 = arith.constant 0 : index
      %c0_227 = arith.constant 0 : index
      %386 = vector.load %arg12[%c0_226, %c0_227] : memref<8x128xf32, #tpu.memory_space<vmem>>, vector<8x128xf32>
      tpu.vector_store %arg12[%c0_226, %c0_227], %385 {strides = array<i32>} : memref<8x128xf32, #tpu.memory_space<vmem>>, vector<8x128xf32>,
    } else {
    }
    %c0 = arith.constant 0 : index
    %c0_1 = arith.constant 0 : index
    %3 = vector.load %arg2[%c0, %c0_1] : memref<64x128xbf16, #tpu.memory_space<vmem>>, vector<64x128xbf16>
    %c0_2 = arith.constant 0 : index
    %c0_3 = arith.constant 0 : index
    %4 = vector.load %arg3[%c0_2, %c0_3] : memref<128x512xbf16, #tpu.memory_space<vmem>>, vector<128x512xbf16>
    %cst = arith.constant dense<0.000000e+00> : vector<64x512xf32>
    %5 = tpu.matmul %3, %4, %cst {dimension_numbers = #tpu.dot_dimension_numbers<[1], [0], [0], [1], [0, 0, 1, 1], [], []>} : vector<64x128xbf16>, vector<128x512xbf16>, vector<64x512xf32> -> vector<64x512xf32>
    %c0_4 = arith.constant 0 : index
    %c0_5 = arith.constant 0 : index
    %6 = vector.load %arg5[%c0_4, %c0_5] : memref<1x512xf32, #tpu.memory_space<vmem>>, vector<1x512xf32>
    %7 = vector.broadcast %6 : vector<1x512xf32> to vector<64x512xf32>
    %8 = arith.addf %5, %7 : vector<64x512xf32>
    %c0_6 = arith.constant 0 : index
    %c0_7 = arith.constant 0 : index
    %9 = vector.load %arg13[%c0_6, %c0_7] : memref<64x512xf32, #tpu.memory_space<vmem>>, vector<64x512xf32>
    tpu.vector_store %arg13[%c0_6, %c0_7], %8 {strides = array<i32>} : memref<64x512xf32, #tpu.memory_space<vmem>>, vector<64x512xf32>,
    %c0_i32_8 = arith.constant 0 : i32
    %c8_i32 = arith.constant 8 : i32
    %10 = arith.muli %c0_i32_8, %c8_i32 : i32
    %11 = tpu.assume_multiple %10, 8 : i32
    %12 = arith.index_cast %11 : i32 to index
    %c0_9 = arith.constant 0 : index
    %13 = vector.load %arg13[%12, %c0_9] : memref<64x512xf32, #tpu.memory_space<vmem>>, vector<8x512xf32>
    %c0_10 = arith.constant 0 : index
    %c0_11 = arith.constant 0 : index
    %14 = vector.load %arg10[%c0_10, %c0_11] : memref<8x128xf32, #tpu.memory_space<vmem>>, vector<8x128xf32>
    %15 = arith.truncf %14 : vector<8x128xf32> to vector<8x128xbf16>
    %c0_12 = arith.constant 0 : index
    %c0_13 = arith.constant 0 : index
    %16 = vector.load %arg4[%c0_12, %c0_13] : memref<128x512xbf16, #tpu.memory_space<vmem>>, vector<128x512xbf16>
    %cst_14 = arith.constant dense<0.000000e+00> : vector<8x512xf32>
    %17 = tpu.matmul %15, %16, %cst_14 {dimension_numbers = #tpu.dot_dimension_numbers<[1], [0], [0], [1], [0, 0, 1, 1], [], []>} : vector<8x128xbf16>, vector<128x512xbf16>, vector<8x512xf32> -> vector<8x512xf32>
    %18 = arith.addf %13, %17 : vector<8x512xf32>
    %19 = vector.extract_strided_slice %18 {offsets = [0, 0], sizes = [8, 128], strides = [1, 1]} : vector<8x512xf32> to vector<8x128xf32>
    %cst_15 = arith.constant 5.000000e-01 : f32
    %20 = vector.broadcast %cst_15 : f32 to vector<8x128xf32>
    %21 = arith.mulf %20, %19 : vector<8x128xf32>
    %22 = math.tanh %21 : vector<8x128xf32>
    %cst_16 = arith.constant 5.000000e-01 : f32
    %23 = vector.broadcast %cst_16 : f32 to vector<8x128xf32>
    %24 = arith.mulf %23, %22 : vector<8x128xf32>
    %cst_17 = arith.constant 5.000000e-01 : f32
    %25 = vector.broadcast %cst_17 : f32 to vector<8x128xf32>
    %26 = arith.addf %24, %25 : vector<8x128xf32>
    %27 = vector.extract_strided_slice %18 {offsets = [0, 128], sizes = [8, 128], strides = [1, 1]} : vector<8x512xf32> to vector<8x128xf32>
    %cst_18 = arith.constant 5.000000e-01 : f32
    %28 = vector.broadcast %cst_18 : f32 to vector<8x128xf32>
    %29 = arith.mulf %28, %27 : vector<8x128xf32>
    %30 = math.tanh %29 : vector<8x128xf32>
    %cst_19 = arith.constant 5.000000e-01 : f32
    %31 = vector.broadcast %cst_19 : f32 to vector<8x128xf32>
    %32 = arith.mulf %31, %30 : vector<8x128xf32>
    %cst_20 = arith.constant 5.000000e-01 : f32
    %33 = vector.broadcast %cst_20 : f32 to vector<8x128xf32>
    %34 = arith.addf %32, %33 : vector<8x128xf32>
    %35 = vector.extract_strided_slice %18 {offsets = [0, 256], sizes = [8, 128], strides = [1, 1]} : vector<8x512xf32> to vector<8x128xf32>
    %36 = math.tanh %35 : vector<8x128xf32>
    %37 = vector.extract_strided_slice %18 {offsets = [0, 384], sizes = [8, 128], strides = [1, 1]} : vector<8x512xf32> to vector<8x128xf32>
    %cst_21 = arith.constant 5.000000e-01 : f32
    %38 = vector.broadcast %cst_21 : f32 to vector<8x128xf32>
    %39 = arith.mulf %38, %37 : vector<8x128xf32>
    %40 = math.tanh %39 : vector<8x128xf32>
    %cst_22 = arith.constant 5.000000e-01 : f32
    %41 = vector.broadcast %cst_22 : f32 to vector<8x128xf32>
    %42 = arith.mulf %41, %40 : vector<8x128xf32>
    %cst_23 = arith.constant 5.000000e-01 : f32
    %43 = vector.broadcast %cst_23 : f32 to vector<8x128xf32>
    %44 = arith.addf %42, %43 : vector<8x128xf32>
    %c0_24 = arith.constant 0 : index
    %c0_25 = arith.constant 0 : index
    %45 = vector.load %arg11[%c0_24, %c0_25] : memref<8x128xf32, #tpu.memory_space<vmem>>, vector<8x128xf32>
    %46 = arith.mulf %34, %45 : vector<8x128xf32>
    %47 = arith.mulf %26, %36 : vector<8x128xf32>
    %48 = arith.addf %46, %47 : vector<8x128xf32>
    %49 = math.tanh %48 : vector<8x128xf32>
    %50 = arith.mulf %44, %49 : vector<8x128xf32>
    %c0_26 = arith.constant 0 : index
    %c0_27 = arith.constant 0 : index
    %51 = vector.load %arg11[%c0_26, %c0_27] : memref<8x128xf32, #tpu.memory_space<vmem>>, vector<8x128xf32>
    tpu.vector_store %arg11[%c0_26, %c0_27], %48 {strides = array<i32>} : memref<8x128xf32, #tpu.memory_space<vmem>>, vector<8x128xf32>,
    %c0_28 = arith.constant 0 : index
    %c0_29 = arith.constant 0 : index
    %52 = vector.load %arg10[%c0_28, %c0_29] : memref<8x128xf32, #tpu.memory_space<vmem>>, vector<8x128xf32>
    tpu.vector_store %arg10[%c0_28, %c0_29], %50 {strides = array<i32>} : memref<8x128xf32, #tpu.memory_space<vmem>>, vector<8x128xf32>,
    %c0_30 = arith.constant 0 : index
    %c0_31 = arith.constant 0 : index
    %53 = vector.load %arg12[%c0_30, %c0_31] : memref<8x128xf32, #tpu.memory_space<vmem>>, vector<8x128xf32>
    %54 = arith.addf %53, %50 : vector<8x128xf32>
    %c0_32 = arith.constant 0 : index
    %c0_33 = arith.constant 0 : index
    %55 = vector.load %arg12[%c0_32, %c0_33] : memref<8x128xf32, #tpu.memory_space<vmem>>, vector<8x128xf32>
    tpu.vector_store %arg12[%c0_32, %c0_33], %54 {strides = array<i32>} : memref<8x128xf32, #tpu.memory_space<vmem>>, vector<8x128xf32>,
    %c1_i32 = arith.constant 1 : i32
    %c8_i32_34 = arith.constant 8 : i32
    %56 = arith.muli %c1_i32, %c8_i32_34 : i32
    %57 = tpu.assume_multiple %56, 8 : i32
    %58 = arith.index_cast %57 : i32 to index
    %c0_35 = arith.constant 0 : index
    %59 = vector.load %arg13[%58, %c0_35] : memref<64x512xf32, #tpu.memory_space<vmem>>, vector<8x512xf32>
    %c0_36 = arith.constant 0 : index
    %c0_37 = arith.constant 0 : index
    %60 = vector.load %arg10[%c0_36, %c0_37] : memref<8x128xf32, #tpu.memory_space<vmem>>, vector<8x128xf32>
    %61 = arith.truncf %60 : vector<8x128xf32> to vector<8x128xbf16>
    %c0_38 = arith.constant 0 : index
    %c0_39 = arith.constant 0 : index
    %62 = vector.load %arg4[%c0_38, %c0_39] : memref<128x512xbf16, #tpu.memory_space<vmem>>, vector<128x512xbf16>
    %cst_40 = arith.constant dense<0.000000e+00> : vector<8x512xf32>
    %63 = tpu.matmul %61, %62, %cst_40 {dimension_numbers = #tpu.dot_dimension_numbers<[1], [0], [0], [1], [0, 0, 1, 1], [], []>} : vector<8x128xbf16>, vector<128x512xbf16>, vector<8x512xf32> -> vector<8x512xf32>
    %64 = arith.addf %59, %63 : vector<8x512xf32>
    %65 = vector.extract_strided_slice %64 {offsets = [0, 0], sizes = [8, 128], strides = [1, 1]} : vector<8x512xf32> to vector<8x128xf32>
    %cst_41 = arith.constant 5.000000e-01 : f32
    %66 = vector.broadcast %cst_41 : f32 to vector<8x128xf32>
    %67 = arith.mulf %66, %65 : vector<8x128xf32>
    %68 = math.tanh %67 : vector<8x128xf32>
    %cst_42 = arith.constant 5.000000e-01 : f32
    %69 = vector.broadcast %cst_42 : f32 to vector<8x128xf32>
    %70 = arith.mulf %69, %68 : vector<8x128xf32>
    %cst_43 = arith.constant 5.000000e-01 : f32
    %71 = vector.broadcast %cst_43 : f32 to vector<8x128xf32>
    %72 = arith.addf %70, %71 : vector<8x128xf32>
    %73 = vector.extract_strided_slice %64 {offsets = [0, 128], sizes = [8, 128], strides = [1, 1]} : vector<8x512xf32> to vector<8x128xf32>
    %cst_44 = arith.constant 5.000000e-01 : f32
    %74 = vector.broadcast %cst_44 : f32 to vector<8x128xf32>
    %75 = arith.mulf %74, %73 : vector<8x128xf32>
    %76 = math.tanh %75 : vector<8x128xf32>
    %cst_45 = arith.constant 5.000000e-01 : f32
    %77 = vector.broadcast %cst_45 : f32 to vector<8x128xf32>
    %78 = arith.mulf %77, %76 : vector<8x128xf32>
    %cst_46 = arith.constant 5.000000e-01 : f32
    %79 = vector.broadcast %cst_46 : f32 to vector<8x128xf32>
    %80 = arith.addf %78, %79 : vector<8x128xf32>
    %81 = vector.extract_strided_slice %64 {offsets = [0, 256], sizes = [8, 128], strides = [1, 1]} : vector<8x512xf32> to vector<8x128xf32>
    %82 = math.tanh %81 : vector<8x128xf32>
    %83 = vector.extract_strided_slice %64 {offsets = [0, 384], sizes = [8, 128], strides = [1, 1]} : vector<8x512xf32> to vector<8x128xf32>
    %cst_47 = arith.constant 5.000000e-01 : f32
    %84 = vector.broadcast %cst_47 : f32 to vector<8x128xf32>
    %85 = arith.mulf %84, %83 : vector<8x128xf32>
    %86 = math.tanh %85 : vector<8x128xf32>
    %cst_48 = arith.constant 5.000000e-01 : f32
    %87 = vector.broadcast %cst_48 : f32 to vector<8x128xf32>
    %88 = arith.mulf %87, %86 : vector<8x128xf32>
    %cst_49 = arith.constant 5.000000e-01 : f32
    %89 = vector.broadcast %cst_49 : f32 to vector<8x128xf32>
    %90 = arith.addf %88, %89 : vector<8x128xf32>
    %c0_50 = arith.constant 0 : index
    %c0_51 = arith.constant 0 : index
    %91 = vector.load %arg11[%c0_50, %c0_51] : memref<8x128xf32, #tpu.memory_space<vmem>>, vector<8x128xf32>
    %92 = arith.mulf %80, %91 : vector<8x128xf32>
    %93 = arith.mulf %72, %82 : vector<8x128xf32>
    %94 = arith.addf %92, %93 : vector<8x128xf32>
    %95 = math.tanh %94 : vector<8x128xf32>
    %96 = arith.mulf %90, %95 : vector<8x128xf32>
    %c0_52 = arith.constant 0 : index
    %c0_53 = arith.constant 0 : index
    %97 = vector.load %arg11[%c0_52, %c0_53] : memref<8x128xf32, #tpu.memory_space<vmem>>, vector<8x128xf32>
    tpu.vector_store %arg11[%c0_52, %c0_53], %94 {strides = array<i32>} : memref<8x128xf32, #tpu.memory_space<vmem>>, vector<8x128xf32>,
    %c0_54 = arith.constant 0 : index
    %c0_55 = arith.constant 0 : index
    %98 = vector.load %arg10[%c0_54, %c0_55] : memref<8x128xf32, #tpu.memory_space<vmem>>, vector<8x128xf32>
    tpu.vector_store %arg10[%c0_54, %c0_55], %96 {strides = array<i32>} : memref<8x128xf32, #tpu.memory_space<vmem>>, vector<8x128xf32>,
    %c0_56 = arith.constant 0 : index
    %c0_57 = arith.constant 0 : index
    %99 = vector.load %arg12[%c0_56, %c0_57] : memref<8x128xf32, #tpu.memory_space<vmem>>, vector<8x128xf32>
    %100 = arith.addf %99, %96 : vector<8x128xf32>
    %c0_58 = arith.constant 0 : index
    %c0_59 = arith.constant 0 : index
    %101 = vector.load %arg12[%c0_58, %c0_59] : memref<8x128xf32, #tpu.memory_space<vmem>>, vector<8x128xf32>
    tpu.vector_store %arg12[%c0_58, %c0_59], %100 {strides = array<i32>} : memref<8x128xf32, #tpu.memory_space<vmem>>, vector<8x128xf32>,
    %c2_i32 = arith.constant 2 : i32
    %c8_i32_60 = arith.constant 8 : i32
    %102 = arith.muli %c2_i32, %c8_i32_60 : i32
    %103 = tpu.assume_multiple %102, 8 : i32
    %104 = arith.index_cast %103 : i32 to index
    %c0_61 = arith.constant 0 : index
    %105 = vector.load %arg13[%104, %c0_61] : memref<64x512xf32, #tpu.memory_space<vmem>>, vector<8x512xf32>
    %c0_62 = arith.constant 0 : index
    %c0_63 = arith.constant 0 : index
    %106 = vector.load %arg10[%c0_62, %c0_63] : memref<8x128xf32, #tpu.memory_space<vmem>>, vector<8x128xf32>
    %107 = arith.truncf %106 : vector<8x128xf32> to vector<8x128xbf16>
    %c0_64 = arith.constant 0 : index
    %c0_65 = arith.constant 0 : index
    %108 = vector.load %arg4[%c0_64, %c0_65] : memref<128x512xbf16, #tpu.memory_space<vmem>>, vector<128x512xbf16>
    %cst_66 = arith.constant dense<0.000000e+00> : vector<8x512xf32>
    %109 = tpu.matmul %107, %108, %cst_66 {dimension_numbers = #tpu.dot_dimension_numbers<[1], [0], [0], [1], [0, 0, 1, 1], [], []>} : vector<8x128xbf16>, vector<128x512xbf16>, vector<8x512xf32> -> vector<8x512xf32>
    %110 = arith.addf %105, %109 : vector<8x512xf32>
    %111 = vector.extract_strided_slice %110 {offsets = [0, 0], sizes = [8, 128], strides = [1, 1]} : vector<8x512xf32> to vector<8x128xf32>
    %cst_67 = arith.constant 5.000000e-01 : f32
    %112 = vector.broadcast %cst_67 : f32 to vector<8x128xf32>
    %113 = arith.mulf %112, %111 : vector<8x128xf32>
    %114 = math.tanh %113 : vector<8x128xf32>
    %cst_68 = arith.constant 5.000000e-01 : f32
    %115 = vector.broadcast %cst_68 : f32 to vector<8x128xf32>
    %116 = arith.mulf %115, %114 : vector<8x128xf32>
    %cst_69 = arith.constant 5.000000e-01 : f32
    %117 = vector.broadcast %cst_69 : f32 to vector<8x128xf32>
    %118 = arith.addf %116, %117 : vector<8x128xf32>
    %119 = vector.extract_strided_slice %110 {offsets = [0, 128], sizes = [8, 128], strides = [1, 1]} : vector<8x512xf32> to vector<8x128xf32>
    %cst_70 = arith.constant 5.000000e-01 : f32
    %120 = vector.broadcast %cst_70 : f32 to vector<8x128xf32>
    %121 = arith.mulf %120, %119 : vector<8x128xf32>
    %122 = math.tanh %121 : vector<8x128xf32>
    %cst_71 = arith.constant 5.000000e-01 : f32
    %123 = vector.broadcast %cst_71 : f32 to vector<8x128xf32>
    %124 = arith.mulf %123, %122 : vector<8x128xf32>
    %cst_72 = arith.constant 5.000000e-01 : f32
    %125 = vector.broadcast %cst_72 : f32 to vector<8x128xf32>
    %126 = arith.addf %124, %125 : vector<8x128xf32>
    %127 = vector.extract_strided_slice %110 {offsets = [0, 256], sizes = [8, 128], strides = [1, 1]} : vector<8x512xf32> to vector<8x128xf32>
    %128 = math.tanh %127 : vector<8x128xf32>
    %129 = vector.extract_strided_slice %110 {offsets = [0, 384], sizes = [8, 128], strides = [1, 1]} : vector<8x512xf32> to vector<8x128xf32>
    %cst_73 = arith.constant 5.000000e-01 : f32
    %130 = vector.broadcast %cst_73 : f32 to vector<8x128xf32>
    %131 = arith.mulf %130, %129 : vector<8x128xf32>
    %132 = math.tanh %131 : vector<8x128xf32>
    %cst_74 = arith.constant 5.000000e-01 : f32
    %133 = vector.broadcast %cst_74 : f32 to vector<8x128xf32>
    %134 = arith.mulf %133, %132 : vector<8x128xf32>
    %cst_75 = arith.constant 5.000000e-01 : f32
    %135 = vector.broadcast %cst_75 : f32 to vector<8x128xf32>
    %136 = arith.addf %134, %135 : vector<8x128xf32>
    %c0_76 = arith.constant 0 : index
    %c0_77 = arith.constant 0 : index
    %137 = vector.load %arg11[%c0_76, %c0_77] : memref<8x128xf32, #tpu.memory_space<vmem>>, vector<8x128xf32>
    %138 = arith.mulf %126, %137 : vector<8x128xf32>
    %139 = arith.mulf %118, %128 : vector<8x128xf32>
    %140 = arith.addf %138, %139 : vector<8x128xf32>
    %141 = math.tanh %140 : vector<8x128xf32>
    %142 = arith.mulf %136, %141 : vector<8x128xf32>
    %c0_78 = arith.constant 0 : index
    %c0_79 = arith.constant 0 : index
    %143 = vector.load %arg11[%c0_78, %c0_79] : memref<8x128xf32, #tpu.memory_space<vmem>>, vector<8x128xf32>
    tpu.vector_store %arg11[%c0_78, %c0_79], %140 {strides = array<i32>} : memref<8x128xf32, #tpu.memory_space<vmem>>, vector<8x128xf32>,
    %c0_80 = arith.constant 0 : index
    %c0_81 = arith.constant 0 : index
    %144 = vector.load %arg10[%c0_80, %c0_81] : memref<8x128xf32, #tpu.memory_space<vmem>>, vector<8x128xf32>
    tpu.vector_store %arg10[%c0_80, %c0_81], %142 {strides = array<i32>} : memref<8x128xf32, #tpu.memory_space<vmem>>, vector<8x128xf32>,
    %c0_82 = arith.constant 0 : index
    %c0_83 = arith.constant 0 : index
    %145 = vector.load %arg12[%c0_82, %c0_83] : memref<8x128xf32, #tpu.memory_space<vmem>>, vector<8x128xf32>
    %146 = arith.addf %145, %142 : vector<8x128xf32>
    %c0_84 = arith.constant 0 : index
    %c0_85 = arith.constant 0 : index
    %147 = vector.load %arg12[%c0_84, %c0_85] : memref<8x128xf32, #tpu.memory_space<vmem>>, vector<8x128xf32>
    tpu.vector_store %arg12[%c0_84, %c0_85], %146 {strides = array<i32>} : memref<8x128xf32, #tpu.memory_space<vmem>>, vector<8x128xf32>,
    %c3_i32 = arith.constant 3 : i32
    %c8_i32_86 = arith.constant 8 : i32
    %148 = arith.muli %c3_i32, %c8_i32_86 : i32
    %149 = tpu.assume_multiple %148, 8 : i32
    %150 = arith.index_cast %149 : i32 to index
    %c0_87 = arith.constant 0 : index
    %151 = vector.load %arg13[%150, %c0_87] : memref<64x512xf32, #tpu.memory_space<vmem>>, vector<8x512xf32>
    %c0_88 = arith.constant 0 : index
    %c0_89 = arith.constant 0 : index
    %152 = vector.load %arg10[%c0_88, %c0_89] : memref<8x128xf32, #tpu.memory_space<vmem>>, vector<8x128xf32>
    %153 = arith.truncf %152 : vector<8x128xf32> to vector<8x128xbf16>
    %c0_90 = arith.constant 0 : index
    %c0_91 = arith.constant 0 : index
    %154 = vector.load %arg4[%c0_90, %c0_91] : memref<128x512xbf16, #tpu.memory_space<vmem>>, vector<128x512xbf16>
    %cst_92 = arith.constant dense<0.000000e+00> : vector<8x512xf32>
    %155 = tpu.matmul %153, %154, %cst_92 {dimension_numbers = #tpu.dot_dimension_numbers<[1], [0], [0], [1], [0, 0, 1, 1], [], []>} : vector<8x128xbf16>, vector<128x512xbf16>, vector<8x512xf32> -> vector<8x512xf32>
    %156 = arith.addf %151, %155 : vector<8x512xf32>
    %157 = vector.extract_strided_slice %156 {offsets = [0, 0], sizes = [8, 128], strides = [1, 1]} : vector<8x512xf32> to vector<8x128xf32>
    %cst_93 = arith.constant 5.000000e-01 : f32
    %158 = vector.broadcast %cst_93 : f32 to vector<8x128xf32>
    %159 = arith.mulf %158, %157 : vector<8x128xf32>
    %160 = math.tanh %159 : vector<8x128xf32>
    %cst_94 = arith.constant 5.000000e-01 : f32
    %161 = vector.broadcast %cst_94 : f32 to vector<8x128xf32>
    %162 = arith.mulf %161, %160 : vector<8x128xf32>
    %cst_95 = arith.constant 5.000000e-01 : f32
    %163 = vector.broadcast %cst_95 : f32 to vector<8x128xf32>
    %164 = arith.addf %162, %163 : vector<8x128xf32>
    %165 = vector.extract_strided_slice %156 {offsets = [0, 128], sizes = [8, 128], strides = [1, 1]} : vector<8x512xf32> to vector<8x128xf32>
    %cst_96 = arith.constant 5.000000e-01 : f32
    %166 = vector.broadcast %cst_96 : f32 to vector<8x128xf32>
    %167 = arith.mulf %166, %165 : vector<8x128xf32>
    %168 = math.tanh %167 : vector<8x128xf32>
    %cst_97 = arith.constant 5.000000e-01 : f32
    %169 = vector.broadcast %cst_97 : f32 to vector<8x128xf32>
    %170 = arith.mulf %169, %168 : vector<8x128xf32>
    %cst_98 = arith.constant 5.000000e-01 : f32
    %171 = vector.broadcast %cst_98 : f32 to vector<8x128xf32>
    %172 = arith.addf %170, %171 : vector<8x128xf32>
    %173 = vector.extract_strided_slice %156 {offsets = [0, 256], sizes = [8, 128], strides = [1, 1]} : vector<8x512xf32> to vector<8x128xf32>
    %174 = math.tanh %173 : vector<8x128xf32>
    %175 = vector.extract_strided_slice %156 {offsets = [0, 384], sizes = [8, 128], strides = [1, 1]} : vector<8x512xf32> to vector<8x128xf32>
    %cst_99 = arith.constant 5.000000e-01 : f32
    %176 = vector.broadcast %cst_99 : f32 to vector<8x128xf32>
    %177 = arith.mulf %176, %175 : vector<8x128xf32>
    %178 = math.tanh %177 : vector<8x128xf32>
    %cst_100 = arith.constant 5.000000e-01 : f32
    %179 = vector.broadcast %cst_100 : f32 to vector<8x128xf32>
    %180 = arith.mulf %179, %178 : vector<8x128xf32>
    %cst_101 = arith.constant 5.000000e-01 : f32
    %181 = vector.broadcast %cst_101 : f32 to vector<8x128xf32>
    %182 = arith.addf %180, %181 : vector<8x128xf32>
    %c0_102 = arith.constant 0 : index
    %c0_103 = arith.constant 0 : index
    %183 = vector.load %arg11[%c0_102, %c0_103] : memref<8x128xf32, #tpu.memory_space<vmem>>, vector<8x128xf32>
    %184 = arith.mulf %172, %183 : vector<8x128xf32>
    %185 = arith.mulf %164, %174 : vector<8x128xf32>
    %186 = arith.addf %184, %185 : vector<8x128xf32>
    %187 = math.tanh %186 : vector<8x128xf32>
    %188 = arith.mulf %182, %187 : vector<8x128xf32>
    %c0_104 = arith.constant 0 : index
    %c0_105 = arith.constant 0 : index
    %189 = vector.load %arg11[%c0_104, %c0_105] : memref<8x128xf32, #tpu.memory_space<vmem>>, vector<8x128xf32>
    tpu.vector_store %arg11[%c0_104, %c0_105], %186 {strides = array<i32>} : memref<8x128xf32, #tpu.memory_space<vmem>>, vector<8x128xf32>,
    %c0_106 = arith.constant 0 : index
    %c0_107 = arith.constant 0 : index
    %190 = vector.load %arg10[%c0_106, %c0_107] : memref<8x128xf32, #tpu.memory_space<vmem>>, vector<8x128xf32>
    tpu.vector_store %arg10[%c0_106, %c0_107], %188 {strides = array<i32>} : memref<8x128xf32, #tpu.memory_space<vmem>>, vector<8x128xf32>,
    %c0_108 = arith.constant 0 : index
    %c0_109 = arith.constant 0 : index
    %191 = vector.load %arg12[%c0_108, %c0_109] : memref<8x128xf32, #tpu.memory_space<vmem>>, vector<8x128xf32>
    %192 = arith.addf %191, %188 : vector<8x128xf32>
    %c0_110 = arith.constant 0 : index
    %c0_111 = arith.constant 0 : index
    %193 = vector.load %arg12[%c0_110, %c0_111] : memref<8x128xf32, #tpu.memory_space<vmem>>, vector<8x128xf32>
    tpu.vector_store %arg12[%c0_110, %c0_111], %192 {strides = array<i32>} : memref<8x128xf32, #tpu.memory_space<vmem>>, vector<8x128xf32>,
    %c4_i32 = arith.constant 4 : i32
    %c8_i32_112 = arith.constant 8 : i32
    %194 = arith.muli %c4_i32, %c8_i32_112 : i32
    %195 = tpu.assume_multiple %194, 8 : i32
    %196 = arith.index_cast %195 : i32 to index
    %c0_113 = arith.constant 0 : index
    %197 = vector.load %arg13[%196, %c0_113] : memref<64x512xf32, #tpu.memory_space<vmem>>, vector<8x512xf32>
    %c0_114 = arith.constant 0 : index
    %c0_115 = arith.constant 0 : index
    %198 = vector.load %arg10[%c0_114, %c0_115] : memref<8x128xf32, #tpu.memory_space<vmem>>, vector<8x128xf32>
    %199 = arith.truncf %198 : vector<8x128xf32> to vector<8x128xbf16>
    %c0_116 = arith.constant 0 : index
    %c0_117 = arith.constant 0 : index
    %200 = vector.load %arg4[%c0_116, %c0_117] : memref<128x512xbf16, #tpu.memory_space<vmem>>, vector<128x512xbf16>
    %cst_118 = arith.constant dense<0.000000e+00> : vector<8x512xf32>
    %201 = tpu.matmul %199, %200, %cst_118 {dimension_numbers = #tpu.dot_dimension_numbers<[1], [0], [0], [1], [0, 0, 1, 1], [], []>} : vector<8x128xbf16>, vector<128x512xbf16>, vector<8x512xf32> -> vector<8x512xf32>
    %202 = arith.addf %197, %201 : vector<8x512xf32>
    %203 = vector.extract_strided_slice %202 {offsets = [0, 0], sizes = [8, 128], strides = [1, 1]} : vector<8x512xf32> to vector<8x128xf32>
    %cst_119 = arith.constant 5.000000e-01 : f32
    %204 = vector.broadcast %cst_119 : f32 to vector<8x128xf32>
    %205 = arith.mulf %204, %203 : vector<8x128xf32>
    %206 = math.tanh %205 : vector<8x128xf32>
    %cst_120 = arith.constant 5.000000e-01 : f32
    %207 = vector.broadcast %cst_120 : f32 to vector<8x128xf32>
    %208 = arith.mulf %207, %206 : vector<8x128xf32>
    %cst_121 = arith.constant 5.000000e-01 : f32
    %209 = vector.broadcast %cst_121 : f32 to vector<8x128xf32>
    %210 = arith.addf %208, %209 : vector<8x128xf32>
    %211 = vector.extract_strided_slice %202 {offsets = [0, 128], sizes = [8, 128], strides = [1, 1]} : vector<8x512xf32> to vector<8x128xf32>
    %cst_122 = arith.constant 5.000000e-01 : f32
    %212 = vector.broadcast %cst_122 : f32 to vector<8x128xf32>
    %213 = arith.mulf %212, %211 : vector<8x128xf32>
    %214 = math.tanh %213 : vector<8x128xf32>
    %cst_123 = arith.constant 5.000000e-01 : f32
    %215 = vector.broadcast %cst_123 : f32 to vector<8x128xf32>
    %216 = arith.mulf %215, %214 : vector<8x128xf32>
    %cst_124 = arith.constant 5.000000e-01 : f32
    %217 = vector.broadcast %cst_124 : f32 to vector<8x128xf32>
    %218 = arith.addf %216, %217 : vector<8x128xf32>
    %219 = vector.extract_strided_slice %202 {offsets = [0, 256], sizes = [8, 128], strides = [1, 1]} : vector<8x512xf32> to vector<8x128xf32>
    %220 = math.tanh %219 : vector<8x128xf32>
    %221 = vector.extract_strided_slice %202 {offsets = [0, 384], sizes = [8, 128], strides = [1, 1]} : vector<8x512xf32> to vector<8x128xf32>
    %cst_125 = arith.constant 5.000000e-01 : f32
    %222 = vector.broadcast %cst_125 : f32 to vector<8x128xf32>
    %223 = arith.mulf %222, %221 : vector<8x128xf32>
    %224 = math.tanh %223 : vector<8x128xf32>
    %cst_126 = arith.constant 5.000000e-01 : f32
    %225 = vector.broadcast %cst_126 : f32 to vector<8x128xf32>
    %226 = arith.mulf %225, %224 : vector<8x128xf32>
    %cst_127 = arith.constant 5.000000e-01 : f32
    %227 = vector.broadcast %cst_127 : f32 to vector<8x128xf32>
    %228 = arith.addf %226, %227 : vector<8x128xf32>
    %c0_128 = arith.constant 0 : index
    %c0_129 = arith.constant 0 : index
    %229 = vector.load %arg11[%c0_128, %c0_129] : memref<8x128xf32, #tpu.memory_space<vmem>>, vector<8x128xf32>
    %230 = arith.mulf %218, %229 : vector<8x128xf32>
    %231 = arith.mulf %210, %220 : vector<8x128xf32>
    %232 = arith.addf %230, %231 : vector<8x128xf32>
    %233 = math.tanh %232 : vector<8x128xf32>
    %234 = arith.mulf %228, %233 : vector<8x128xf32>
    %c0_130 = arith.constant 0 : index
    %c0_131 = arith.constant 0 : index
    %235 = vector.load %arg11[%c0_130, %c0_131] : memref<8x128xf32, #tpu.memory_space<vmem>>, vector<8x128xf32>
    tpu.vector_store %arg11[%c0_130, %c0_131], %232 {strides = array<i32>} : memref<8x128xf32, #tpu.memory_space<vmem>>, vector<8x128xf32>,
    %c0_132 = arith.constant 0 : index
    %c0_133 = arith.constant 0 : index
    %236 = vector.load %arg10[%c0_132, %c0_133] : memref<8x128xf32, #tpu.memory_space<vmem>>, vector<8x128xf32>
    tpu.vector_store %arg10[%c0_132, %c0_133], %234 {strides = array<i32>} : memref<8x128xf32, #tpu.memory_space<vmem>>, vector<8x128xf32>,
    %c0_134 = arith.constant 0 : index
    %c0_135 = arith.constant 0 : index
    %237 = vector.load %arg12[%c0_134, %c0_135] : memref<8x128xf32, #tpu.memory_space<vmem>>, vector<8x128xf32>
    %238 = arith.addf %237, %234 : vector<8x128xf32>
    %c0_136 = arith.constant 0 : index
    %c0_137 = arith.constant 0 : index
    %239 = vector.load %arg12[%c0_136, %c0_137] : memref<8x128xf32, #tpu.memory_space<vmem>>, vector<8x128xf32>
    tpu.vector_store %arg12[%c0_136, %c0_137], %238 {strides = array<i32>} : memref<8x128xf32, #tpu.memory_space<vmem>>, vector<8x128xf32>,
    %c5_i32 = arith.constant 5 : i32
    %c8_i32_138 = arith.constant 8 : i32
    %240 = arith.muli %c5_i32, %c8_i32_138 : i32
    %241 = tpu.assume_multiple %240, 8 : i32
    %242 = arith.index_cast %241 : i32 to index
    %c0_139 = arith.constant 0 : index
    %243 = vector.load %arg13[%242, %c0_139] : memref<64x512xf32, #tpu.memory_space<vmem>>, vector<8x512xf32>
    %c0_140 = arith.constant 0 : index
    %c0_141 = arith.constant 0 : index
    %244 = vector.load %arg10[%c0_140, %c0_141] : memref<8x128xf32, #tpu.memory_space<vmem>>, vector<8x128xf32>
    %245 = arith.truncf %244 : vector<8x128xf32> to vector<8x128xbf16>
    %c0_142 = arith.constant 0 : index
    %c0_143 = arith.constant 0 : index
    %246 = vector.load %arg4[%c0_142, %c0_143] : memref<128x512xbf16, #tpu.memory_space<vmem>>, vector<128x512xbf16>
    %cst_144 = arith.constant dense<0.000000e+00> : vector<8x512xf32>
    %247 = tpu.matmul %245, %246, %cst_144 {dimension_numbers = #tpu.dot_dimension_numbers<[1], [0], [0], [1], [0, 0, 1, 1], [], []>} : vector<8x128xbf16>, vector<128x512xbf16>, vector<8x512xf32> -> vector<8x512xf32>
    %248 = arith.addf %243, %247 : vector<8x512xf32>
    %249 = vector.extract_strided_slice %248 {offsets = [0, 0], sizes = [8, 128], strides = [1, 1]} : vector<8x512xf32> to vector<8x128xf32>
    %cst_145 = arith.constant 5.000000e-01 : f32
    %250 = vector.broadcast %cst_145 : f32 to vector<8x128xf32>
    %251 = arith.mulf %250, %249 : vector<8x128xf32>
    %252 = math.tanh %251 : vector<8x128xf32>
    %cst_146 = arith.constant 5.000000e-01 : f32
    %253 = vector.broadcast %cst_146 : f32 to vector<8x128xf32>
    %254 = arith.mulf %253, %252 : vector<8x128xf32>
    %cst_147 = arith.constant 5.000000e-01 : f32
    %255 = vector.broadcast %cst_147 : f32 to vector<8x128xf32>
    %256 = arith.addf %254, %255 : vector<8x128xf32>
    %257 = vector.extract_strided_slice %248 {offsets = [0, 128], sizes = [8, 128], strides = [1, 1]} : vector<8x512xf32> to vector<8x128xf32>
    %cst_148 = arith.constant 5.000000e-01 : f32
    %258 = vector.broadcast %cst_148 : f32 to vector<8x128xf32>
    %259 = arith.mulf %258, %257 : vector<8x128xf32>
    %260 = math.tanh %259 : vector<8x128xf32>
    %cst_149 = arith.constant 5.000000e-01 : f32
    %261 = vector.broadcast %cst_149 : f32 to vector<8x128xf32>
    %262 = arith.mulf %261, %260 : vector<8x128xf32>
    %cst_150 = arith.constant 5.000000e-01 : f32
    %263 = vector.broadcast %cst_150 : f32 to vector<8x128xf32>
    %264 = arith.addf %262, %263 : vector<8x128xf32>
    %265 = vector.extract_strided_slice %248 {offsets = [0, 256], sizes = [8, 128], strides = [1, 1]} : vector<8x512xf32> to vector<8x128xf32>
    %266 = math.tanh %265 : vector<8x128xf32>
    %267 = vector.extract_strided_slice %248 {offsets = [0, 384], sizes = [8, 128], strides = [1, 1]} : vector<8x512xf32> to vector<8x128xf32>
    %cst_151 = arith.constant 5.000000e-01 : f32
    %268 = vector.broadcast %cst_151 : f32 to vector<8x128xf32>
    %269 = arith.mulf %268, %267 : vector<8x128xf32>
    %270 = math.tanh %269 : vector<8x128xf32>
    %cst_152 = arith.constant 5.000000e-01 : f32
    %271 = vector.broadcast %cst_152 : f32 to vector<8x128xf32>
    %272 = arith.mulf %271, %270 : vector<8x128xf32>
    %cst_153 = arith.constant 5.000000e-01 : f32
    %273 = vector.broadcast %cst_153 : f32 to vector<8x128xf32>
    %274 = arith.addf %272, %273 : vector<8x128xf32>
    %c0_154 = arith.constant 0 : index
    %c0_155 = arith.constant 0 : index
    %275 = vector.load %arg11[%c0_154, %c0_155] : memref<8x128xf32, #tpu.memory_space<vmem>>, vector<8x128xf32>
    %276 = arith.mulf %264, %275 : vector<8x128xf32>
    %277 = arith.mulf %256, %266 : vector<8x128xf32>
    %278 = arith.addf %276, %277 : vector<8x128xf32>
    %279 = math.tanh %278 : vector<8x128xf32>
    %280 = arith.mulf %274, %279 : vector<8x128xf32>
    %c0_156 = arith.constant 0 : index
    %c0_157 = arith.constant 0 : index
    %281 = vector.load %arg11[%c0_156, %c0_157] : memref<8x128xf32, #tpu.memory_space<vmem>>, vector<8x128xf32>
    tpu.vector_store %arg11[%c0_156, %c0_157], %278 {strides = array<i32>} : memref<8x128xf32, #tpu.memory_space<vmem>>, vector<8x128xf32>,
    %c0_158 = arith.constant 0 : index
    %c0_159 = arith.constant 0 : index
    %282 = vector.load %arg10[%c0_158, %c0_159] : memref<8x128xf32, #tpu.memory_space<vmem>>, vector<8x128xf32>
    tpu.vector_store %arg10[%c0_158, %c0_159], %280 {strides = array<i32>} : memref<8x128xf32, #tpu.memory_space<vmem>>, vector<8x128xf32>,
    %c0_160 = arith.constant 0 : index
    %c0_161 = arith.constant 0 : index
    %283 = vector.load %arg12[%c0_160, %c0_161] : memref<8x128xf32, #tpu.memory_space<vmem>>, vector<8x128xf32>
    %284 = arith.addf %283, %280 : vector<8x128xf32>
    %c0_162 = arith.constant 0 : index
    %c0_163 = arith.constant 0 : index
    %285 = vector.load %arg12[%c0_162, %c0_163] : memref<8x128xf32, #tpu.memory_space<vmem>>, vector<8x128xf32>
    tpu.vector_store %arg12[%c0_162, %c0_163], %284 {strides = array<i32>} : memref<8x128xf32, #tpu.memory_space<vmem>>, vector<8x128xf32>,
    %c6_i32 = arith.constant 6 : i32
    %c8_i32_164 = arith.constant 8 : i32
    %286 = arith.muli %c6_i32, %c8_i32_164 : i32
    %287 = tpu.assume_multiple %286, 8 : i32
    %288 = arith.index_cast %287 : i32 to index
    %c0_165 = arith.constant 0 : index
    %289 = vector.load %arg13[%288, %c0_165] : memref<64x512xf32, #tpu.memory_space<vmem>>, vector<8x512xf32>
    %c0_166 = arith.constant 0 : index
    %c0_167 = arith.constant 0 : index
    %290 = vector.load %arg10[%c0_166, %c0_167] : memref<8x128xf32, #tpu.memory_space<vmem>>, vector<8x128xf32>
    %291 = arith.truncf %290 : vector<8x128xf32> to vector<8x128xbf16>
    %c0_168 = arith.constant 0 : index
    %c0_169 = arith.constant 0 : index
    %292 = vector.load %arg4[%c0_168, %c0_169] : memref<128x512xbf16, #tpu.memory_space<vmem>>, vector<128x512xbf16>
    %cst_170 = arith.constant dense<0.000000e+00> : vector<8x512xf32>
    %293 = tpu.matmul %291, %292, %cst_170 {dimension_numbers = #tpu.dot_dimension_numbers<[1], [0], [0], [1], [0, 0, 1, 1], [], []>} : vector<8x128xbf16>, vector<128x512xbf16>, vector<8x512xf32> -> vector<8x512xf32>
    %294 = arith.addf %289, %293 : vector<8x512xf32>
    %295 = vector.extract_strided_slice %294 {offsets = [0, 0], sizes = [8, 128], strides = [1, 1]} : vector<8x512xf32> to vector<8x128xf32>
    %cst_171 = arith.constant 5.000000e-01 : f32
    %296 = vector.broadcast %cst_171 : f32 to vector<8x128xf32>
    %297 = arith.mulf %296, %295 : vector<8x128xf32>
    %298 = math.tanh %297 : vector<8x128xf32>
    %cst_172 = arith.constant 5.000000e-01 : f32
    %299 = vector.broadcast %cst_172 : f32 to vector<8x128xf32>
    %300 = arith.mulf %299, %298 : vector<8x128xf32>
    %cst_173 = arith.constant 5.000000e-01 : f32
    %301 = vector.broadcast %cst_173 : f32 to vector<8x128xf32>
    %302 = arith.addf %300, %301 : vector<8x128xf32>
    %303 = vector.extract_strided_slice %294 {offsets = [0, 128], sizes = [8, 128], strides = [1, 1]} : vector<8x512xf32> to vector<8x128xf32>
    %cst_174 = arith.constant 5.000000e-01 : f32
    %304 = vector.broadcast %cst_174 : f32 to vector<8x128xf32>
    %305 = arith.mulf %304, %303 : vector<8x128xf32>
    %306 = math.tanh %305 : vector<8x128xf32>
    %cst_175 = arith.constant 5.000000e-01 : f32
    %307 = vector.broadcast %cst_175 : f32 to vector<8x128xf32>
    %308 = arith.mulf %307, %306 : vector<8x128xf32>
    %cst_176 = arith.constant 5.000000e-01 : f32
    %309 = vector.broadcast %cst_176 : f32 to vector<8x128xf32>
    %310 = arith.addf %308, %309 : vector<8x128xf32>
    %311 = vector.extract_strided_slice %294 {offsets = [0, 256], sizes = [8, 128], strides = [1, 1]} : vector<8x512xf32> to vector<8x128xf32>
    %312 = math.tanh %311 : vector<8x128xf32>
    %313 = vector.extract_strided_slice %294 {offsets = [0, 384], sizes = [8, 128], strides = [1, 1]} : vector<8x512xf32> to vector<8x128xf32>
    %cst_177 = arith.constant 5.000000e-01 : f32
    %314 = vector.broadcast %cst_177 : f32 to vector<8x128xf32>
    %315 = arith.mulf %314, %313 : vector<8x128xf32>
    %316 = math.tanh %315 : vector<8x128xf32>
    %cst_178 = arith.constant 5.000000e-01 : f32
    %317 = vector.broadcast %cst_178 : f32 to vector<8x128xf32>
    %318 = arith.mulf %317, %316 : vector<8x128xf32>
    %cst_179 = arith.constant 5.000000e-01 : f32
    %319 = vector.broadcast %cst_179 : f32 to vector<8x128xf32>
    %320 = arith.addf %318, %319 : vector<8x128xf32>
    %c0_180 = arith.constant 0 : index
    %c0_181 = arith.constant 0 : index
    %321 = vector.load %arg11[%c0_180, %c0_181] : memref<8x128xf32, #tpu.memory_space<vmem>>, vector<8x128xf32>
    %322 = arith.mulf %310, %321 : vector<8x128xf32>
    %323 = arith.mulf %302, %312 : vector<8x128xf32>
    %324 = arith.addf %322, %323 : vector<8x128xf32>
    %325 = math.tanh %324 : vector<8x128xf32>
    %326 = arith.mulf %320, %325 : vector<8x128xf32>
    %c0_182 = arith.constant 0 : index
    %c0_183 = arith.constant 0 : index
    %327 = vector.load %arg11[%c0_182, %c0_183] : memref<8x128xf32, #tpu.memory_space<vmem>>, vector<8x128xf32>
    tpu.vector_store %arg11[%c0_182, %c0_183], %324 {strides = array<i32>} : memref<8x128xf32, #tpu.memory_space<vmem>>, vector<8x128xf32>,
    %c0_184 = arith.constant 0 : index
    %c0_185 = arith.constant 0 : index
    %328 = vector.load %arg10[%c0_184, %c0_185] : memref<8x128xf32, #tpu.memory_space<vmem>>, vector<8x128xf32>
    tpu.vector_store %arg10[%c0_184, %c0_185], %326 {strides = array<i32>} : memref<8x128xf32, #tpu.memory_space<vmem>>, vector<8x128xf32>,
    %c0_186 = arith.constant 0 : index
    %c0_187 = arith.constant 0 : index
    %329 = vector.load %arg12[%c0_186, %c0_187] : memref<8x128xf32, #tpu.memory_space<vmem>>, vector<8x128xf32>
    %330 = arith.addf %329, %326 : vector<8x128xf32>
    %c0_188 = arith.constant 0 : index
    %c0_189 = arith.constant 0 : index
    %331 = vector.load %arg12[%c0_188, %c0_189] : memref<8x128xf32, #tpu.memory_space<vmem>>, vector<8x128xf32>
    tpu.vector_store %arg12[%c0_188, %c0_189], %330 {strides = array<i32>} : memref<8x128xf32, #tpu.memory_space<vmem>>, vector<8x128xf32>,
    %c7_i32 = arith.constant 7 : i32
    %c8_i32_190 = arith.constant 8 : i32
    %332 = arith.muli %c7_i32, %c8_i32_190 : i32
    %333 = tpu.assume_multiple %332, 8 : i32
    %334 = arith.index_cast %333 : i32 to index
    %c0_191 = arith.constant 0 : index
    %335 = vector.load %arg13[%334, %c0_191] : memref<64x512xf32, #tpu.memory_space<vmem>>, vector<8x512xf32>
    %c0_192 = arith.constant 0 : index
    %c0_193 = arith.constant 0 : index
    %336 = vector.load %arg10[%c0_192, %c0_193] : memref<8x128xf32, #tpu.memory_space<vmem>>, vector<8x128xf32>
    %337 = arith.truncf %336 : vector<8x128xf32> to vector<8x128xbf16>
    %c0_194 = arith.constant 0 : index
    %c0_195 = arith.constant 0 : index
    %338 = vector.load %arg4[%c0_194, %c0_195] : memref<128x512xbf16, #tpu.memory_space<vmem>>, vector<128x512xbf16>
    %cst_196 = arith.constant dense<0.000000e+00> : vector<8x512xf32>
    %339 = tpu.matmul %337, %338, %cst_196 {dimension_numbers = #tpu.dot_dimension_numbers<[1], [0], [0], [1], [0, 0, 1, 1], [], []>} : vector<8x128xbf16>, vector<128x512xbf16>, vector<8x512xf32> -> vector<8x512xf32>
    %340 = arith.addf %335, %339 : vector<8x512xf32>
    %341 = vector.extract_strided_slice %340 {offsets = [0, 0], sizes = [8, 128], strides = [1, 1]} : vector<8x512xf32> to vector<8x128xf32>
    %cst_197 = arith.constant 5.000000e-01 : f32
    %342 = vector.broadcast %cst_197 : f32 to vector<8x128xf32>
    %343 = arith.mulf %342, %341 : vector<8x128xf32>
    %344 = math.tanh %343 : vector<8x128xf32>
    %cst_198 = arith.constant 5.000000e-01 : f32
    %345 = vector.broadcast %cst_198 : f32 to vector<8x128xf32>
    %346 = arith.mulf %345, %344 : vector<8x128xf32>
    %cst_199 = arith.constant 5.000000e-01 : f32
    %347 = vector.broadcast %cst_199 : f32 to vector<8x128xf32>
    %348 = arith.addf %346, %347 : vector<8x128xf32>
    %349 = vector.extract_strided_slice %340 {offsets = [0, 128], sizes = [8, 128], strides = [1, 1]} : vector<8x512xf32> to vector<8x128xf32>
    %cst_200 = arith.constant 5.000000e-01 : f32
    %350 = vector.broadcast %cst_200 : f32 to vector<8x128xf32>
    %351 = arith.mulf %350, %349 : vector<8x128xf32>
    %352 = math.tanh %351 : vector<8x128xf32>
    %cst_201 = arith.constant 5.000000e-01 : f32
    %353 = vector.broadcast %cst_201 : f32 to vector<8x128xf32>
    %354 = arith.mulf %353, %352 : vector<8x128xf32>
    %cst_202 = arith.constant 5.000000e-01 : f32
    %355 = vector.broadcast %cst_202 : f32 to vector<8x128xf32>
    %356 = arith.addf %354, %355 : vector<8x128xf32>
    %357 = vector.extract_strided_slice %340 {offsets = [0, 256], sizes = [8, 128], strides = [1, 1]} : vector<8x512xf32> to vector<8x128xf32>
    %358 = math.tanh %357 : vector<8x128xf32>
    %359 = vector.extract_strided_slice %340 {offsets = [0, 384], sizes = [8, 128], strides = [1, 1]} : vector<8x512xf32> to vector<8x128xf32>
    %cst_203 = arith.constant 5.000000e-01 : f32
    %360 = vector.broadcast %cst_203 : f32 to vector<8x128xf32>
    %361 = arith.mulf %360, %359 : vector<8x128xf32>
    %362 = math.tanh %361 : vector<8x128xf32>
    %cst_204 = arith.constant 5.000000e-01 : f32
    %363 = vector.broadcast %cst_204 : f32 to vector<8x128xf32>
    %364 = arith.mulf %363, %362 : vector<8x128xf32>
    %cst_205 = arith.constant 5.000000e-01 : f32
    %365 = vector.broadcast %cst_205 : f32 to vector<8x128xf32>
    %366 = arith.addf %364, %365 : vector<8x128xf32>
    %c0_206 = arith.constant 0 : index
    %c0_207 = arith.constant 0 : index
    %367 = vector.load %arg11[%c0_206, %c0_207] : memref<8x128xf32, #tpu.memory_space<vmem>>, vector<8x128xf32>
    %368 = arith.mulf %356, %367 : vector<8x128xf32>
    %369 = arith.mulf %348, %358 : vector<8x128xf32>
    %370 = arith.addf %368, %369 : vector<8x128xf32>
    %371 = math.tanh %370 : vector<8x128xf32>
    %372 = arith.mulf %366, %371 : vector<8x128xf32>
    %c0_208 = arith.constant 0 : index
    %c0_209 = arith.constant 0 : index
    %373 = vector.load %arg11[%c0_208, %c0_209] : memref<8x128xf32, #tpu.memory_space<vmem>>, vector<8x128xf32>
    tpu.vector_store %arg11[%c0_208, %c0_209], %370 {strides = array<i32>} : memref<8x128xf32, #tpu.memory_space<vmem>>, vector<8x128xf32>,
    %c0_210 = arith.constant 0 : index
    %c0_211 = arith.constant 0 : index
    %374 = vector.load %arg10[%c0_210, %c0_211] : memref<8x128xf32, #tpu.memory_space<vmem>>, vector<8x128xf32>
    tpu.vector_store %arg10[%c0_210, %c0_211], %372 {strides = array<i32>} : memref<8x128xf32, #tpu.memory_space<vmem>>, vector<8x128xf32>,
    %c0_212 = arith.constant 0 : index
    %c0_213 = arith.constant 0 : index
    %375 = vector.load %arg12[%c0_212, %c0_213] : memref<8x128xf32, #tpu.memory_space<vmem>>, vector<8x128xf32>
    %376 = arith.addf %375, %372 : vector<8x128xf32>
    %c0_214 = arith.constant 0 : index
    %c0_215 = arith.constant 0 : index
    %377 = vector.load %arg12[%c0_214, %c0_215] : memref<8x128xf32, #tpu.memory_space<vmem>>, vector<8x128xf32>
    tpu.vector_store %arg12[%c0_214, %c0_215], %376 {strides = array<i32>} : memref<8x128xf32, #tpu.memory_space<vmem>>, vector<8x128xf32>,
    %c8_i32_216 = arith.constant 8 : i32
    %c0_i32_217 = arith.constant 0 : i32
    %378 = arith.cmpi eq, %arg1, %c0_i32_217 : i32
    %379 = arith.extui %378 : i1 to i32
    %c0_i32_218 = arith.constant 0 : i32
    %380 = arith.cmpi ne, %379, %c0_i32_218 : i32
    scf.if %380 {
      %c0_219 = arith.constant 0 : index
      %c0_220 = arith.constant 0 : index
      %381 = vector.load %arg10[%c0_219, %c0_220] : memref<8x128xf32, #tpu.memory_space<vmem>>, vector<8x128xf32>
      %c0_221 = arith.constant 0 : index
      %c0_222 = arith.constant 0 : index
      %382 = vector.load %arg12[%c0_221, %c0_222] : memref<8x128xf32, #tpu.memory_space<vmem>>, vector<8x128xf32>
      %383 = arith.mulf %381, %382 : vector<8x128xf32>
      %c0_223 = arith.constant 0 : index
      %c0_224 = arith.constant 0 : index
      %384 = vector.load %arg6[%c0_223, %c0_224] : memref<1x128xf32, #tpu.memory_space<vmem>>, vector<1x128xf32>
      %385 = vector.broadcast %384 : vector<1x128xf32> to vector<8x128xf32>
      %386 = arith.mulf %383, %385 : vector<8x128xf32>
      %cst_225 = arith.constant dense<0.000000e+00> : vector<8xf32>
      %387 = vector.multi_reduction <add>, %386, %cst_225 [1] : vector<8x128xf32> to vector<8xf32>
      %388 = vector.shape_cast %387 : vector<8xf32> to vector<8x1xf32>
      %389 = vector.broadcast %388 : vector<8x1xf32> to vector<8x128xf32>
      %390 = arith.mulf %389, %381 : vector<8x128xf32>
      %c0_226 = arith.constant 0 : index
      %c0_227 = arith.constant 0 : index
      %391 = vector.load %arg7[%c0_226, %c0_227] : memref<128x1xf32, #tpu.memory_space<vmem>>, vector<128x1xf32>
      %cst_228 = arith.constant dense<0.000000e+00> : vector<8x1xf32>
      %392 = tpu.matmul %390, %391, %cst_228 {dimension_numbers = #tpu.dot_dimension_numbers<[1], [0], [0], [1], [0, 0, 1, 1], [], []>} : vector<8x128xf32>, vector<128x1xf32>, vector<8x1xf32> -> vector<8x1xf32>
      %c0_229 = arith.constant 0 : index
      %c0_230 = arith.constant 0 : index
      %393 = vector.load %arg8[%c0_229, %c0_230] : memref<1x1xf32, #tpu.memory_space<vmem>>, vector<1x1xf32>
      %394 = vector.broadcast %393 : vector<1x1xf32> to vector<8x1xf32>
      %395 = arith.addf %392, %394 : vector<8x1xf32>
      %c0_231 = arith.constant 0 : index
      %c0_232 = arith.constant 0 : index
      %396 = vector.load %arg9[%c0_231, %c0_232] : memref<8x1xf32, #tpu.memory_space<vmem>>, vector<8x1xf32>
      tpu.vector_store %arg9[%c0_231, %c0_232], %395 {strides = array<i32>} : memref<8x1xf32, #tpu.memory_space<vmem>>, vector<8x1xf32>,
    } else {
    }
    return
  }
  func.func @transform_0(%arg0: i32, %arg1: i32) -> (i32, i32) {
    %c1_i32 = arith.constant 1 : i32
    %0 = arith.muli %arg0, %c1_i32 : i32
    %1 = arith.addi %0, %arg1 : i32
    %c0_i32 = arith.constant 0 : i32
    %c0_i32_0 = arith.constant 0 : i32
    return %1, %c0_i32 : i32, i32
  }
  func.func @transform_1(%arg0: i32, %arg1: i32) -> (i32, i32) {
    %c0_i32 = arith.constant 0 : i32
    %c0_i32_0 = arith.constant 0 : i32
    %c0_i32_1 = arith.constant 0 : i32
    return %c0_i32, %c0_i32_0 : i32, i32
  }
  func.func @transform_2(%arg0: i32, %arg1: i32) -> (i32, i32) {
    %c0_i32 = arith.constant 0 : i32
    %c0_i32_0 = arith.constant 0 : i32
    %c0_i32_1 = arith.constant 0 : i32
    return %c0_i32, %c0_i32_0 : i32, i32
  }
  func.func @transform_3(%arg0: i32, %arg1: i32) -> (i32, i32) {
    %c0_i32 = arith.constant 0 : i32
    %c0_i32_0 = arith.constant 0 : i32
    %c0_i32_1 = arith.constant 0 : i32
    return %c0_i32, %c0_i32_0 : i32, i32
  }
  func.func @transform_4(%arg0: i32, %arg1: i32) -> (i32, i32) {
    %c0_i32 = arith.constant 0 : i32
    %c0_i32_0 = arith.constant 0 : i32
    %c0_i32_1 = arith.constant 0 : i32
    return %c0_i32, %c0_i32_0 : i32, i32
  }
  func.func @transform_5(%arg0: i32, %arg1: i32) -> (i32, i32) {
    %c0_i32 = arith.constant 0 : i32
    %c0_i32_0 = arith.constant 0 : i32
    %c0_i32_1 = arith.constant 0 : i32
    return %c0_i32, %c0_i32_0 : i32, i32
  }
  func.func @transform_6(%arg0: i32, %arg1: i32) -> (i32, i32) {
    %c0_i32 = arith.constant 0 : i32
    %c0_i32_0 = arith.constant 0 : i32
    %c0_i32_1 = arith.constant 0 : i32
    return %c0_i32, %c0_i32_0 : i32, i32
  }
  func.func @transform_7(%arg0: i32, %arg1: i32) -> (i32, i32) {
    %c0_i32 = arith.constant 0 : i32
    %c0_i32_0 = arith.constant 0 : i32
    return %arg0, %c0_i32 : i32, i32
  }
}

</mosaic_0001>

<bundles_post_ra>
// kernel: tpu_custom_call.1
= control target key start
LH: loop header
LB: loop body
LE: loop exit
PB: predicated region body
PF: predicated region fallthrough
CT: control target
= control target key end

     0   :  { %s4701_s0 = inlined_call_operand.vmem [shape: bf16[64,128], index: 0, kind: input, shape index: {}]   ;;  %s4702_s1 = inlined_call_operand.hbm [shape: bf16[128,512], index: 1, kind: input, shape index: {}]   ;;  %s4703_s2 = inlined_call_operand.hbm [shape: bf16[128,512], index: 2, kind: input, shape index: {}]   ;;  %s4704_s3 = inlined_call_operand.vmem [shape: f32[1,512], index: 3, kind: input, shape index: {}]   ;;  %s4705_s4 = inlined_call_operand.vmem [shape: f32[1,128], index: 4, kind: input, shape index: {}]   ;;  %s4706_s5 = inlined_call_operand.vmem [shape: f32[128,1], index: 5, kind: input, shape index: {}]   ;;  %s4707_s6 = inlined_call_operand.<no memory space> [shape: f32[1,1], index: 6, kind: input, shape index: {}]   ;;  %s4708_s7 = inlined_call_operand.vmem [shape: f32[8,1], index: 7, kind: output, shape index: {}]  }
   0x1   :  { %v12_v0 = vstv %s4707_s6 }
   0x2   :  { %13 = vst [vmem:[#allocation6] sm:$0x1] %v12_v0 }
   0x3   :  { %14 = vsyncpa [#allocation8], 0  ;;  %s30_s28 = sshll.u32 %s4702_s1, 4  ;;  %s31_s28 = int_to_ptr.hbm [resolvable:$true] %s30_s28 }
   0x4   :  { %15 = vsyncpa [#allocation10], 0  ;;  %s4393_s29 = smov [#allocation7]   ;;  %s43_s10 = sshll.u32 %s4703_s2, 4  ;;  %s44_s10 = int_to_ptr.hbm [resolvable:$true] %s43_s10 }
   0x5   :  { %s32_s30 = sshll.u32 %s4393_s29, 4  ;;  %s4394_s11 = smov 256   ;;  %s33_s30 = int_to_ptr.vmem [resolvable:$true] %s32_s30 }
   0x6   :  { %s4395_s12 = smov 16   ;;  %s4396_s6 = smov [#allocation9]  }
   0x7   :  { %38 = dma.hbm_to_vmem [thread:$0]  %s31_s28, 4096, %s33_s30, [#allocation8], %s4394_s11, %s4394_s11, %s4395_s12  }
   0x8   :  { %s45_s13 = sshll.u32 %s4396_s6, 4  ;;  %s46_s13 = int_to_ptr.vmem [resolvable:$true] %s45_s13 }
   0x9   :  { %51 = dma.hbm_to_vmem [thread:$0]  %s44_s10, 4096, %s46_s13, [#allocation10], %s4394_s11, %s4394_s11, %s4395_s12  }
   0xa   :  { %4389 = dma.done.wait [#allocation8], 4096  }
   0xb   :  { %4390 = vsyncadd [#allocation8], 4294963200 }
   0xc   :  { %4391 = dma.done.wait [#allocation10], 4096  }
   0xd   :  { %4392 = vsyncadd [#allocation10], 4294963200  ;;  %v2924_v1 = vld [vmem:[#allocation7 + $0xe0] sm:$0xf]  ;;  %v3996_v2 = vld [vmem:[#allocation7 + $0xec] sm:$0xf0] }
   0xe   :  { %v3994_v3 = vld [vmem:[#allocation7 + $0xe4] sm:$0xf]  ;;  %v2925_v4 = vor.u32 %v3996_v2, %v2924_v1  ;;  %v2926_v5 = vld [vmem:[#allocation7 + $0xf0] sm:$0xf0]  ;;  %v2932_v6 = vld [vmem:[#allocation7 + $0xe8] sm:$0xf] }
   0xf   :  { %v3997_v7 = vld [vmem:[#allocation7 + $0xf4] sm:$0xf0]  ;;  %v2929_v8 = vor.u32 %v3994_v3, %v2926_v5  ;;  %v3995_v10 = vld [vmem:[#allocation7 + $0xec] sm:$0xf]  ;;  %v2934_v11 = vld [vmem:[#allocation7 + $0xf8] sm:$0xf0] }
  0x10   :  { %v2933_v9 = vor.u32 %v3997_v7, %v2932_v6  ;;  %v2908_v12 = vld [vmem:[#allocation7 + $0xc0] sm:$0xf]  ;;  %323 = vmatpush.bf16.msra.mxu0 %v2925_v4  ;;  %v2937_v13 = vor.u32 %v3995_v10, %v2934_v11  ;;  %v3992_v14 = vld [vmem:[#allocation7 + $0xcc] sm:$0xf0]  ;;  %v3990_v15 = vld [vmem:[#allocation7 + $0xc4] sm:$0xf] }
  0x11   :  { %v2910_v16 = vld [vmem:[#allocation7 + $0xd0] sm:$0xf0]  ;;  %352 = vmatpush.bf16.msra.mxu1 %v2929_v8  ;;  %v2909_v17 = vor.u32 %v3992_v14, %v2908_v12  ;;  %v2916_v19 = vld [vmem:[#allocation7 + $0xc8] sm:$0xf]  ;;  %v3993_v20 = vld [vmem:[#allocation7 + $0xd4] sm:$0xf0] }
  0x12   :  { %381 = vmatpush.bf16.msra.mxu2 %v2933_v9  ;;  %v2913_v18 = vor.u32 %v3990_v15, %v2910_v16  ;;  %v3991_v21 = vld [vmem:[#allocation7 + $0xcc] sm:$0xf]  ;;  %410 = vmatpush.bf16.msra.mxu3 %v2937_v13  ;;  %v2917_v22 = vor.u32 %v3993_v20, %v2916_v19  ;;  %v2918_v23 = vld [vmem:[#allocation7 + $0xd8] sm:$0xf0]  ;;  %v2892_v24 = vld [vmem:[#allocation7 + $0xa0] sm:$0xf] }
  0x13   :  { %v3988_v25 = vld [vmem:[#allocation7 + $0xac] sm:$0xf0]  ;;  %v2921_v26 = vor.u32 %v3991_v21, %v2918_v23  ;;  %v3986_v27 = vld [vmem:[#allocation7 + $0xa4] sm:$0xf]  ;;  %v2894_v28 = vld [vmem:[#allocation7 + $0xb0] sm:$0xf0] }
  0x14   :  { %v2900_v29 = vld [vmem:[#allocation7 + $0xa8] sm:$0xf]  ;;  %324 = vmatpush.bf16.msra.mxu0 %v2909_v17  ;;  %v2893_v30 = vor.u32 %v3988_v25, %v2892_v24  ;;  %v3989_v31 = vld [vmem:[#allocation7 + $0xb4] sm:$0xf0]  ;;  %v3987_v32 = vld [vmem:[#allocation7 + $0xac] sm:$0xf]  ;;  %v2897_v34 = vor.u32 %v3986_v27, %v2894_v28 }
  0x15   :  { %v2902_v33 = vld [vmem:[#allocation7 + $0xb8] sm:$0xf0]  ;;  %353 = vmatpush.bf16.msra.mxu1 %v2913_v18  ;;  %v2901_v35 = vor.u32 %v3989_v31, %v2900_v29  ;;  %v2876_v36 = vld [vmem:[#allocation7 + $0x80] sm:$0xf]  ;;  %v3984_v37 = vld [vmem:[#allocation7 + $0x8c] sm:$0xf0] }
  0x16   :  { %382 = vmatpush.bf16.msra.mxu2 %v2917_v22  ;;  %v3982_v38 = vld [vmem:[#allocation7 + $0x84] sm:$0xf]  ;;  %411 = vmatpush.bf16.msra.mxu3 %v2921_v26  ;;  %v2905_v39 = vor.u32 %v3987_v32, %v2902_v33  ;;  %v2878_v40 = vld [vmem:[#allocation7 + $0x90] sm:$0xf0]  ;;  %v2884_v41 = vld [vmem:[#allocation7 + $0x88] sm:$0xf]  ;;  %v2877_v45 = vor.u32 %v3984_v37, %v2876_v36 }
  0x17   :  { %v3985_v42 = vld [vmem:[#allocation7 + $0x94] sm:$0xf0]  ;;  %v3983_v43 = vld [vmem:[#allocation7 + $0x8c] sm:$0xf]  ;;  %v2886_v44 = vld [vmem:[#allocation7 + $0x98] sm:$0xf0]  ;;  %v2881_v46 = vor.u32 %v3982_v38, %v2878_v40 }
  0x18   :  { %325 = vmatpush.bf16.msra.mxu0 %v2893_v30  ;;  %v2885_v47 = vor.u32 %v3985_v42, %v2884_v41  ;;  %v2860_v48 = vld [vmem:[#allocation7 + $0x60] sm:$0xf]  ;;  %v3980_v49 = vld [vmem:[#allocation7 + $0x6c] sm:$0xf0]  ;;  %v3978_v50 = vld [vmem:[#allocation7 + $0x64] sm:$0xf]  ;;  %v2889_v51 = vor.u32 %v3983_v43, %v2886_v44 }
  0x19   :  { %354 = vmatpush.bf16.msra.mxu1 %v2897_v34  ;;  %v2862_v52 = vld [vmem:[#allocation7 + $0x70] sm:$0xf0]  ;;  %v2868_v53 = vld [vmem:[#allocation7 + $0x68] sm:$0xf]  ;;  %v3981_v54 = vld [vmem:[#allocation7 + $0x74] sm:$0xf0]  ;;  %v2861_v57 = vor.u32 %v3980_v49, %v2860_v48 }
  0x1a   :  { %383 = vmatpush.bf16.msra.mxu2 %v2901_v35  ;;  %412 = vmatpush.bf16.msra.mxu3 %v2905_v39  ;;  %v3979_v55 = vld [vmem:[#allocation7 + $0x6c] sm:$0xf]  ;;  %v2870_v56 = vld [vmem:[#allocation7 + $0x78] sm:$0xf0]  ;;  %v2865_v58 = vor.u32 %v3978_v50, %v2862_v52  ;;  %v2869_v59 = vor.u32 %v3981_v54, %v2868_v53  ;;  %v2844_v60 = vld [vmem:[#allocation7 + $0x40] sm:$0xf] }
  0x1b   :  { %v3976_v61 = vld [vmem:[#allocation7 + $0x4c] sm:$0xf0]  ;;  %v3974_v62 = vld [vmem:[#allocation7 + $0x44] sm:$0xf]  ;;  %v2873_v63 = vor.u32 %v3979_v55, %v2870_v56  ;;  %v2846_v0 = vld [vmem:[#allocation7 + $0x50] sm:$0xf0] }
  0x1c   :  { %326 = vmatpush.bf16.msra.mxu0 %v2877_v45  ;;  %v2852_v1 = vld [vmem:[#allocation7 + $0x48] sm:$0xf]  ;;  %v3977_v2 = vld [vmem:[#allocation7 + $0x54] sm:$0xf0]  ;;  %v3975_v3 = vld [vmem:[#allocation7 + $0x4c] sm:$0xf]  ;;  %v2845_v5 = vor.u32 %v3976_v61, %v2844_v60  ;;  %v2849_v6 = vor.u32 %v3974_v62, %v2846_v0 }
  0x1d   :  { %355 = vmatpush.bf16.msra.mxu1 %v2881_v46  ;;  %v2854_v4 = vld [vmem:[#allocation7 + $0x58] sm:$0xf0]  ;;  %v2853_v7 = vor.u32 %v3977_v2, %v2852_v1  ;;  %v2828_v8 = vld [vmem:[#allocation7 + $0x20] sm:$0xf]  ;;  %v3972_v9 = vld [vmem:[#allocation7 + $0x2c] sm:$0xf0] }
  0x1e   :  { %384 = vmatpush.bf16.msra.mxu2 %v2885_v47  ;;  %413 = vmatpush.bf16.msra.mxu3 %v2889_v51  ;;  %v3970_v10 = vld [vmem:[#allocation7 + $0x24] sm:$0xf]  ;;  %v2857_v11 = vor.u32 %v3975_v3, %v2854_v4  ;;  %v2830_v12 = vld [vmem:[#allocation7 + $0x30] sm:$0xf0]  ;;  %v2836_v13 = vld [vmem:[#allocation7 + $0x28] sm:$0xf]  ;;  %v2829_v17 = vor.u32 %v3972_v9, %v2828_v8 }
  0x1f   :  { %v3973_v14 = vld [vmem:[#allocation7 + $0x34] sm:$0xf0]  ;;  %v3971_v15 = vld [vmem:[#allocation7 + $0x2c] sm:$0xf]  ;;  %v2838_v16 = vld [vmem:[#allocation7 + $0x38] sm:$0xf0]  ;;  %v2833_v19 = vor.u32 %v3970_v10, %v2830_v12 }
  0x20   :  { %327 = vmatpush.bf16.msra.mxu0 %v2861_v57  ;;  %v2812_v18 = vld [vmem:[#allocation7] sm:$0xf]  ;;  %v2837_v20 = vor.u32 %v3973_v14, %v2836_v13  ;;  %v3968_v21 = vld [vmem:[#allocation7 + $0xc] sm:$0xf0]  ;;  %v3966_v22 = vld [vmem:[#allocation7 + $0x4] sm:$0xf]  ;;  %v2841_v24 = vor.u32 %v3971_v15, %v2838_v16 }
  0x21   :  { %356 = vmatpush.bf16.msra.mxu1 %v2865_v58  ;;  %v2814_v23 = vld [vmem:[#allocation7 + $0x10] sm:$0xf0]  ;;  %v2820_v25 = vld [vmem:[#allocation7 + $0x8] sm:$0xf]  ;;  %v3969_v26 = vld [vmem:[#allocation7 + $0x14] sm:$0xf0]  ;;  %v2813_v31 = vor.u32 %v3968_v21, %v2812_v18 }
  0x22   :  { %385 = vmatpush.bf16.msra.mxu2 %v2869_v59  ;;  %414 = vmatpush.bf16.msra.mxu3 %v2873_v63  ;;  %v3967_v27 = vld [vmem:[#allocation7 + $0xc] sm:$0xf]  ;;  %v2822_v28 = vld [vmem:[#allocation7 + $0x18] sm:$0xf0]  ;;  %v3052_v29 = vld [vmem:[#allocation9 + $0xe0] sm:$0xf]  ;;  %v2817_v34 = vor.u32 %v3966_v22, %v2814_v23  ;;  %v2821_v35 = vor.u32 %v3969_v26, %v2820_v25 }
  0x23   :  { %v4028_v30 = vld [vmem:[#allocation9 + $0xec] sm:$0xf0]  ;;  %v4026_v32 = vld [vmem:[#allocation9 + $0xe4] sm:$0xf]  ;;  %v3054_v33 = vld [vmem:[#allocation9 + $0xf0] sm:$0xf0]  ;;  %v2825_v37 = vor.u32 %v3967_v27, %v2822_v28 }
  0x24   :  { %328 = vmatpush.bf16.msra.mxu0 %v2845_v5  ;;  %v3962_v36 = vld [vmem:[%s4701_s0] sm:$0xff]  ;;  %v3053_v38 = vor.u32 %v4028_v30, %v3052_v29  ;;  %v3060_v39 = vld [vmem:[#allocation9 + $0xe8] sm:$0xf]  ;;  %v4029_v40 = vld [vmem:[#allocation9 + $0xf4] sm:$0xf0]  ;;  %v3057_v42 = vor.u32 %v4026_v32, %v3054_v33  ;;  %vm2773_vm0 = vcmask 7168  }
  0x25   :  { %357 = vmatpush.bf16.msra.mxu1 %v2849_v6  ;;  %v4027_v41 = vld [vmem:[#allocation9 + $0xec] sm:$0xf]  ;;  %v3062_v43 = vld [vmem:[#allocation9 + $0xf8] sm:$0xf0]  ;;  %v3036_v44 = vld [vmem:[#allocation9 + $0xc0] sm:$0xf]  ;;  %v3061_v48 = vor.u32 %v4029_v40, %v3060_v39 }
  0x26   :  { %386 = vmatpush.bf16.msra.mxu2 %v2853_v7  ;;  %415 = vmatpush.bf16.msra.mxu3 %v2857_v11  ;;  %v4024_v45 = vld [vmem:[#allocation9 + $0xcc] sm:$0xf0]  ;;  %v4022_v46 = vld [vmem:[#allocation9 + $0xc4] sm:$0xf]  ;;  %v3038_v47 = vld [vmem:[#allocation9 + $0xd0] sm:$0xf0]  ;;  %v3065_v51 = vor.u32 %v4027_v41, %v3062_v43 }
  0x27   :  { %v3044_v49 = vld [vmem:[#allocation9 + $0xc8] sm:$0xf]  ;;  %v4025_v50 = vld [vmem:[#allocation9 + $0xd4] sm:$0xf0]  ;;  %v3037_v52 = vor.u32 %v4024_v45, %v3036_v44  ;;  %v4023_v53 = vld [vmem:[#allocation9 + $0xcc] sm:$0xf]  ;;  %v3041_v54 = vor.u32 %v4022_v46, %v3038_v47 }
  0x28   :  { %329 = vmatpush.bf16.msra.mxu0 %v2829_v17  ;;  %v3046_v55 = vld [vmem:[#allocation9 + $0xd8] sm:$0xf0]  ;;  %v3020_v56 = vld [vmem:[#allocation9 + $0xa0] sm:$0xf]  ;;  %v4020_v57 = vld [vmem:[#allocation9 + $0xac] sm:$0xf0]  ;;  %v3045_v60 = vor.u32 %v4025_v50, %v3044_v49 }
  0x29   :  { %358 = vmatpush.bf16.msra.mxu1 %v2833_v19  ;;  %v4018_v58 = vld [vmem:[#allocation9 + $0xa4] sm:$0xf]  ;;  %v3022_v59 = vld [vmem:[#allocation9 + $0xb0] sm:$0xf0]  ;;  %v3049_v61 = vor.u32 %v4023_v53, %v3046_v55  ;;  %v3021_v62 = vor.u32 %v4020_v57, %v3020_v56  ;;  %v3028_v63 = vld [vmem:[#allocation9 + $0xa8] sm:$0xf] }
  0x2a   :  { %387 = vmatpush.bf16.msra.mxu2 %v2837_v20  ;;  %416 = vmatpush.bf16.msra.mxu3 %v2841_v24  ;;  %v4021_v0 = vld [vmem:[#allocation9 + $0xb4] sm:$0xf0]  ;;  %v4019_v1 = vld [vmem:[#allocation9 + $0xac] sm:$0xf]  ;;  %v3025_v2 = vor.u32 %v4018_v58, %v3022_v59  ;;  %v3030_v3 = vld [vmem:[#allocation9 + $0xb8] sm:$0xf0] }
  0x2b   :  { %v3004_v4 = vld [vmem:[#allocation9 + $0x80] sm:$0xf]  ;;  %v4016_v5 = vld [vmem:[#allocation9 + $0x8c] sm:$0xf0]  ;;  %v4014_v6 = vld [vmem:[#allocation9 + $0x84] sm:$0xf]  ;;  %v3029_v8 = vor.u32 %v4021_v0, %v3028_v63  ;;  %v3033_v9 = vor.u32 %v4019_v1, %v3030_v3 }
  0x2c   :  { %330 = vmatpush.bf16.msra.mxu0 %v2813_v31  ;;  %v3006_v7 = vld [vmem:[#allocation9 + $0x90] sm:$0xf0]  ;;  %v3005_v10 = vor.u32 %v4016_v5, %v3004_v4  ;;  %v3012_v11 = vld [vmem:[#allocation9 + $0x88] sm:$0xf]  ;;  %v4017_v12 = vld [vmem:[#allocation9 + $0x94] sm:$0xf0] }
  0x2d   :  { %359 = vmatpush.bf16.msra.mxu1 %v2817_v34  ;;  %v4015_v13 = vld [vmem:[#allocation9 + $0x8c] sm:$0xf]  ;;  %v3009_v14 = vor.u32 %v4014_v6, %v3006_v7  ;;  %v3014_v15 = vld [vmem:[#allocation9 + $0x98] sm:$0xf0]  ;;  %v2988_v16 = vld [vmem:[#allocation9 + $0x60] sm:$0xf]  ;;  %v3013_v21 = vor.u32 %v4017_v12, %v3012_v11 }
  0x2e   :  { %388 = vmatpush.bf16.msra.mxu2 %v2821_v35  ;;  %417 = vmatpush.bf16.msra.mxu3 %v2825_v37  ;;  %v4012_v17 = vld [vmem:[#allocation9 + $0x6c] sm:$0xf0]  ;;  %v4010_v18 = vld [vmem:[#allocation9 + $0x64] sm:$0xf]  ;;  %v2990_v19 = vld [vmem:[#allocation9 + $0x70] sm:$0xf0]  ;;  %v3017_v22 = vor.u32 %v4015_v13, %v3014_v15 }
  0x2f   :  { %331 = vmatmul.bf16.vlgmr.msra.gmra.mxu0 %v3962_v36  ;;  %v3963_v20 = vld [vmem:[%s4701_s0 + $0x8] sm:$0xff]  ;;  %v2989_v23 = vor.u32 %v4012_v17, %v2988_v16  ;;  %v4013_v25 = vld [vmem:[#allocation9 + $0x74] sm:$0xf0]  ;;  %v2993_v27 = vor.u32 %v4010_v18, %v2990_v19  ;;  %v2998_v28 = vld [vmem:[#allocation9 + $0x78] sm:$0xf0]  ;;  %v4397_v5 = vmov 0.0|0.0  }
  0x30   :  { %672 = vmatpush.bf16.msrb.mxu0 %v3053_v38  ;;  %360 = vmatmul.bf16.vlgmr.msra.gmra.mxu1 %v3962_v36  ;;  %v2996_v24 = vld [vmem:[#allocation9 + $0x68] sm:$0xf]  ;;  %v4011_v26 = vld [vmem:[#allocation9 + $0x6c] sm:$0xf]  ;;  %v2972_v29 = vld [vmem:[#allocation9 + $0x40] sm:$0xf] }
  0x31   :  { %685 = vmatpush.bf16.msrb.mxu1 %v3057_v42  ;;  %389 = vmatmul.bf16.vlgmr.msra.gmra.mxu2 %v3962_v36  ;;  %v4008_v30 = vld [vmem:[#allocation9 + $0x4c] sm:$0xf0]  ;;  %v4006_v31 = vld [vmem:[#allocation9 + $0x44] sm:$0xf]  ;;  %v2974_v32 = vld [vmem:[#allocation9 + $0x50] sm:$0xf0]  ;;  %v2997_v33 = vor.u32 %v4013_v25, %v2996_v24  ;;  %v3001_v34 = vor.u32 %v4011_v26, %v2998_v28 }
  0x32   :  { %418 = vmatmul.bf16.vlgmr.msra.gmra.mxu3 %v3962_v36  ;;  %698 = vmatpush.bf16.msrb.mxu2 %v3061_v48  ;;  %v2973_v35 = vor.u32 %v4008_v30, %v2972_v29  ;;  %v2980_v36 = vld [vmem:[#allocation9 + $0x48] sm:$0xf]  ;;  %v4009_v37 = vld [vmem:[#allocation9 + $0x54] sm:$0xf0]  ;;  %v2977_v38 = vor.u32 %v4006_v31, %v2974_v32  ;;  %v4007_v39 = vld [vmem:[#allocation9 + $0x4c] sm:$0xf] }
  0x33   :  { %711 = vmatpush.bf16.msrb.mxu3 %v3065_v51  ;;  %v2982_v40 = vld [vmem:[#allocation9 + $0x58] sm:$0xf0]  ;;  %v2981_v41 = vor.u32 %v4009_v37, %v2980_v36  ;;  %v2956_v42 = vld [vmem:[#allocation9 + $0x20] sm:$0xf]  ;;  %v4004_v43 = vld [vmem:[#allocation9 + $0x2c] sm:$0xf0] }
  0x34   :  { %673 = vmatpush.bf16.msrb.mxu0 %v3037_v52  ;;  %v4002_v44 = vld [vmem:[#allocation9 + $0x24] sm:$0xf]  ;;  %v2985_v45 = vor.u32 %v4007_v39, %v2982_v40  ;;  %v2957_v46 = vor.u32 %v4004_v43, %v2956_v42  ;;  %v2958_v47 = vld [vmem:[#allocation9 + $0x30] sm:$0xf0]  ;;  %v2964_v48 = vld [vmem:[#allocation9 + $0x28] sm:$0xf] }
  0x35   :  { %686 = vmatpush.bf16.msrb.mxu1 %v3041_v54  ;;  %v4005_v49 = vld [vmem:[#allocation9 + $0x34] sm:$0xf0]  ;;  %v2961_v50 = vor.u32 %v4002_v44, %v2958_v47  ;;  %v4003_v51 = vld [vmem:[#allocation9 + $0x2c] sm:$0xf]  ;;  %v2966_v52 = vld [vmem:[#allocation9 + $0x38] sm:$0xf0] }
  0x36   :  { %699 = vmatpush.bf16.msrb.mxu2 %v3045_v60  ;;  %v2940_v53 = vld [vmem:[#allocation9] sm:$0xf]  ;;  %v4000_v54 = vld [vmem:[#allocation9 + $0xc] sm:$0xf0]  ;;  %v3998_v55 = vld [vmem:[#allocation9 + $0x4] sm:$0xf]  ;;  %v2965_v57 = vor.u32 %v4005_v49, %v2964_v48  ;;  %v2969_v58 = vor.u32 %v4003_v51, %v2966_v52 }
  0x37   :  { %712 = vmatpush.bf16.msrb.mxu3 %v3049_v61  ;;  %v2942_v56 = vld [vmem:[#allocation9 + $0x10] sm:$0xf0]  ;;  %v2941_v59 = vor.u32 %v4000_v54, %v2940_v53  ;;  %v2948_v60 = vld [vmem:[#allocation9 + $0x8] sm:$0xf]  ;;  %v4001_v61 = vld [vmem:[#allocation9 + $0x14] sm:$0xf0] }
  0x38   :  { %674 = vmatpush.bf16.msrb.mxu0 %v3021_v62  ;;  %v2945_v62 = vor.u32 %v3998_v55, %v2942_v56  ;;  %v3999_v63 = vld [vmem:[#allocation9 + $0xc] sm:$0xf]  ;;  %v2950_v0 = vld [vmem:[#allocation9 + $0x18] sm:$0xf0]  ;;  %v2949_v1 = vor.u32 %v4001_v61, %v2948_v60  ;;  %v3180_v36 = vld [vmem:[#allocation9 + $0xe0] sm:$0xf] }
  0x39   :  { %687 = vmatpush.bf16.msrb.mxu1 %v3025_v2  ;;  %v2953_v2 = vor.u32 %v3999_v63, %v2950_v0  ;;  %v3964_v3 = vld [vmem:[%s4701_s0 + $0x10] sm:$0xff]  ;;  %v3965_v4 = vld [vmem:[%s4701_s0 + $0x18] sm:$0xff]  ;;  %v3188_v44 = vld [vmem:[#allocation9 + $0xe8] sm:$0xf] }
  0x3a   :  { %700 = vmatpush.bf16.msrb.mxu2 %v3029_v8  ;;  %v129_v8 = vld [vmem:[%s4704_s3] sm:$0xf]  ;;  %v4060_v37 = vld [vmem:[#allocation9 + $0xec] sm:$0xf0]  ;;  %v3182_v43 = vld [vmem:[#allocation9 + $0xf0] sm:$0xf0] }
  0x3b   :  { %713 = vmatpush.bf16.msrb.mxu3 %v3033_v9  ;;  %v4466_v9 = vperm.slane %v129_v8, 0  ;;  %v4470_v11 = vperm.slane %v129_v8, 1  ;;  %v4480_v17 = vperm.slane %v129_v8, 2  ;;  %v4482_v18 = vperm.slane %v129_v8, 3  ;;  %v4059_v51 = vld [vmem:[#allocation9 + $0xec] sm:$0xf] }
  0x3c   :  { %675 = vmatpush.bf16.msrb.mxu0 %v3005_v10  ;;  %v3181_v42 = vor.u32 %v4060_v37, %v3180_v36  ;;  %v3190_v52 = vld [vmem:[#allocation9 + $0xf8] sm:$0xf0]  ;;  %v3164_v55 = vld [vmem:[#allocation9 + $0xc0] sm:$0xf]  ;;  %v4056_v56 = vld [vmem:[#allocation9 + $0xcc] sm:$0xf0] }
  0x3d   :  { %688 = vmatpush.bf16.msrb.mxu1 %v3009_v14  ;;  %v3193_v54 = vor.u32 %v4059_v51, %v3190_v52  ;;  %v3172_v60 = vld [vmem:[#allocation9 + $0xc8] sm:$0xf]  ;;  %v4057_v61 = vld [vmem:[#allocation9 + $0xd4] sm:$0xf0]  ;;  %v4055_v0 = vld [vmem:[#allocation9 + $0xcc] sm:$0xf] }
  0x3e   :  { %701 = vmatpush.bf16.msrb.mxu2 %v3013_v21  ;;  %v3173_v63 = vor.u32 %v4057_v61, %v3172_v60  ;;  %v4050_v8 = vld [vmem:[#allocation9 + $0xa4] sm:$0xf]  ;;  %v4051_v37 = vld [vmem:[#allocation9 + $0xac] sm:$0xf] }
  0x3f   :  { %714 = vmatpush.bf16.msrb.mxu3 %v3017_v22  ;;  %336 = vmatmul.bf16.gmra.mxu0 %v3963_v20  ;;  %v4042_v60 = vld [vmem:[#allocation9 + $0x64] sm:$0xf] }
  0x40   :  { %676 = vmatpush.bf16.msrb.mxu0 %v2989_v23  ;;  %365 = vmatmul.bf16.gmra.mxu1 %v3963_v20 }
  0x41   :  { %689 = vmatpush.bf16.msrb.mxu1 %v2993_v27  ;;  %394 = vmatmul.bf16.gmra.mxu2 %v3963_v20 }
  0x42   :  { %423 = vmatmul.bf16.gmra.mxu3 %v3963_v20  ;;  %702 = vmatpush.bf16.msrb.mxu2 %v2997_v33 }
  0x43   :  { %715 = vmatpush.bf16.msrb.mxu3 %v3001_v34 }
  0x44   :  { %677 = vmatpush.bf16.msrb.mxu0 %v2973_v35 }
  0x45   :  { %690 = vmatpush.bf16.msrb.mxu1 %v2977_v38  ;;  %v4058_v38 = vld [vmem:[#allocation9 + $0xe4] sm:$0xf] }
  0x46   :  { %703 = vmatpush.bf16.msrb.mxu2 %v2981_v41  ;;  %v3185_v49 = vor.u32 %v4058_v38, %v3182_v43  ;;  %v3158_v38 = vld [vmem:[#allocation9 + $0xb8] sm:$0xf0]  ;;  %v4048_v43 = vld [vmem:[#allocation9 + $0x8c] sm:$0xf0] }
  0x47   :  { %716 = vmatpush.bf16.msrb.mxu3 %v2985_v45  ;;  %v4061_v45 = vld [vmem:[#allocation9 + $0xf4] sm:$0xf0] }
  0x48   :  { %678 = vmatpush.bf16.msrb.mxu0 %v2957_v46 }
  0x49   :  { %691 = vmatpush.bf16.msrb.mxu1 %v2961_v50  ;;  %v3189_v50 = vor.u32 %v4061_v45, %v3188_v44  ;;  %v4046_v44 = vld [vmem:[#allocation9 + $0x84] sm:$0xf] }
  0x4a   :  { %704 = vmatpush.bf16.msrb.mxu2 %v2965_v57  ;;  %v4054_v57 = vld [vmem:[#allocation9 + $0xc4] sm:$0xf] }
  0x4b   :  { %717 = vmatpush.bf16.msrb.mxu3 %v2969_v58  ;;  %v3165_v58 = vor.u32 %v4056_v56, %v3164_v55  ;;  %v3142_v55 = vld [vmem:[#allocation9 + $0x98] sm:$0xf0] }
  0x4c   :  { %679 = vmatpush.bf16.msrb.mxu0 %v2941_v59  ;;  %v3166_v59 = vld [vmem:[#allocation9 + $0xd0] sm:$0xf0] }
  0x4d   :  { %692 = vmatpush.bf16.msrb.mxu1 %v2945_v62  ;;  %v3169_v62 = vor.u32 %v4054_v57, %v3166_v59  ;;  %v4044_v59 = vld [vmem:[#allocation9 + $0x6c] sm:$0xf0] }
  0x4e   :  { %705 = vmatpush.bf16.msrb.mxu2 %v2949_v1  ;;  %v3174_v1 = vld [vmem:[#allocation9 + $0xd8] sm:$0xf0] }
  0x4f   :  { %718 = vmatpush.bf16.msrb.mxu3 %v2953_v2  ;;  %341 = vmatmul.bf16.gmra.mxu0 %v3964_v3  ;;  %v3177_v2 = vor.u32 %v4055_v0, %v3174_v1  ;;  %v3118_v1 = vld [vmem:[#allocation9 + $0x70] sm:$0xf0] }
  0x50   :  { %370 = vmatmul.bf16.gmra.mxu1 %v3964_v3  ;;  %953 = vmatpush.bf16.msra.mxu0 %v3181_v42  ;;  %v3132_v42 = vld [vmem:[#allocation9 + $0x80] sm:$0xf] }
  0x51   :  { %399 = vmatmul.bf16.gmra.mxu2 %v3964_v3  ;;  %966 = vmatpush.bf16.msra.mxu1 %v3185_v49  ;;  %v3133_v45 = vor.u32 %v4048_v43, %v3132_v42  ;;  %v3140_v49 = vld [vmem:[#allocation9 + $0x88] sm:$0xf]  ;;  %v4041_v42 = vld [vmem:[#allocation9 + $0x54] sm:$0xf0] }
  0x52   :  { %428 = vmatmul.bf16.gmra.mxu3 %v3964_v3  ;;  %979 = vmatpush.bf16.msra.mxu2 %v3189_v50  ;;  %v4049_v50 = vld [vmem:[#allocation9 + $0x94] sm:$0xf0] }
  0x53   :  { %992 = vmatpush.bf16.msra.mxu3 %v3193_v54  ;;  %v3141_v52 = vor.u32 %v4049_v50, %v3140_v49  ;;  %v4047_v54 = vld [vmem:[#allocation9 + $0x8c] sm:$0xf] }
  0x54   :  { %954 = vmatpush.bf16.msra.mxu0 %v3165_v58  ;;  %v3145_v56 = vor.u32 %v4047_v54, %v3142_v55  ;;  %v3116_v58 = vld [vmem:[#allocation9 + $0x60] sm:$0xf]  ;;  %v4034_v54 = vld [vmem:[#allocation9 + $0x24] sm:$0xf] }
  0x55   :  { %967 = vmatpush.bf16.msra.mxu1 %v3169_v62  ;;  %v3117_v0 = vor.u32 %v4044_v59, %v3116_v58  ;;  %v3086_v59 = vld [vmem:[#allocation9 + $0x30] sm:$0xf0] }
  0x56   :  { %980 = vmatpush.bf16.msra.mxu2 %v3173_v63 }
  0x57   :  { %993 = vmatpush.bf16.msra.mxu3 %v3177_v2  ;;  %v3124_v2 = vld [vmem:[#allocation9 + $0x68] sm:$0xf] }
  0x5f   :  { %346 = vmatmul.bf16.gmra.mxu0 %v3965_v4 }
  0x60   :  { %375 = vmatmul.bf16.gmra.mxu1 %v3965_v4 }
  0x61   :  { %404 = vmatmul.bf16.gmra.mxu2 %v3965_v4 }
  0x62   :  { %433 = vmatmul.bf16.gmra.mxu3 %v3965_v4  ;;  %v3148_v4 = vld [vmem:[#allocation9 + $0xa0] sm:$0xf] }
  0x6f   :  { %680 = vmatmul.bf16.vlgmr.msrb.gmra.mxu0 %v4397_v5 }
  0x70   :  { %693 = vmatmul.bf16.vlgmr.msrb.gmra.mxu1 %v4397_v5 }
  0x71   :  { %706 = vmatmul.bf16.vlgmr.msrb.gmra.mxu2 %v4397_v5 }
  0x72   :  { %719 = vmatmul.bf16.vlgmr.msrb.gmra.mxu3 %v4397_v5  ;;  %v4052_v5 = vld [vmem:[#allocation9 + $0xac] sm:$0xf0] }
  0xac   :  { %v4459_v6 = vpop.f32.mrf.mxu0 }
  0xad   :  { %v4461_v7 = vpop.f32.mrf.mxu1 }
  0xb4   :  { %v4468_v10 = vpop.f32.mrf.mxu2  ;;  %v334_v13 = vpop.f32.mrf.mxu0 }
  0xb5   :  { %v4472_v12 = vpop.f32.mrf.mxu3  ;;  %v4475_v14 = vadd.f32 %v334_v13, %v4466_v9  ;;  %v363_v15 = vpop.f32.mrf.mxu1 }
  0xb6   :  { %v4478_v16 = vadd.f32 %v363_v15, %v4470_v11 }
  0xbc   :  { %v392_v19 = vpop.f32.mrf.mxu2  ;;  %v337_v22 = vpop.f32.mrf.mxu0 }
  0xbd   :  { %v4485_v20 = vadd.f32 %v392_v19, %v4480_v17  ;;  %v421_v21 = vpop.f32.mrf.mxu3  ;;  %v4491_v24 = vadd.f32 %v337_v22, %v4466_v9  ;;  %v366_v25 = vpop.f32.mrf.mxu1  ;;  %v3150_v22 = vld [vmem:[#allocation9 + $0xb0] sm:$0xf0] }
  0xbe   :  { %v4488_v23 = vadd.f32 %v421_v21, %v4482_v18  ;;  %v4494_v26 = vadd.f32 %v366_v25, %v4470_v11  ;;  %v3149_v21 = vor.u32 %v4052_v5, %v3148_v4  ;;  %v3156_v25 = vld [vmem:[#allocation9 + $0xa8] sm:$0xf] }
  0xc0   :  { %955 = vmatpush.bf16.msra.mxu0 %v3149_v21  ;;  %v4043_v21 = vld [vmem:[#allocation9 + $0x6c] sm:$0xf] }
  0xc4   :  { %v395_v27 = vpop.f32.mrf.mxu2  ;;  %v339_v30 = vpop.f32.mrf.mxu0  ;;  %956 = vmatpush.bf16.msra.mxu0 %v3133_v45  ;;  %v4039_v45 = vld [vmem:[#allocation9 + $0x4c] sm:$0xf] }
  0xc5   :  { %v4497_v28 = vadd.f32 %v395_v27, %v4480_v17  ;;  %v424_v29 = vpop.f32.mrf.mxu3  ;;  %v4503_v32 = vadd.f32 %v339_v30, %v4466_v9  ;;  %v368_v33 = vpop.f32.mrf.mxu1  ;;  %v4053_v27 = vld [vmem:[#allocation9 + $0xb4] sm:$0xf0] }
  0xc6   :  { %v4500_v31 = vadd.f32 %v424_v29, %v4482_v18  ;;  %v4506_v34 = vadd.f32 %v368_v33, %v4470_v11  ;;  %v3157_v36 = vor.u32 %v4053_v27, %v3156_v25 }
  0xc8   :  { %981 = vmatpush.bf16.msra.mxu2 %v3157_v36  ;;  %957 = vmatpush.bf16.msra.mxu0 %v3117_v0  ;;  %v4038_v36 = vld [vmem:[#allocation9 + $0x44] sm:$0xf] }
  0xcc   :  { %v397_v35 = vpop.f32.mrf.mxu2  ;;  %v342_v41 = vpop.f32.mrf.mxu0  ;;  %982 = vmatpush.bf16.msra.mxu2 %v3141_v52  ;;  %v4036_v52 = vld [vmem:[#allocation9 + $0x2c] sm:$0xf0] }
  0xcd   :  { %v4509_v39 = vadd.f32 %v397_v35, %v4480_v17  ;;  %v426_v40 = vpop.f32.mrf.mxu3  ;;  %v4515_v47 = vadd.f32 %v342_v41, %v4466_v9  ;;  %v371_v48 = vpop.f32.mrf.mxu1  ;;  %v3153_v35 = vor.u32 %v4050_v8, %v3150_v22  ;;  %v3161_v41 = vor.u32 %v4051_v37, %v3158_v38  ;;  %v3126_v22 = vld [vmem:[#allocation9 + $0x78] sm:$0xf0]  ;;  %v3102_v38 = vld [vmem:[#allocation9 + $0x50] sm:$0xf0] }
  0xce   :  { %v4512_v46 = vadd.f32 %v426_v40, %v4482_v18  ;;  %v4518_v53 = vadd.f32 %v371_v48, %v4470_v11  ;;  %v3134_v48 = vld [vmem:[#allocation9 + $0x90] sm:$0xf0]  ;;  %v3129_v27 = vor.u32 %v4043_v21, %v3126_v22  ;;  %v3105_v43 = vor.u32 %v4038_v36, %v3102_v38  ;;  %v3068_v22 = vld [vmem:[#allocation9] sm:$0xf]  ;;  %v4033_v38 = vld [vmem:[#allocation9 + $0x14] sm:$0xf0] }
  0xcf   :  { %968 = vmatpush.bf16.msra.mxu1 %v3153_v35  ;;  %994 = vmatpush.bf16.msra.mxu3 %v3161_v41  ;;  %v3137_v51 = vor.u32 %v4046_v44, %v3134_v48  ;;  %v4040_v35 = vld [vmem:[#allocation9 + $0x4c] sm:$0xf0]  ;;  %v3108_v41 = vld [vmem:[#allocation9 + $0x48] sm:$0xf]  ;;  %v3110_v48 = vld [vmem:[#allocation9 + $0x58] sm:$0xf0] }
  0xd0   :  { %v3109_v44 = vor.u32 %v4041_v42, %v3108_v41  ;;  %v3113_v49 = vor.u32 %v4039_v45, %v3110_v48  ;;  %v3070_v36 = vld [vmem:[#allocation9 + $0x10] sm:$0xf0]  ;;  %v333_v48 = vadd.f32 %v4459_v6, %v4466_v9 }
  0xd3   :  { %969 = vmatpush.bf16.msra.mxu1 %v3137_v51  ;;  %995 = vmatpush.bf16.msra.mxu3 %v3145_v56  ;;  %v3084_v51 = vld [vmem:[#allocation9 + $0x20] sm:$0xf] }
  0xd4   :  { %v400_v3 = vpop.f32.mrf.mxu2  ;;  %v344_v19 = vpop.f32.mrf.mxu0  ;;  %v3085_v58 = vor.u32 %v4036_v52, %v3084_v51 }
  0xd5   :  { %v4521_v13 = vadd.f32 %v400_v3, %v4480_v17  ;;  %v429_v15 = vpop.f32.mrf.mxu3  ;;  %v4527_v30 = vadd.f32 %v344_v19, %v4466_v9  ;;  %v373_v33 = vpop.f32.mrf.mxu1  ;;  %v4045_v3 = vld [vmem:[#allocation9 + $0x74] sm:$0xf0] }
  0xd6   :  { %v4524_v29 = vadd.f32 %v429_v15, %v4482_v18  ;;  %v4530_v40 = vadd.f32 %v373_v33, %v4470_v11  ;;  %v3121_v15 = vor.u32 %v4042_v60, %v3118_v1  ;;  %v3125_v19 = vor.u32 %v4045_v3, %v3124_v2  ;;  %v3100_v33 = vld [vmem:[#allocation9 + $0x40] sm:$0xf]  ;;  %v3092_v60 = vld [vmem:[#allocation9 + $0x28] sm:$0xf] }
  0xd7   :  { %996 = vmatpush.bf16.msra.mxu3 %v3129_v27  ;;  %v3101_v37 = vor.u32 %v4040_v35, %v3100_v33  ;;  %v3089_v2 = vor.u32 %v4034_v54, %v3086_v59  ;;  %v4032_v27 = vld [vmem:[#allocation9 + $0xc] sm:$0xf0]  ;;  %v4030_v33 = vld [vmem:[#allocation9 + $0x4] sm:$0xf] }
  0xd8   :  { %970 = vmatpush.bf16.msra.mxu1 %v3121_v15  ;;  %983 = vmatpush.bf16.msra.mxu2 %v3125_v19  ;;  %v3094_v15 = vld [vmem:[#allocation9 + $0x38] sm:$0xf0]  ;;  %v3069_v35 = vor.u32 %v4032_v27, %v3068_v22  ;;  %v3073_v41 = vor.u32 %v4030_v33, %v3070_v36 }
  0xd9   :  { %958 = vmatpush.bf16.msra.mxu0 %v3101_v37  ;;  %v3076_v37 = vld [vmem:[#allocation9 + $0x8] sm:$0xf] }
  0xda   :  { %v3077_v42 = vor.u32 %v4033_v38, %v3076_v37 }
  0xdb   :  { %997 = vmatpush.bf16.msra.mxu3 %v3113_v49 }
  0xdc   :  { %v402_v57 = vpop.f32.mrf.mxu2  ;;  %v347_v63 = vpop.f32.mrf.mxu0  ;;  %971 = vmatpush.bf16.msra.mxu1 %v3105_v43  ;;  %984 = vmatpush.bf16.msra.mxu2 %v3109_v44  ;;  %v4031_v43 = vld [vmem:[#allocation9 + $0xc] sm:$0xf]  ;;  %v3078_v44 = vld [vmem:[#allocation9 + $0x18] sm:$0xf0] }
  0xdd   :  { %v4533_v61 = vadd.f32 %v402_v57, %v4480_v17  ;;  %v431_v62 = vpop.f32.mrf.mxu3  ;;  %v4539_v5 = vadd.f32 %v347_v63, %v4466_v9  ;;  %v376_v8 = vpop.f32.mrf.mxu1  ;;  %959 = vmatpush.bf16.msra.mxu0 %v3085_v58  ;;  %v3081_v45 = vor.u32 %v4031_v43, %v3078_v44 }
  0xde   :  { %v4536_v4 = vadd.f32 %v431_v62, %v4482_v18  ;;  %v4542_v25 = vadd.f32 %v376_v8, %v4470_v11  ;;  %v4037_v62 = vld [vmem:[#allocation9 + $0x34] sm:$0xf0]  ;;  %v4035_v8 = vld [vmem:[#allocation9 + $0x2c] sm:$0xf] }
  0xdf   :  { %v3093_v3 = vor.u32 %v4037_v62, %v3092_v60  ;;  %v3097_v21 = vor.u32 %v4035_v8, %v3094_v15 }
  0xe0   :  { %972 = vmatpush.bf16.msra.mxu1 %v3089_v2 }
  0xe1   :  { %985 = vmatpush.bf16.msra.mxu2 %v3093_v3  ;;  %998 = vmatpush.bf16.msra.mxu3 %v3097_v21 }
  0xe2   :  { %960 = vmatpush.bf16.msra.mxu0 %v3069_v35 }
  0xe4   :  { %v405_v50 = vpop.f32.mrf.mxu2  ;;  %v349_v57 = vpop.f32.mrf.mxu0  ;;  %973 = vmatpush.bf16.msra.mxu1 %v3073_v41 }
  0xe5   :  { %v4545_v55 = vadd.f32 %v405_v50, %v4480_v17  ;;  %v434_v56 = vpop.f32.mrf.mxu3  ;;  %v4551_v0 = vadd.f32 %v349_v57, %v4466_v9  ;;  %v378_v1 = vpop.f32.mrf.mxu1  ;;  %986 = vmatpush.bf16.msra.mxu2 %v3077_v42  ;;  %v362_v50 = vadd.f32 %v4461_v7, %v4470_v11  ;;  %999 = vmatpush.bf16.msra.mxu3 %v3081_v45 }
  0xe6   :  { %v4548_v63 = vadd.f32 %v434_v56, %v4482_v18  ;;  %v4554_v19 = vadd.f32 %v378_v1, %v4470_v11  ;;  %v391_v9 = vadd.f32 %v4468_v10, %v4480_v17  ;;  %v420_v7 = vadd.f32 %v4472_v12, %v4482_v18 }
  0xec   :  { %v407_v49 = vpop.f32.mrf.mxu2  ;;  %v681_v54 = vpop.f32.mrf.mxu0 }
  0xed   :  { %v4561_v51 = vadd.f32 %v407_v49, %v4480_v17  ;;  %v436_v52 = vpop.f32.mrf.mxu3  ;;  %v724_v57 = vadd.f32 %v681_v54, %v333_v48  ;;  %v694_v58 = vpop.f32.mrf.mxu1  ;;  %v3308_v49 = vld [vmem:[#allocation9 + $0xe0] sm:$0xf] }
  0xee   :  { %v4564_v56 = vadd.f32 %v436_v52, %v4482_v18  ;;  %v725_v59 = vadd.f32 %v694_v58, %v362_v50  ;;  %v4092_v50 = vld [vmem:[#allocation9 + $0xec] sm:$0xf0]  ;;  %v4090_v52 = vld [vmem:[#allocation9 + $0xe4] sm:$0xf]  ;;  %v3316_v58 = vld [vmem:[#allocation9 + $0xe8] sm:$0xf] }
  0xef   :  { %v728_v60 = vmul.f32 0.5, %v724_v57  ;;  %v3309_v54 = vor.u32 %v4092_v50, %v3308_v49  ;;  %v3310_v57 = vld [vmem:[#allocation9 + $0xf0] sm:$0xf0]  ;;  %v3286_v49 = vld [vmem:[#allocation9 + $0xb8] sm:$0xf0] }
  0xf0   :  { %v732_v6 = vmul.f32 0.5, %v725_v59  ;;  %v4093_v59 = vld [vmem:[#allocation9 + $0xf4] sm:$0xf0] }
  0xf1   :  { %4261 = vtanh.f32 %v728_v60  ;;  %v3313_v60 = vor.u32 %v4090_v52, %v3310_v57  ;;  %1234 = vmatpush.bf16.msrb.mxu0 %v3309_v54  ;;  %v3260_v52 = vld [vmem:[#allocation9 + $0x80] sm:$0xf]  ;;  %v4080_v54 = vld [vmem:[#allocation9 + $0x8c] sm:$0xf0]  ;;  %v4078_v57 = vld [vmem:[#allocation9 + $0x84] sm:$0xf] }
  0xf2   :  { %4263 = vtanh.f32 %v732_v6  ;;  %v3317_v6 = vor.u32 %v4093_v59, %v3316_v58  ;;  %v3261_v58 = vor.u32 %v4080_v54, %v3260_v52  ;;  %v3262_v59 = vld [vmem:[#allocation9 + $0x90] sm:$0xf0]  ;;  %v3238_v52 = vld [vmem:[#allocation9 + $0x58] sm:$0xf0] }
  0xf3   :  { %1247 = vmatpush.bf16.msrb.mxu1 %v3313_v60  ;;  %v3268_v60 = vld [vmem:[#allocation9 + $0x88] sm:$0xf] }
  0xf4   :  { %v707_v11 = vpop.f32.mrf.mxu2  ;;  %v683_v2 = vpop.f32.mrf.mxu0  ;;  %1260 = vmatpush.bf16.msrb.mxu2 %v3317_v6  ;;  %v4081_v6 = vld [vmem:[#allocation9 + $0x94] sm:$0xf0] }
  0xf5   :  { %v726_v62 = vadd.f32 %v707_v11, %v391_v9  ;;  %v720_v1 = vpop.f32.mrf.mxu3  ;;  %v696_v8 = vpop.f32.mrf.mxu1  ;;  %v4091_v9 = vld [vmem:[#allocation9 + $0xec] sm:$0xf]  ;;  %v4086_v2 = vld [vmem:[#allocation9 + $0xc4] sm:$0xf] }
  0xf6   :  { %v727_v3 = vadd.f32 %v720_v1, %v420_v7  ;;  %v3318_v7 = vld [vmem:[#allocation9 + $0xf8] sm:$0xf0]  ;;  %v4088_v1 = vld [vmem:[#allocation9 + $0xcc] sm:$0xf0]  ;;  %v3294_v8 = vld [vmem:[#allocation9 + $0xd0] sm:$0xf0] }
  0xf7   :  { %4265 = vtanh.f32 %v726_v62  ;;  %v4262_v15 = vpop.eup %4261  ;;  %v3321_v11 = vor.u32 %v4091_v9, %v3318_v7  ;;  %v3292_v62 = vld [vmem:[#allocation9 + $0xc0] sm:$0xf]  ;;  %v3265_v9 = vor.u32 %v4078_v57, %v3262_v59  ;;  %v3269_v7 = vor.u32 %v4081_v6, %v3268_v60  ;;  %v4066_v59 = vld [vmem:[#allocation9 + $0x24] sm:$0xf]  ;;  %v3214_v6 = vld [vmem:[#allocation9 + $0x30] sm:$0xf0] }
  0xf8   :  { %v737_v21 = vmul.f32 0.5, %v727_v3  ;;  %v4264_v22 = vpop.eup %4263  ;;  %v730_v27 = vmul.f32 0.5, %v4262_v15  ;;  %v3293_v3 = vor.u32 %v4088_v1, %v3292_v62  ;;  %v3300_v15 = vld [vmem:[#allocation9 + $0xc8] sm:$0xf]  ;;  %v3270_v62 = vld [vmem:[#allocation9 + $0x98] sm:$0xf0] }
  0xf9   :  { %v734_v33 = vmul.f32 0.5, %v4264_v22  ;;  %1273 = vmatpush.bf16.msrb.mxu3 %v3321_v11  ;;  %v3297_v22 = vor.u32 %v4086_v2, %v3294_v8  ;;  %v4079_v11 = vld [vmem:[#allocation9 + $0x8c] sm:$0xf]  ;;  %v3244_v2 = vld [vmem:[#allocation9 + $0x60] sm:$0xf] }
  0xfa   :  { %4267 = vtanh.f32 %v737_v21  ;;  %v731_v35 = vadd.f32 0.5, %v730_v27  ;;  %v4089_v21 = vld [vmem:[#allocation9 + $0xd4] sm:$0xf0]  ;;  %1235 = vmatpush.bf16.msrb.mxu0 %v3293_v3  ;;  %v3273_v1 = vor.u32 %v4079_v11, %v3270_v62  ;;  %v4076_v3 = vld [vmem:[#allocation9 + $0x6c] sm:$0xf0]  ;;  %v3217_v11 = vor.u32 %v4066_v59, %v3214_v6 }
  0xfb   :  { %v735_v36 = vadd.f32 0.5, %v734_v33  ;;  %v3301_v27 = vor.u32 %v4089_v21, %v3300_v15  ;;  %v4087_v33 = vld [vmem:[#allocation9 + $0xcc] sm:$0xf]  ;;  %1248 = vmatpush.bf16.msrb.mxu1 %v3297_v22  ;;  %v4074_v8 = vld [vmem:[#allocation9 + $0x64] sm:$0xf]  ;;  %v3245_v15 = vor.u32 %v4076_v3, %v3244_v2 }
  0xfc   :  { %v709_v10 = vpop.f32.mrf.mxu2  ;;  %v3246_v21 = vld [vmem:[#allocation9 + $0x70] sm:$0xf0]  ;;  %v3252_v22 = vld [vmem:[#allocation9 + $0x68] sm:$0xf]  ;;  %v3212_v57 = vld [vmem:[#allocation9 + $0x20] sm:$0xf] }
  0xfd   :  { %v4266_v17 = vpop.eup %4265  ;;  %v722_v37 = vpop.f32.mrf.mxu3  ;;  %v742_v38 = vmul.f32 0.0, %v735_v36  ;;  %1261 = vmatpush.bf16.msrb.mxu2 %v3301_v27  ;;  %v3276_v10 = vld [vmem:[#allocation9 + $0xa0] sm:$0xf]  ;;  %v4077_v27 = vld [vmem:[#allocation9 + $0x74] sm:$0xf0] }
  0xfe   :  { %v743_v12 = vmul.f32 %v4266_v17, %v731_v35  ;;  %v3302_v35 = vld [vmem:[#allocation9 + $0xd8] sm:$0xf0]  ;;  %v4084_v17 = vld [vmem:[#allocation9 + $0xac] sm:$0xf0]  ;;  %v4082_v37 = vld [vmem:[#allocation9 + $0xa4] sm:$0xf] }
  0xff   :  { %v3305_v36 = vor.u32 %v4087_v33, %v3302_v35  ;;  %v3249_v33 = vor.u32 %v4074_v8, %v3246_v21  ;;  %v3253_v35 = vor.u32 %v4077_v27, %v3252_v22  ;;  %v3222_v2 = vld [vmem:[#allocation9 + $0x38] sm:$0xf0]  ;;  %v3196_v8 = vld [vmem:[#allocation9] sm:$0xf]  ;;  %v4062_v21 = vld [vmem:[#allocation9 + $0x4] sm:$0xf] }
 0x100   :  { %v4268_v18 = vpop.eup %4267  ;;  %v4570_v41 = vadd.f32 %v743_v12, %v742_v38  ;;  %v3277_v38 = vor.u32 %v4084_v17, %v3276_v10  ;;  %v3278_v12 = vld [vmem:[#allocation9 + $0xb0] sm:$0xf0]  ;;  %v3254_v10 = vld [vmem:[#allocation9 + $0x78] sm:$0xf0] }
 0x101   :  { %v739_v42 = vmul.f32 0.5, %v4268_v18  ;;  %1274 = vmatpush.bf16.msrb.mxu3 %v3305_v36  ;;  %v3284_v18 = vld [vmem:[#allocation9 + $0xa8] sm:$0xf]  ;;  %v4075_v36 = vld [vmem:[#allocation9 + $0x6c] sm:$0xf] }
 0x102   :  { %4269 = vtanh.f32 %v4570_v41  ;;  %1236 = vmatpush.bf16.msrb.mxu0 %v3277_v38  ;;  %v3257_v17 = vor.u32 %v4075_v36, %v3254_v10  ;;  %v4072_v38 = vld [vmem:[#allocation9 + $0x4c] sm:$0xf0]  ;;  %v3198_v27 = vld [vmem:[#allocation9 + $0x10] sm:$0xf0] }
 0x103   :  { %v740_v43 = vadd.f32 0.5, %v739_v42  ;;  %v4085_v42 = vld [vmem:[#allocation9 + $0xb4] sm:$0xf0]  ;;  %v3201_v36 = vor.u32 %v4062_v21, %v3198_v27 }
 0x106   :  { %1237 = vmatpush.bf16.msrb.mxu0 %v3261_v58  ;;  %v4068_v58 = vld [vmem:[#allocation9 + $0x2c] sm:$0xf0] }
 0x107   :  { %v3213_v60 = vor.u32 %v4068_v58, %v3212_v57 }
 0x108   :  { %v4270_v44 = vpop.eup %4269 }
 0x109   :  { %v4573_v45 = vmul.f32 %v4270_v44, %v740_v43  ;;  %v3281_v43 = vor.u32 %v4082_v37, %v3278_v12  ;;  %v3285_v44 = vor.u32 %v4085_v42, %v3284_v18  ;;  %v3228_v37 = vld [vmem:[#allocation9 + $0x40] sm:$0xf]  ;;  %v4070_v12 = vld [vmem:[#allocation9 + $0x44] sm:$0xf]  ;;  %v3230_v42 = vld [vmem:[#allocation9 + $0x50] sm:$0xf0] }
 0x10a   :  { %1238 = vmatpush.bf16.msrb.mxu0 %v3245_v15  ;;  %v3229_v18 = vor.u32 %v4072_v38, %v3228_v37  ;;  %v4064_v15 = vld [vmem:[#allocation9 + $0xc] sm:$0xf0]  ;;  %v3206_v37 = vld [vmem:[#allocation9 + $0x18] sm:$0xf0] }
 0x10b   :  { %v760_v48 = vpack.c.bf16 %v4573_v45, %v4573_v45  ;;  %1249 = vmatpush.bf16.msrb.mxu1 %v3281_v43  ;;  %1262 = vmatpush.bf16.msrb.mxu2 %v3285_v44  ;;  %v3236_v43 = vld [vmem:[#allocation9 + $0x48] sm:$0xf]  ;;  %v4073_v44 = vld [vmem:[#allocation9 + $0x54] sm:$0xf0]  ;;  %v3197_v22 = vor.u32 %v4064_v15, %v3196_v8 }
 0x10d   :  { %961 = vmatmul.bf16.vlgmr.msra.gmra.mxu0 %v760_v48  ;;  %974 = vmatmul.bf16.vlgmr.msra.gmra.mxu1 %v760_v48 }
 0x10e   :  { %987 = vmatmul.bf16.vlgmr.msra.gmra.mxu2 %v760_v48  ;;  %1000 = vmatmul.bf16.vlgmr.msra.gmra.mxu3 %v760_v48  ;;  %v4083_v48 = vld [vmem:[#allocation9 + $0xac] sm:$0xf] }
 0x10f   :  { %v3289_v50 = vor.u32 %v4083_v48, %v3286_v49  ;;  %1250 = vmatpush.bf16.msrb.mxu1 %v3265_v9  ;;  %1263 = vmatpush.bf16.msrb.mxu2 %v3269_v7  ;;  %v3233_v48 = vor.u32 %v4070_v12, %v3230_v42  ;;  %v3237_v49 = vor.u32 %v4073_v44, %v3236_v43  ;;  %v3220_v9 = vld [vmem:[#allocation9 + $0x28] sm:$0xf]  ;;  %v4069_v7 = vld [vmem:[#allocation9 + $0x34] sm:$0xf0] }
 0x110   :  { %1239 = vmatpush.bf16.msrb.mxu0 %v3229_v18  ;;  %v3221_v62 = vor.u32 %v4069_v7, %v3220_v9 }
 0x111   :  { %1275 = vmatpush.bf16.msrb.mxu3 %v3289_v50  ;;  %v4071_v50 = vld [vmem:[#allocation9 + $0x4c] sm:$0xf] }
 0x112   :  { %v3241_v54 = vor.u32 %v4071_v50, %v3238_v52 }
 0x113   :  { %1251 = vmatpush.bf16.msrb.mxu1 %v3249_v33  ;;  %1264 = vmatpush.bf16.msrb.mxu2 %v3253_v35  ;;  %v3204_v33 = vld [vmem:[#allocation9 + $0x8] sm:$0xf]  ;;  %v4065_v35 = vld [vmem:[#allocation9 + $0x14] sm:$0xf0] }
 0x114   :  { %1240 = vmatpush.bf16.msrb.mxu0 %v3213_v60  ;;  %v3205_v10 = vor.u32 %v4065_v35, %v3204_v33  ;;  %v3436_v33 = vld [vmem:[#allocation9 + $0xe0] sm:$0xf]  ;;  %v4122_v35 = vld [vmem:[#allocation9 + $0xe4] sm:$0xf] }
 0x115   :  { %1276 = vmatpush.bf16.msrb.mxu3 %v3273_v1  ;;  %v4067_v1 = vld [vmem:[#allocation9 + $0x2c] sm:$0xf] }
 0x116   :  { %v3225_v3 = vor.u32 %v4067_v1, %v3222_v2 }
 0x117   :  { %1252 = vmatpush.bf16.msrb.mxu1 %v3233_v48  ;;  %1265 = vmatpush.bf16.msrb.mxu2 %v3237_v49 }
 0x118   :  { %1241 = vmatpush.bf16.msrb.mxu0 %v3197_v22 }
 0x119   :  { %1277 = vmatpush.bf16.msrb.mxu3 %v3257_v17  ;;  %v4063_v17 = vld [vmem:[#allocation9 + $0xc] sm:$0xf] }
 0x11a   :  { %v3209_v38 = vor.u32 %v4063_v17, %v3206_v37  ;;  %v3444_v17 = vld [vmem:[#allocation9 + $0xe8] sm:$0xf]  ;;  %v4125_v37 = vld [vmem:[#allocation9 + $0xf4] sm:$0xf0] }
 0x11b   :  { %1253 = vmatpush.bf16.msrb.mxu1 %v3217_v11  ;;  %1266 = vmatpush.bf16.msrb.mxu2 %v3221_v62 }
 0x11d   :  { %1278 = vmatpush.bf16.msrb.mxu3 %v3241_v54 }
 0x11f   :  { %1254 = vmatpush.bf16.msrb.mxu1 %v3201_v36  ;;  %1267 = vmatpush.bf16.msrb.mxu2 %v3205_v10  ;;  %v3438_v10 = vld [vmem:[#allocation9 + $0xf0] sm:$0xf0] }
 0x121   :  { %1279 = vmatpush.bf16.msrb.mxu3 %v3225_v3 }
 0x125   :  { %1280 = vmatpush.bf16.msrb.mxu3 %v3209_v38  ;;  %v3441_v38 = vor.u32 %v4122_v35, %v3438_v10  ;;  %v3396_v10 = vld [vmem:[#allocation9 + $0x88] sm:$0xf] }
 0x127   :  { %1528 = vmatpush.bf16.msra.mxu1 %v3441_v38 }
 0x18a   :  { %v962_v12 = vpop.f32.mrf.mxu0  ;;  %v975_v18 = vpop.f32.mrf.mxu1 }
 0x18b   :  { %v1005_v42 = vadd.f32 %v962_v12, %v4475_v14  ;;  %v1006_v43 = vadd.f32 %v975_v18, %v4478_v16  ;;  %v3445_v12 = vor.u32 %v4125_v37, %v3444_v17  ;;  %v4123_v18 = vld [vmem:[#allocation9 + $0xec] sm:$0xf]  ;;  %v4113_v17 = vld [vmem:[#allocation9 + $0x94] sm:$0xf0] }
 0x18c   :  { %v3397_v38 = vor.u32 %v4113_v17, %v3396_v10  ;;  %v4101_v10 = vld [vmem:[#allocation9 + $0x34] sm:$0xf0] }
 0x18d   :  { %v1009_v44 = vmul.f32 0.5, %v1005_v42  ;;  %v1013_v48 = vmul.f32 0.5, %v1006_v43  ;;  %v3446_v42 = vld [vmem:[#allocation9 + $0xf8] sm:$0xf0]  ;;  %1541 = vmatpush.bf16.msra.mxu2 %v3445_v12  ;;  %v4111_v12 = vld [vmem:[#allocation9 + $0x8c] sm:$0xf] }
 0x18e   :  { %v3449_v43 = vor.u32 %v4123_v18, %v3446_v42  ;;  %v3398_v18 = vld [vmem:[#allocation9 + $0x98] sm:$0xf0] }
 0x18f   :  { %4271 = vtanh.f32 %v1009_v44  ;;  %v3420_v44 = vld [vmem:[#allocation9 + $0xc0] sm:$0xf]  ;;  %v3401_v42 = vor.u32 %v4111_v12, %v3398_v18  ;;  %v3350_v12 = vld [vmem:[#allocation9 + $0x38] sm:$0xf0] }
 0x190   :  { %4273 = vtanh.f32 %v1013_v48  ;;  %v4120_v48 = vld [vmem:[#allocation9 + $0xcc] sm:$0xf0]  ;;  %1554 = vmatpush.bf16.msra.mxu3 %v3449_v43  ;;  %v3372_v43 = vld [vmem:[#allocation9 + $0x60] sm:$0xf] }
 0x191   :  { %v988_v49 = vpop.f32.mrf.mxu2  ;;  %v1001_v50 = vpop.f32.mrf.mxu3 }
 0x192   :  { %v1007_v52 = vadd.f32 %v988_v49, %v4485_v20  ;;  %v1008_v54 = vadd.f32 %v1001_v50, %v4488_v23  ;;  %v964_v57 = vpop.f32.mrf.mxu0  ;;  %v977_v58 = vpop.f32.mrf.mxu1  ;;  %v4118_v49 = vld [vmem:[#allocation9 + $0xc4] sm:$0xf]  ;;  %v3421_v50 = vor.u32 %v4120_v48, %v3420_v44  ;;  %v4108_v44 = vld [vmem:[#allocation9 + $0x6c] sm:$0xf0] }
 0x193   :  { %v4121_v57 = vld [vmem:[#allocation9 + $0xd4] sm:$0xf0]  ;;  %v4106_v48 = vld [vmem:[#allocation9 + $0x64] sm:$0xf] }
 0x194   :  { %4275 = vtanh.f32 %v1007_v52  ;;  %v1018_v59 = vmul.f32 0.5, %v1008_v54  ;;  %v3422_v52 = vld [vmem:[#allocation9 + $0xd0] sm:$0xf0]  ;;  %v3428_v54 = vld [vmem:[#allocation9 + $0xc8] sm:$0xf] }
 0x195   :  { %v4272_v60 = vpop.eup %4271  ;;  %v3425_v58 = vor.u32 %v4118_v49, %v3422_v52  ;;  %v3373_v49 = vor.u32 %v4108_v44, %v3372_v43  ;;  %v3380_v52 = vld [vmem:[#allocation9 + $0x68] sm:$0xf]  ;;  %v4096_v43 = vld [vmem:[#allocation9 + $0xc] sm:$0xf0]  ;;  %v4094_v44 = vld [vmem:[#allocation9 + $0x4] sm:$0xf] }
 0x196   :  { %v4274_v6 = vpop.eup %4273  ;;  %v1011_v9 = vmul.f32 0.5, %v4272_v60  ;;  %4277 = vtanh.f32 %v1018_v59  ;;  %v3429_v59 = vor.u32 %v4121_v57, %v3428_v54  ;;  %v4119_v60 = vld [vmem:[#allocation9 + $0xcc] sm:$0xf]  ;;  %v4109_v54 = vld [vmem:[#allocation9 + $0x74] sm:$0xf0] }
 0x197   :  { %v1015_v14 = vmul.f32 0.5, %v4274_v6  ;;  %v3430_v6 = vld [vmem:[#allocation9 + $0xd8] sm:$0xf0]  ;;  %1529 = vmatpush.bf16.msra.mxu1 %v3425_v58  ;;  %v3381_v58 = vor.u32 %v4109_v54, %v3380_v52  ;;  %v4097_v52 = vld [vmem:[#allocation9 + $0x14] sm:$0xf0] }
 0x198   :  { %v1012_v16 = vadd.f32 0.5, %v1011_v9  ;;  %v3433_v9 = vor.u32 %v4119_v60, %v3430_v6  ;;  %1542 = vmatpush.bf16.msra.mxu2 %v3429_v59  ;;  %v4107_v59 = vld [vmem:[#allocation9 + $0x6c] sm:$0xf]  ;;  %v3382_v60 = vld [vmem:[#allocation9 + $0x78] sm:$0xf0] }
 0x199   :  { %v1016_v7 = vadd.f32 0.5, %v1015_v14  ;;  %v990_v11 = vpop.f32.mrf.mxu2  ;;  %v1003_v62 = vpop.f32.mrf.mxu3  ;;  %v3404_v14 = vld [vmem:[#allocation9 + $0xa0] sm:$0xf]  ;;  %v3385_v6 = vor.u32 %v4107_v59, %v3382_v60  ;;  %v3334_v59 = vld [vmem:[#allocation9 + $0x18] sm:$0xf0] }
 0x19a   :  { %v4276_v1 = vpop.eup %4275  ;;  %1555 = vmatpush.bf16.msra.mxu3 %v3433_v9  ;;  %v3406_v62 = vld [vmem:[#allocation9 + $0xb0] sm:$0xf0]  ;;  %v3356_v9 = vld [vmem:[#allocation9 + $0x40] sm:$0xf] }
 0x19b   :  { %v1023_v2 = vmul.f32 %v1016_v7, %v4570_v41  ;;  %v1024_v3 = vmul.f32 %v4276_v1, %v1012_v16  ;;  %v4124_v41 = vld [vmem:[#allocation9 + $0xec] sm:$0xf0]  ;;  %v4114_v7 = vld [vmem:[#allocation9 + $0xa4] sm:$0xf]  ;;  %v3412_v1 = vld [vmem:[#allocation9 + $0xa8] sm:$0xf] }
 0x19c   :  { %v4278_v20 = vpop.eup %4277  ;;  %v3437_v36 = vor.u32 %v4124_v41, %v3436_v33  ;;  %v4116_v16 = vld [vmem:[#allocation9 + $0xac] sm:$0xf0]  ;;  %v4110_v41 = vld [vmem:[#allocation9 + $0x84] sm:$0xf] }
 0x19d   :  { %v4582_v8 = vadd.f32 %v1024_v3, %v1023_v2  ;;  %v1020_v23 = vmul.f32 0.5, %v4278_v20  ;;  %v3405_v11 = vor.u32 %v4116_v16, %v3404_v14  ;;  %v4117_v2 = vld [vmem:[#allocation9 + $0xb4] sm:$0xf0]  ;;  %v3409_v3 = vor.u32 %v4114_v7, %v3406_v62  ;;  %v4112_v33 = vld [vmem:[#allocation9 + $0x8c] sm:$0xf0] }
 0x19e   :  { %1515 = vmatpush.bf16.msra.mxu0 %v3437_v36  ;;  %v3413_v20 = vor.u32 %v4117_v2, %v3412_v1  ;;  %v3390_v36 = vld [vmem:[#allocation9 + $0x90] sm:$0xf0]  ;;  %v4104_v14 = vld [vmem:[#allocation9 + $0x4c] sm:$0xf0]  ;;  %v4102_v16 = vld [vmem:[#allocation9 + $0x44] sm:$0xf] }
 0x19f   :  { %4279 = vtanh.f32 %v4582_v8  ;;  %v1021_v15 = vadd.f32 0.5, %v1020_v23  ;;  %v4115_v23 = vld [vmem:[#allocation9 + $0xac] sm:$0xf]  ;;  %1530 = vmatpush.bf16.msra.mxu1 %v3409_v3  ;;  %v3393_v37 = vor.u32 %v4110_v41, %v3390_v36  ;;  %v3357_v7 = vor.u32 %v4104_v14, %v3356_v9  ;;  %v3364_v62 = vld [vmem:[#allocation9 + $0x48] sm:$0xf] }
 0x1a0   :  { %1543 = vmatpush.bf16.msra.mxu2 %v3413_v20  ;;  %v4105_v1 = vld [vmem:[#allocation9 + $0x54] sm:$0xf0]  ;;  %v4103_v20 = vld [vmem:[#allocation9 + $0x4c] sm:$0xf]  ;;  %v3348_v36 = vld [vmem:[#allocation9 + $0x28] sm:$0xf] }
 0x1a1   :  { %v3365_v3 = vor.u32 %v4105_v1, %v3364_v62 }
 0x1a2   :  { %1516 = vmatpush.bf16.msra.mxu0 %v3421_v50  ;;  %v3374_v50 = vld [vmem:[#allocation9 + $0x70] sm:$0xf0] }
 0x1a3   :  { %1531 = vmatpush.bf16.msra.mxu1 %v3393_v37  ;;  %v3377_v57 = vor.u32 %v4106_v48, %v3374_v50  ;;  %v3349_v37 = vor.u32 %v4101_v10, %v3348_v36  ;;  %v3332_v50 = vld [vmem:[#allocation9 + $0x8] sm:$0xf] }
 0x1a4   :  { %1544 = vmatpush.bf16.msra.mxu2 %v3397_v38  ;;  %v4099_v38 = vld [vmem:[#allocation9 + $0x2c] sm:$0xf] }
 0x1a5   :  { %v4280_v21 = vpop.eup %4279  ;;  %v3353_v18 = vor.u32 %v4099_v38, %v3350_v12 }
 0x1a6   :  { %v4585_v22 = vmul.f32 %v4280_v21, %v1021_v15  ;;  %v3414_v15 = vld [vmem:[#allocation9 + $0xb8] sm:$0xf0]  ;;  %1517 = vmatpush.bf16.msra.mxu0 %v3405_v11  ;;  %v3358_v11 = vld [vmem:[#allocation9 + $0x50] sm:$0xf0] }
 0x1a7   :  { %v3417_v21 = vor.u32 %v4115_v23, %v3414_v15  ;;  %1532 = vmatpush.bf16.msra.mxu1 %v3377_v57  ;;  %v3361_v2 = vor.u32 %v4102_v16, %v3358_v11  ;;  %v3366_v23 = vld [vmem:[#allocation9 + $0x58] sm:$0xf0]  ;;  %v3333_v57 = vor.u32 %v4097_v52, %v3332_v50  ;;  %v4154_v50 = vld [vmem:[#allocation9 + $0xe4] sm:$0xf] }
 0x1a8   :  { %v1041_v27 = vpack.c.bf16 %v4585_v22, %v4585_v22  ;;  %1545 = vmatpush.bf16.msra.mxu2 %v3381_v58  ;;  %v3369_v15 = vor.u32 %v4103_v20, %v3366_v23  ;;  %v4095_v58 = vld [vmem:[#allocation9 + $0xc] sm:$0xf] }
 0x1a9   :  { %1556 = vmatpush.bf16.msra.mxu3 %v3417_v21  ;;  %v3340_v21 = vld [vmem:[#allocation9 + $0x20] sm:$0xf]  ;;  %v3337_v60 = vor.u32 %v4095_v58, %v3334_v59  ;;  %v4157_v58 = vld [vmem:[#allocation9 + $0xf4] sm:$0xf0] }
 0x1aa   :  { %1242 = vmatmul.bf16.vlgmr.msrb.gmra.mxu0 %v1041_v27  ;;  %1255 = vmatmul.bf16.vlgmr.msrb.gmra.mxu1 %v1041_v27 }
 0x1ab   :  { %1268 = vmatmul.bf16.vlgmr.msrb.gmra.mxu2 %v1041_v27  ;;  %1281 = vmatmul.bf16.vlgmr.msrb.gmra.mxu3 %v1041_v27  ;;  %v3388_v27 = vld [vmem:[#allocation9 + $0x80] sm:$0xf] }
 0x1ac   :  { %v3389_v35 = vor.u32 %v4112_v33, %v3388_v27  ;;  %1533 = vmatpush.bf16.msra.mxu1 %v3361_v2  ;;  %1546 = vmatpush.bf16.msra.mxu2 %v3365_v3  ;;  %v4100_v27 = vld [vmem:[#allocation9 + $0x2c] sm:$0xf0]  ;;  %v4098_v33 = vld [vmem:[#allocation9 + $0x24] sm:$0xf] }
 0x1ad   :  { %1557 = vmatpush.bf16.msra.mxu3 %v3401_v42  ;;  %v3341_v41 = vor.u32 %v4100_v27, %v3340_v21  ;;  %v3324_v42 = vld [vmem:[#allocation9] sm:$0xf] }
 0x1ae   :  { %1518 = vmatpush.bf16.msra.mxu0 %v3389_v35  ;;  %v3342_v35 = vld [vmem:[#allocation9 + $0x30] sm:$0xf0]  ;;  %v3325_v48 = vor.u32 %v4096_v43, %v3324_v42  ;;  %v1031_v42 = vadd.f32 %v4585_v22, %v4573_v45  ;;  %v3548_v22 = vld [vmem:[#allocation9 + $0xc0] sm:$0xf] }
 0x1af   :  { %v3345_v17 = vor.u32 %v4098_v33, %v3342_v35 }
 0x1b0   :  { %1547 = vmatpush.bf16.msra.mxu2 %v3349_v37 }
 0x1b1   :  { %1558 = vmatpush.bf16.msra.mxu3 %v3385_v6  ;;  %1534 = vmatpush.bf16.msra.mxu1 %v3345_v17 }
 0x1b2   :  { %1519 = vmatpush.bf16.msra.mxu0 %v3373_v49  ;;  %v3326_v49 = vld [vmem:[#allocation9 + $0x10] sm:$0xf0] }
 0x1b3   :  { %v3329_v54 = vor.u32 %v4094_v44, %v3326_v49  ;;  %v4156_v49 = vld [vmem:[#allocation9 + $0xec] sm:$0xf0] }
 0x1b4   :  { %1548 = vmatpush.bf16.msra.mxu2 %v3333_v57  ;;  %v3572_v57 = vld [vmem:[#allocation9 + $0xe8] sm:$0xf] }
 0x1b5   :  { %1559 = vmatpush.bf16.msra.mxu3 %v3369_v15  ;;  %1535 = vmatpush.bf16.msra.mxu1 %v3329_v54  ;;  %v3566_v54 = vld [vmem:[#allocation9 + $0xf0] sm:$0xf0] }
 0x1b6   :  { %1520 = vmatpush.bf16.msra.mxu0 %v3357_v7  ;;  %v3569_v59 = vor.u32 %v4154_v50, %v3566_v54  ;;  %v3526_v54 = vld [vmem:[#allocation9 + $0x98] sm:$0xf0] }
 0x1b9   :  { %1560 = vmatpush.bf16.msra.mxu3 %v3353_v18  ;;  %1809 = vmatpush.bf16.msrb.mxu1 %v3569_v59  ;;  %v4140_v59 = vld [vmem:[#allocation9 + $0x6c] sm:$0xf0] }
 0x1ba   :  { %1521 = vmatpush.bf16.msra.mxu0 %v3341_v41 }
 0x1bd   :  { %1561 = vmatpush.bf16.msra.mxu3 %v3337_v60  ;;  %v3573_v60 = vor.u32 %v4157_v58, %v3572_v57  ;;  %v3500_v58 = vld [vmem:[#allocation9 + $0x60] sm:$0xf] }
 0x1be   :  { %1522 = vmatpush.bf16.msra.mxu0 %v3325_v48 }
 0x1bf   :  { %1822 = vmatpush.bf16.msrb.mxu2 %v3573_v60  ;;  %v4138_v60 = vld [vmem:[#allocation9 + $0x64] sm:$0xf] }
 0x227   :  { %v1243_v6 = vpop.f32.mrf.mxu0  ;;  %v1256_v9 = vpop.f32.mrf.mxu1 }
 0x228   :  { %v1286_v14 = vadd.f32 %v1243_v6, %v4491_v24  ;;  %v1287_v16 = vadd.f32 %v1256_v9, %v4494_v26  ;;  %v4155_v6 = vld [vmem:[#allocation9 + $0xec] sm:$0xf]  ;;  %v3574_v9 = vld [vmem:[#allocation9 + $0xf8] sm:$0xf0] }
 0x229   :  { %v3577_v45 = vor.u32 %v4155_v6, %v3574_v9  ;;  %v3501_v6 = vor.u32 %v4140_v59, %v3500_v58  ;;  %v3502_v9 = vld [vmem:[#allocation9 + $0x70] sm:$0xf0]  ;;  %v4129_v58 = vld [vmem:[#allocation9 + $0x14] sm:$0xf0] }
 0x22a   :  { %v1290_v7 = vmul.f32 0.5, %v1286_v14  ;;  %v1294_v11 = vmul.f32 0.5, %v1287_v16  ;;  %v4152_v14 = vld [vmem:[#allocation9 + $0xcc] sm:$0xf0]  ;;  %v4150_v16 = vld [vmem:[#allocation9 + $0xc4] sm:$0xf] }
 0x22b   :  { %1835 = vmatpush.bf16.msrb.mxu3 %v3577_v45  ;;  %v3508_v45 = vld [vmem:[#allocation9 + $0x68] sm:$0xf] }
 0x22c   :  { %4281 = vtanh.f32 %v1290_v7  ;;  %v3549_v7 = vor.u32 %v4152_v14, %v3548_v22  ;;  %v4141_v22 = vld [vmem:[#allocation9 + $0x74] sm:$0xf0]  ;;  %v3505_v14 = vor.u32 %v4138_v60, %v3502_v9  ;;  %v3462_v9 = vld [vmem:[#allocation9 + $0x18] sm:$0xf0] }
 0x22d   :  { %4283 = vtanh.f32 %v1294_v11  ;;  %v3550_v11 = vld [vmem:[#allocation9 + $0xd0] sm:$0xf0] }
 0x22e   :  { %v1269_v62 = vpop.f32.mrf.mxu2  ;;  %v1282_v1 = vpop.f32.mrf.mxu3 }
 0x22f   :  { %v1288_v2 = vadd.f32 %v1269_v62, %v4497_v28  ;;  %v1289_v3 = vadd.f32 %v1282_v1, %v4500_v31  ;;  %v1245_v20 = vpop.f32.mrf.mxu0  ;;  %v1258_v23 = vpop.f32.mrf.mxu1  ;;  %v3556_v62 = vld [vmem:[#allocation9 + $0xc8] sm:$0xf]  ;;  %v4153_v1 = vld [vmem:[#allocation9 + $0xd4] sm:$0xf0] }
 0x230   :  { %v4151_v20 = vld [vmem:[#allocation9 + $0xcc] sm:$0xf]  ;;  %v3558_v23 = vld [vmem:[#allocation9 + $0xd8] sm:$0xf0] }
 0x231   :  { %4285 = vtanh.f32 %v1288_v2  ;;  %v1299_v15 = vmul.f32 0.5, %v1289_v3  ;;  %v3553_v2 = vor.u32 %v4150_v16, %v3550_v11  ;;  %v3557_v3 = vor.u32 %v4153_v1, %v3556_v62  ;;  %v3510_v11 = vld [vmem:[#allocation9 + $0x78] sm:$0xf0]  ;;  %v3484_v1 = vld [vmem:[#allocation9 + $0x40] sm:$0xf] }
 0x232   :  { %v4282_v21 = vpop.eup %4281  ;;  %v3509_v16 = vor.u32 %v4141_v22, %v3508_v45 }
 0x233   :  { %v4284_v27 = vpop.eup %4283  ;;  %v1292_v33 = vmul.f32 0.5, %v4282_v21  ;;  %4287 = vtanh.f32 %v1299_v15  ;;  %v3561_v15 = vor.u32 %v4151_v20, %v3558_v23  ;;  %1810 = vmatpush.bf16.msrb.mxu1 %v3553_v2  ;;  %1823 = vmatpush.bf16.msrb.mxu2 %v3557_v3  ;;  %v3532_v21 = vld [vmem:[#allocation9 + $0xa0] sm:$0xf]  ;;  %v4136_v2 = vld [vmem:[#allocation9 + $0x4c] sm:$0xf0] }
 0x234   :  { %v1296_v24 = vmul.f32 0.5, %v4284_v27  ;;  %v4148_v27 = vld [vmem:[#allocation9 + $0xac] sm:$0xf0]  ;;  %v4134_v3 = vld [vmem:[#allocation9 + $0x44] sm:$0xf]  ;;  %v3485_v20 = vor.u32 %v4136_v2, %v3484_v1 }
 0x235   :  { %v1293_v26 = vadd.f32 0.5, %v1292_v33  ;;  %v4146_v33 = vld [vmem:[#allocation9 + $0xa4] sm:$0xf]  ;;  %1836 = vmatpush.bf16.msrb.mxu3 %v3561_v15  ;;  %v3486_v23 = vld [vmem:[#allocation9 + $0x50] sm:$0xf0] }
 0x236   :  { %v1297_v41 = vadd.f32 0.5, %v1296_v24  ;;  %v1271_v35 = vpop.f32.mrf.mxu2  ;;  %v1284_v36 = vpop.f32.mrf.mxu3  ;;  %v3533_v24 = vor.u32 %v4148_v27, %v3532_v21  ;;  %v3492_v15 = vld [vmem:[#allocation9 + $0x48] sm:$0xf]  ;;  %v4137_v21 = vld [vmem:[#allocation9 + $0x54] sm:$0xf0]  ;;  %v3489_v27 = vor.u32 %v4134_v3, %v3486_v23 }
 0x237   :  { %v4286_v10 = vpop.eup %4285  ;;  %v4149_v35 = vld [vmem:[#allocation9 + $0xb4] sm:$0xf0] }
 0x238   :  { %v1304_v17 = vmul.f32 %v1297_v41, %v4582_v8  ;;  %v1305_v37 = vmul.f32 %v4286_v10, %v1293_v26  ;;  %v3564_v8 = vld [vmem:[#allocation9 + $0xe0] sm:$0xf]  ;;  %v3534_v26 = vld [vmem:[#allocation9 + $0xb0] sm:$0xf0]  ;;  %v3540_v41 = vld [vmem:[#allocation9 + $0xa8] sm:$0xf] }
 0x239   :  { %v4288_v28 = vpop.eup %4287  ;;  %v3565_v52 = vor.u32 %v4156_v49, %v3564_v8  ;;  %v3537_v36 = vor.u32 %v4146_v33, %v3534_v26  ;;  %v3541_v10 = vor.u32 %v4149_v35, %v3540_v41  ;;  %v4145_v8 = vld [vmem:[#allocation9 + $0x94] sm:$0xf0]  ;;  %v3493_v33 = vor.u32 %v4137_v21, %v3492_v15  ;;  %v3494_v26 = vld [vmem:[#allocation9 + $0x58] sm:$0xf0]  ;;  %v3468_v35 = vld [vmem:[#allocation9 + $0x20] sm:$0xf] }
 0x23a   :  { %v4594_v38 = vadd.f32 %v1305_v37, %v1304_v17  ;;  %v1301_v31 = vmul.f32 0.5, %v4288_v28  ;;  %v4147_v17 = vld [vmem:[#allocation9 + $0xac] sm:$0xf]  ;;  %v3542_v37 = vld [vmem:[#allocation9 + $0xb8] sm:$0xf0] }
 0x23b   :  { %1796 = vmatpush.bf16.msrb.mxu0 %v3565_v52  ;;  %v3545_v28 = vor.u32 %v4147_v17, %v3542_v37  ;;  %1811 = vmatpush.bf16.msrb.mxu1 %v3537_v36  ;;  %v4143_v52 = vld [vmem:[#allocation9 + $0x8c] sm:$0xf]  ;;  %v4132_v36 = vld [vmem:[#allocation9 + $0x2c] sm:$0xf0]  ;;  %v3470_v37 = vld [vmem:[#allocation9 + $0x30] sm:$0xf0] }
 0x23c   :  { %4289 = vtanh.f32 %v4594_v38  ;;  %v1302_v12 = vadd.f32 0.5, %v1301_v31  ;;  %1824 = vmatpush.bf16.msrb.mxu2 %v3541_v10  ;;  %v3516_v31 = vld [vmem:[#allocation9 + $0x80] sm:$0xf]  ;;  %v3529_v57 = vor.u32 %v4143_v52, %v3526_v54  ;;  %v4130_v10 = vld [vmem:[#allocation9 + $0x24] sm:$0xf]  ;;  %v3469_v17 = vor.u32 %v4132_v36, %v3468_v35 }
 0x23d   :  { %1837 = vmatpush.bf16.msrb.mxu3 %v3545_v28  ;;  %v3476_v28 = vld [vmem:[#allocation9 + $0x28] sm:$0xf]  ;;  %v3454_v54 = vld [vmem:[#allocation9 + $0x10] sm:$0xf0] }
 0x23f   :  { %1797 = vmatpush.bf16.msrb.mxu0 %v3549_v7  ;;  %v4139_v7 = vld [vmem:[#allocation9 + $0x6c] sm:$0xf] }
 0x240   :  { %v3513_v62 = vor.u32 %v4139_v7, %v3510_v11 }
 0x241   :  { %1838 = vmatpush.bf16.msrb.mxu3 %v3529_v57  ;;  %v3460_v57 = vld [vmem:[#allocation9 + $0x8] sm:$0xf] }
 0x242   :  { %v4290_v18 = vpop.eup %4289  ;;  %v3461_v60 = vor.u32 %v4129_v58, %v3460_v57  ;;  %v4187_v58 = vld [vmem:[#allocation9 + $0xec] sm:$0xf] }
 0x243   :  { %v1308_v43 = vmul.f32 %v4290_v18, %v1302_v12  ;;  %1798 = vmatpush.bf16.msrb.mxu0 %v3533_v24  ;;  %v4144_v12 = vld [vmem:[#allocation9 + $0x8c] sm:$0xf0]  ;;  %v4142_v18 = vld [vmem:[#allocation9 + $0x84] sm:$0xf]  ;;  %v4135_v24 = vld [vmem:[#allocation9 + $0x4c] sm:$0xf] }
 0x244   :  { %v3497_v41 = vor.u32 %v4135_v24, %v3494_v26 }
 0x245   :  { %v4599_v44 = vadd.f32 %v1308_v43, %v1031_v42  ;;  %v1322_v48 = vpack.c.bf16 %v1308_v43, %v1308_v43  ;;  %v3517_v42 = vor.u32 %v4144_v12, %v3516_v31  ;;  %v3518_v43 = vld [vmem:[#allocation9 + $0x90] sm:$0xf0]  ;;  %1839 = vmatpush.bf16.msrb.mxu3 %v3513_v62  ;;  %v4133_v31 = vld [vmem:[#allocation9 + $0x34] sm:$0xf0]  ;;  %v3473_v12 = vor.u32 %v4130_v10, %v3470_v37 }
 0x246   :  { %v3521_v49 = vor.u32 %v4142_v18, %v3518_v43  ;;  %v3477_v18 = vor.u32 %v4133_v31, %v3476_v28  ;;  %v3478_v43 = vld [vmem:[#allocation9 + $0x38] sm:$0xf0] }
 0x247   :  { %1523 = vmatmul.bf16.vlgmr.msra.gmra.mxu0 %v1322_v48  ;;  %1536 = vmatmul.bf16.vlgmr.msra.gmra.mxu1 %v1322_v48 }
 0x248   :  { %1549 = vmatmul.bf16.vlgmr.msra.gmra.mxu2 %v1322_v48  ;;  %1562 = vmatmul.bf16.vlgmr.msra.gmra.mxu3 %v1322_v48  ;;  %v3524_v48 = vld [vmem:[#allocation9 + $0x88] sm:$0xf] }
 0x249   :  { %v3525_v50 = vor.u32 %v4145_v8, %v3524_v48  ;;  %1799 = vmatpush.bf16.msrb.mxu0 %v3517_v42  ;;  %1812 = vmatpush.bf16.msrb.mxu1 %v3521_v49  ;;  %v4131_v42 = vld [vmem:[#allocation9 + $0x2c] sm:$0xf]  ;;  %v3452_v8 = vld [vmem:[#allocation9] sm:$0xf]  ;;  %v4128_v49 = vld [vmem:[#allocation9 + $0xc] sm:$0xf0] }
 0x24a   :  { %1840 = vmatpush.bf16.msrb.mxu3 %v3497_v41  ;;  %v3481_v48 = vor.u32 %v4131_v42, %v3478_v43  ;;  %v3453_v52 = vor.u32 %v4128_v49, %v3452_v8  ;;  %v3692_v43 = vld [vmem:[#allocation9 + $0xe0] sm:$0xf]  ;;  %v3694_v49 = vld [vmem:[#allocation9 + $0xf0] sm:$0xf0] }
 0x24b   :  { %1825 = vmatpush.bf16.msrb.mxu2 %v3525_v50  ;;  %v4126_v50 = vld [vmem:[#allocation9 + $0x4] sm:$0xf] }
 0x24c   :  { %v3457_v59 = vor.u32 %v4126_v50, %v3454_v54  ;;  %v3700_v50 = vld [vmem:[#allocation9 + $0xe8] sm:$0xf] }
 0x24d   :  { %1800 = vmatpush.bf16.msrb.mxu0 %v3501_v6  ;;  %1813 = vmatpush.bf16.msrb.mxu1 %v3505_v14  ;;  %v4127_v6 = vld [vmem:[#allocation9 + $0xc] sm:$0xf] }
 0x24e   :  { %1841 = vmatpush.bf16.msrb.mxu3 %v3481_v48  ;;  %v3465_v45 = vor.u32 %v4127_v6, %v3462_v9  ;;  %v4186_v48 = vld [vmem:[#allocation9 + $0xe4] sm:$0xf]  ;;  %v4184_v6 = vld [vmem:[#allocation9 + $0xcc] sm:$0xf0] }
 0x24f   :  { %1826 = vmatpush.bf16.msrb.mxu2 %v3509_v16  ;;  %v3697_v54 = vor.u32 %v4186_v48, %v3694_v49  ;;  %v4182_v9 = vld [vmem:[#allocation9 + $0xc4] sm:$0xf]  ;;  %v3628_v48 = vld [vmem:[#allocation9 + $0x60] sm:$0xf] }
 0x250   :  { %v4170_v49 = vld [vmem:[#allocation9 + $0x64] sm:$0xf] }
 0x251   :  { %1801 = vmatpush.bf16.msrb.mxu0 %v3485_v20  ;;  %1814 = vmatpush.bf16.msrb.mxu1 %v3489_v27 }
 0x252   :  { %1842 = vmatpush.bf16.msrb.mxu3 %v3465_v45 }
 0x253   :  { %1827 = vmatpush.bf16.msrb.mxu2 %v3493_v33 }
 0x255   :  { %1802 = vmatpush.bf16.msrb.mxu0 %v3469_v17  ;;  %1815 = vmatpush.bf16.msrb.mxu1 %v3473_v12 }
 0x257   :  { %1828 = vmatpush.bf16.msrb.mxu2 %v3477_v18 }
 0x259   :  { %1803 = vmatpush.bf16.msrb.mxu0 %v3453_v52  ;;  %1816 = vmatpush.bf16.msrb.mxu1 %v3457_v59  ;;  %v4189_v52 = vld [vmem:[#allocation9 + $0xf4] sm:$0xf0]  ;;  %v3702_v59 = vld [vmem:[#allocation9 + $0xf8] sm:$0xf0] }
 0x25a   :  { %v3701_v57 = vor.u32 %v4189_v52, %v3700_v50  ;;  %v3630_v52 = vld [vmem:[#allocation9 + $0x70] sm:$0xf0] }
 0x25b   :  { %1829 = vmatpush.bf16.msrb.mxu2 %v3461_v60  ;;  %v3705_v60 = vor.u32 %v4187_v58, %v3702_v59  ;;  %v3633_v58 = vor.u32 %v4170_v49, %v3630_v52 }
 0x25d   :  { %2090 = vmatpush.bf16.msra.mxu1 %v3697_v54  ;;  %2116 = vmatpush.bf16.msra.mxu3 %v3705_v60  ;;  %v3636_v54 = vld [vmem:[#allocation9 + $0x68] sm:$0xf]  ;;  %v4171_v60 = vld [vmem:[#allocation9 + $0x6c] sm:$0xf] }
 0x25f   :  { %2103 = vmatpush.bf16.msra.mxu2 %v3701_v57  ;;  %v4173_v57 = vld [vmem:[#allocation9 + $0x74] sm:$0xf0] }
 0x260   :  { %v3637_v59 = vor.u32 %v4173_v57, %v3636_v54 }
 0x2c4   :  { %v1524_v22 = vpop.f32.mrf.mxu0  ;;  %v1537_v14 = vpop.f32.mrf.mxu1 }
 0x2c5   :  { %v1567_v16 = vadd.f32 %v1524_v22, %v4503_v32  ;;  %v1568_v7 = vadd.f32 %v1537_v14, %v4506_v34  ;;  %v3678_v22 = vld [vmem:[#allocation9 + $0xd0] sm:$0xf0]  ;;  %v3684_v14 = vld [vmem:[#allocation9 + $0xc8] sm:$0xf] }
 0x2c7   :  { %v1571_v11 = vmul.f32 0.5, %v1567_v16  ;;  %v1575_v62 = vmul.f32 0.5, %v1568_v7  ;;  %v4185_v16 = vld [vmem:[#allocation9 + $0xd4] sm:$0xf0]  ;;  %v3681_v7 = vor.u32 %v4182_v9, %v3678_v22  ;;  %v3612_v9 = vld [vmem:[#allocation9 + $0x40] sm:$0xf] }
 0x2c8   :  { %v4166_v22 = vld [vmem:[#allocation9 + $0x44] sm:$0xf] }
 0x2c9   :  { %4291 = vtanh.f32 %v1571_v11  ;;  %v3685_v11 = vor.u32 %v4185_v16, %v3684_v14  ;;  %2091 = vmatpush.bf16.msra.mxu1 %v3681_v7  ;;  %v3614_v16 = vld [vmem:[#allocation9 + $0x50] sm:$0xf0]  ;;  %v3620_v7 = vld [vmem:[#allocation9 + $0x48] sm:$0xf] }
 0x2ca   :  { %4293 = vtanh.f32 %v1575_v62  ;;  %v4183_v62 = vld [vmem:[#allocation9 + $0xcc] sm:$0xf] }
 0x2cb   :  { %v1550_v1 = vpop.f32.mrf.mxu2  ;;  %v1563_v2 = vpop.f32.mrf.mxu3  ;;  %2104 = vmatpush.bf16.msra.mxu2 %v3685_v11  ;;  %v4169_v11 = vld [vmem:[#allocation9 + $0x54] sm:$0xf0] }
 0x2cc   :  { %v1569_v3 = vadd.f32 %v1550_v1, %v4509_v39  ;;  %v1570_v20 = vadd.f32 %v1563_v2, %v4512_v46  ;;  %v1526_v23 = vpop.f32.mrf.mxu0  ;;  %v1539_v15 = vpop.f32.mrf.mxu1  ;;  %v3686_v1 = vld [vmem:[#allocation9 + $0xd8] sm:$0xf0] }
 0x2cd   :  { %v3689_v2 = vor.u32 %v4183_v62, %v3686_v1  ;;  %v4178_v23 = vld [vmem:[#allocation9 + $0xa4] sm:$0xf]  ;;  %v3617_v62 = vor.u32 %v4166_v22, %v3614_v16  ;;  %v3621_v1 = vor.u32 %v4169_v11, %v3620_v7 }
 0x2ce   :  { %4295 = vtanh.f32 %v1569_v3  ;;  %v1580_v21 = vmul.f32 0.5, %v1570_v20  ;;  %v3660_v3 = vld [vmem:[#allocation9 + $0xa0] sm:$0xf]  ;;  %v4180_v20 = vld [vmem:[#allocation9 + $0xac] sm:$0xf0] }
 0x2cf   :  { %v4292_v27 = vpop.eup %4291  ;;  %2117 = vmatpush.bf16.msra.mxu3 %v3689_v2  ;;  %v3661_v15 = vor.u32 %v4180_v20, %v3660_v3  ;;  %v4167_v2 = vld [vmem:[#allocation9 + $0x4c] sm:$0xf]  ;;  %v3622_v3 = vld [vmem:[#allocation9 + $0x58] sm:$0xf0] }
 0x2d0   :  { %v4294_v33 = vpop.eup %4293  ;;  %v1573_v24 = vmul.f32 0.5, %v4292_v27  ;;  %4297 = vtanh.f32 %v1580_v21  ;;  %v3662_v21 = vld [vmem:[#allocation9 + $0xb0] sm:$0xf0]  ;;  %v3668_v27 = vld [vmem:[#allocation9 + $0xa8] sm:$0xf]  ;;  %v3625_v20 = vor.u32 %v4167_v2, %v3622_v3 }
 0x2d1   :  { %v1577_v32 = vmul.f32 0.5, %v4294_v33  ;;  %v4181_v33 = vld [vmem:[#allocation9 + $0xb4] sm:$0xf0] }
 0x2d2   :  { %v1574_v34 = vadd.f32 0.5, %v1573_v24  ;;  %v3665_v24 = vor.u32 %v4178_v23, %v3662_v21  ;;  %v3596_v23 = vld [vmem:[#allocation9 + $0x20] sm:$0xf]  ;;  %v4162_v21 = vld [vmem:[#allocation9 + $0x24] sm:$0xf] }
 0x2d3   :  { %v1578_v26 = vadd.f32 0.5, %v1577_v32  ;;  %v1552_v41 = vpop.f32.mrf.mxu2  ;;  %v1565_v35 = vpop.f32.mrf.mxu3  ;;  %v3669_v32 = vor.u32 %v4181_v33, %v3668_v27  ;;  %v3598_v33 = vld [vmem:[#allocation9 + $0x30] sm:$0xf0] }
 0x2d4   :  { %v4296_v36 = vpop.eup %4295  ;;  %2092 = vmatpush.bf16.msra.mxu1 %v3665_v24  ;;  %v3644_v35 = vld [vmem:[#allocation9 + $0x80] sm:$0xf]  ;;  %v3604_v24 = vld [vmem:[#allocation9 + $0x28] sm:$0xf] }
 0x2d5   :  { %v1585_v10 = vmul.f32 %v1578_v26, %v4594_v38  ;;  %v1586_v17 = vmul.f32 %v4296_v36, %v1574_v34  ;;  %v4188_v38 = vld [vmem:[#allocation9 + $0xec] sm:$0xf0]  ;;  %v4179_v34 = vld [vmem:[#allocation9 + $0xac] sm:$0xf]  ;;  %v3670_v26 = vld [vmem:[#allocation9 + $0xb8] sm:$0xf0]  ;;  %2105 = vmatpush.bf16.msra.mxu2 %v3669_v32 }
 0x2d6   :  { %v4298_v39 = vpop.eup %4297  ;;  %v3693_v8 = vor.u32 %v4188_v38, %v3692_v43  ;;  %v3673_v41 = vor.u32 %v4179_v34, %v3670_v26  ;;  %v4176_v36 = vld [vmem:[#allocation9 + $0x8c] sm:$0xf0]  ;;  %v3654_v43 = vld [vmem:[#allocation9 + $0x98] sm:$0xf0]  ;;  %v4165_v32 = vld [vmem:[#allocation9 + $0x34] sm:$0xf0]  ;;  %v3601_v34 = vor.u32 %v4162_v21, %v3598_v33 }
 0x2d7   :  { %v4606_v37 = vadd.f32 %v1586_v17, %v1585_v10  ;;  %v1582_v46 = vmul.f32 0.5, %v4298_v39  ;;  %v4174_v10 = vld [vmem:[#allocation9 + $0x84] sm:$0xf]  ;;  %v3645_v17 = vor.u32 %v4176_v36, %v3644_v35  ;;  %v3646_v39 = vld [vmem:[#allocation9 + $0x90] sm:$0xf0]  ;;  %v3605_v26 = vor.u32 %v4165_v32, %v3604_v24 }
 0x2d8   :  { %2077 = vmatpush.bf16.msra.mxu0 %v3693_v8  ;;  %2118 = vmatpush.bf16.msra.mxu3 %v3673_v41  ;;  %v4172_v8 = vld [vmem:[#allocation9 + $0x6c] sm:$0xf0]  ;;  %v4163_v41 = vld [vmem:[#allocation9 + $0x2c] sm:$0xf]  ;;  %v3606_v35 = vld [vmem:[#allocation9 + $0x38] sm:$0xf0] }
 0x2d9   :  { %4299 = vtanh.f32 %v4606_v37  ;;  %v1583_v28 = vadd.f32 0.5, %v1582_v46  ;;  %v3652_v46 = vld [vmem:[#allocation9 + $0x88] sm:$0xf]  ;;  %v3629_v50 = vor.u32 %v4172_v8, %v3628_v48  ;;  %v3609_v36 = vor.u32 %v4163_v41, %v3606_v35  ;;  %v3590_v48 = vld [vmem:[#allocation9 + $0x18] sm:$0xf0] }
 0x2da   :  { %v3820_v32 = vld [vmem:[#allocation9 + $0xe0] sm:$0xf]  ;;  %v3822_v41 = vld [vmem:[#allocation9 + $0xf0] sm:$0xf0]  ;;  %v3828_v35 = vld [vmem:[#allocation9 + $0xe8] sm:$0xf] }
 0x2df   :  { %v4300_v31 = vpop.eup %4299 }
 0x2e0   :  { %v1589_v12 = vmul.f32 %v4300_v31, %v1583_v28  ;;  %v4177_v28 = vld [vmem:[#allocation9 + $0x94] sm:$0xf0]  ;;  %v3649_v31 = vor.u32 %v4174_v10, %v3646_v39  ;;  %v3580_v10 = vld [vmem:[#allocation9] sm:$0xf]  ;;  %v4158_v39 = vld [vmem:[#allocation9 + $0x4] sm:$0xf] }
 0x2e2   :  { %v4610_v18 = vadd.f32 %v1589_v12, %v4599_v44  ;;  %v1603_v42 = vpack.c.bf16 %v1589_v12, %v1589_v12  ;;  %v3676_v44 = vld [vmem:[#allocation9 + $0xc0] sm:$0xf]  ;;  %v3653_v12 = vor.u32 %v4177_v28, %v3652_v46  ;;  %2093 = vmatpush.bf16.msra.mxu1 %v3649_v31  ;;  %v3582_v28 = vld [vmem:[#allocation9 + $0x10] sm:$0xf0]  ;;  %v3588_v31 = vld [vmem:[#allocation9 + $0x8] sm:$0xf] }
 0x2e3   :  { %v3677_v45 = vor.u32 %v4184_v6, %v3676_v44  ;;  %v3638_v44 = vld [vmem:[#allocation9 + $0x78] sm:$0xf0] }
 0x2e4   :  { %1804 = vmatmul.bf16.vlgmr.msrb.gmra.mxu0 %v1603_v42  ;;  %1817 = vmatmul.bf16.vlgmr.msrb.gmra.mxu1 %v1603_v42  ;;  %v3641_v6 = vor.u32 %v4171_v60, %v3638_v44 }
 0x2e5   :  { %1830 = vmatmul.bf16.vlgmr.msrb.gmra.mxu2 %v1603_v42  ;;  %1843 = vmatmul.bf16.vlgmr.msrb.gmra.mxu3 %v1603_v42  ;;  %v4175_v42 = vld [vmem:[#allocation9 + $0x8c] sm:$0xf] }
 0x2e6   :  { %2078 = vmatpush.bf16.msra.mxu0 %v3677_v45  ;;  %v3657_v38 = vor.u32 %v4175_v42, %v3654_v43  ;;  %2106 = vmatpush.bf16.msra.mxu2 %v3653_v12  ;;  %v4168_v45 = vld [vmem:[#allocation9 + $0x4c] sm:$0xf0]  ;;  %v4161_v12 = vld [vmem:[#allocation9 + $0x14] sm:$0xf0]  ;;  %v3585_v42 = vor.u32 %v4158_v39, %v3582_v28  ;;  %v4219_v39 = vld [vmem:[#allocation9 + $0xec] sm:$0xf] }
 0x2e7   :  { %2094 = vmatpush.bf16.msra.mxu1 %v3633_v58  ;;  %v3613_v14 = vor.u32 %v4168_v45, %v3612_v9  ;;  %v3589_v43 = vor.u32 %v4161_v12, %v3588_v31  ;;  %v4216_v31 = vld [vmem:[#allocation9 + $0xcc] sm:$0xf0]  ;;  %v4214_v12 = vld [vmem:[#allocation9 + $0xc4] sm:$0xf] }
 0x2e8   :  { %2119 = vmatpush.bf16.msra.mxu3 %v3657_v38  ;;  %v4159_v38 = vld [vmem:[#allocation9 + $0xc] sm:$0xf] }
 0x2e9   :  { %v3593_v8 = vor.u32 %v4159_v38, %v3590_v48  ;;  %v3812_v38 = vld [vmem:[#allocation9 + $0xc8] sm:$0xf]  ;;  %v4217_v48 = vld [vmem:[#allocation9 + $0xd4] sm:$0xf0] }
 0x2ea   :  { %2079 = vmatpush.bf16.msra.mxu0 %v3661_v15  ;;  %2107 = vmatpush.bf16.msra.mxu2 %v3637_v59  ;;  %v4164_v15 = vld [vmem:[#allocation9 + $0x2c] sm:$0xf0] }
 0x2eb   :  { %2095 = vmatpush.bf16.msra.mxu1 %v3617_v62  ;;  %v3597_v27 = vor.u32 %v4164_v15, %v3596_v23 }
 0x2ec   :  { %2120 = vmatpush.bf16.msra.mxu3 %v3641_v6 }
 0x2ee   :  { %2080 = vmatpush.bf16.msra.mxu0 %v3645_v17  ;;  %2108 = vmatpush.bf16.msra.mxu2 %v3621_v1  ;;  %v4160_v17 = vld [vmem:[#allocation9 + $0xc] sm:$0xf0] }
 0x2ef   :  { %2096 = vmatpush.bf16.msra.mxu1 %v3601_v34  ;;  %v3581_v46 = vor.u32 %v4160_v17, %v3580_v10  ;;  %v4218_v34 = vld [vmem:[#allocation9 + $0xe4] sm:$0xf] }
 0x2f0   :  { %2121 = vmatpush.bf16.msra.mxu3 %v3625_v20  ;;  %v3825_v10 = vor.u32 %v4218_v34, %v3822_v41  ;;  %v3758_v34 = vld [vmem:[#allocation9 + $0x70] sm:$0xf0]  ;;  %v4205_v41 = vld [vmem:[#allocation9 + $0x74] sm:$0xf0] }
 0x2f2   :  { %2081 = vmatpush.bf16.msra.mxu0 %v3629_v50  ;;  %2109 = vmatpush.bf16.msra.mxu2 %v3605_v26 }
 0x2f3   :  { %2097 = vmatpush.bf16.msra.mxu1 %v3585_v42 }
 0x2f4   :  { %2122 = vmatpush.bf16.msra.mxu3 %v3609_v36  ;;  %v4221_v36 = vld [vmem:[#allocation9 + $0xf4] sm:$0xf0] }
 0x2f5   :  { %v3829_v17 = vor.u32 %v4221_v36, %v3828_v35 }
 0x2f6   :  { %2082 = vmatpush.bf16.msra.mxu0 %v3613_v14  ;;  %2110 = vmatpush.bf16.msra.mxu2 %v3589_v43  ;;  %v3806_v43 = vld [vmem:[#allocation9 + $0xd0] sm:$0xf0] }
 0x2f7   :  { %2371 = vmatpush.bf16.msrb.mxu1 %v3825_v10  ;;  %v4203_v10 = vld [vmem:[#allocation9 + $0x6c] sm:$0xf] }
 0x2f8   :  { %2123 = vmatpush.bf16.msra.mxu3 %v3593_v8  ;;  %v3809_v8 = vor.u32 %v4214_v12, %v3806_v43  ;;  %v3742_v12 = vld [vmem:[#allocation9 + $0x50] sm:$0xf0]  ;;  %v4201_v43 = vld [vmem:[#allocation9 + $0x54] sm:$0xf0] }
 0x2fa   :  { %2083 = vmatpush.bf16.msra.mxu0 %v3597_v27  ;;  %2384 = vmatpush.bf16.msrb.mxu2 %v3829_v17  ;;  %v3766_v17 = vld [vmem:[#allocation9 + $0x78] sm:$0xf0] }
 0x2fb   :  { %2372 = vmatpush.bf16.msrb.mxu1 %v3809_v8  ;;  %v4199_v8 = vld [vmem:[#allocation9 + $0x4c] sm:$0xf] }
 0x2fe   :  { %2084 = vmatpush.bf16.msra.mxu0 %v3581_v46  ;;  %v3830_v46 = vld [vmem:[#allocation9 + $0xf8] sm:$0xf0] }
 0x2ff   :  { %v3833_v28 = vor.u32 %v4219_v39, %v3830_v46  ;;  %v3769_v39 = vor.u32 %v4203_v10, %v3766_v17  ;;  %v3740_v46 = vld [vmem:[#allocation9 + $0x40] sm:$0xf] }
 0x301   :  { %2397 = vmatpush.bf16.msrb.mxu3 %v3833_v28  ;;  %v4200_v28 = vld [vmem:[#allocation9 + $0x4c] sm:$0xf0] }
 0x361   :  { %v1805_v49 = vpop.f32.mrf.mxu0  ;;  %v1818_v50 = vpop.f32.mrf.mxu1 }
 0x362   :  { %v1848_v52 = vadd.f32 %v1805_v49, %v4515_v47  ;;  %v1849_v54 = vadd.f32 %v1818_v50, %v4518_v53  ;;  %v3813_v49 = vor.u32 %v4217_v48, %v3812_v38  ;;  %v4215_v50 = vld [vmem:[#allocation9 + $0xcc] sm:$0xf] }
 0x364   :  { %v1852_v57 = vmul.f32 0.5, %v1848_v52  ;;  %v1856_v58 = vmul.f32 0.5, %v1849_v54  ;;  %v3814_v52 = vld [vmem:[#allocation9 + $0xd8] sm:$0xf0]  ;;  %2385 = vmatpush.bf16.msrb.mxu2 %v3813_v49 }
 0x365   :  { %v3817_v54 = vor.u32 %v4215_v50, %v3814_v52  ;;  %v3750_v49 = vld [vmem:[#allocation9 + $0x58] sm:$0xf0]  ;;  %v3724_v52 = vld [vmem:[#allocation9 + $0x20] sm:$0xf] }
 0x366   :  { %4301 = vtanh.f32 %v1852_v57  ;;  %v3788_v57 = vld [vmem:[#allocation9 + $0xa0] sm:$0xf]  ;;  %v3753_v50 = vor.u32 %v4199_v8, %v3750_v49 }
 0x367   :  { %4303 = vtanh.f32 %v1856_v58  ;;  %v4212_v58 = vld [vmem:[#allocation9 + $0xac] sm:$0xf0]  ;;  %2398 = vmatpush.bf16.msrb.mxu3 %v3817_v54 }
 0x368   :  { %v1831_v59 = vpop.f32.mrf.mxu2  ;;  %v1844_v60 = vpop.f32.mrf.mxu3  ;;  %v4196_v54 = vld [vmem:[#allocation9 + $0x2c] sm:$0xf0] }
 0x369   :  { %v1850_v44 = vadd.f32 %v1831_v59, %v4521_v13  ;;  %v1851_v6 = vadd.f32 %v1844_v60, %v4524_v29  ;;  %v1807_v9 = vpop.f32.mrf.mxu0  ;;  %v1820_v45 = vpop.f32.mrf.mxu1  ;;  %v4210_v59 = vld [vmem:[#allocation9 + $0xa4] sm:$0xf]  ;;  %v3789_v60 = vor.u32 %v4212_v58, %v3788_v57  ;;  %v3725_v58 = vor.u32 %v4196_v54, %v3724_v52 }
 0x36a   :  { %v4213_v9 = vld [vmem:[#allocation9 + $0xb4] sm:$0xf0]  ;;  %v4194_v57 = vld [vmem:[#allocation9 + $0x24] sm:$0xf] }
 0x36b   :  { %4305 = vtanh.f32 %v1850_v44  ;;  %v1861_v22 = vmul.f32 0.5, %v1851_v6  ;;  %v3790_v44 = vld [vmem:[#allocation9 + $0xb0] sm:$0xf0]  ;;  %v3796_v6 = vld [vmem:[#allocation9 + $0xa8] sm:$0xf] }
 0x36c   :  { %v4302_v14 = vpop.eup %4301  ;;  %v3793_v45 = vor.u32 %v4210_v59, %v3790_v44  ;;  %v3726_v59 = vld [vmem:[#allocation9 + $0x30] sm:$0xf0]  ;;  %v4197_v44 = vld [vmem:[#allocation9 + $0x34] sm:$0xf0] }
 0x36d   :  { %v4304_v16 = vpop.eup %4303  ;;  %v1854_v7 = vmul.f32 0.5, %v4302_v14  ;;  %4307 = vtanh.f32 %v1861_v22  ;;  %v3797_v22 = vor.u32 %v4213_v9, %v3796_v6  ;;  %v4211_v14 = vld [vmem:[#allocation9 + $0xac] sm:$0xf]  ;;  %v3729_v6 = vor.u32 %v4194_v57, %v3726_v59  ;;  %v3948_v57 = vld [vmem:[#allocation9 + $0xe0] sm:$0xf] }
 0x36e   :  { %v1858_v47 = vmul.f32 0.5, %v4304_v16  ;;  %v3798_v16 = vld [vmem:[#allocation9 + $0xb8] sm:$0xf0]  ;;  %2373 = vmatpush.bf16.msrb.mxu1 %v3793_v45  ;;  %v4195_v45 = vld [vmem:[#allocation9 + $0x2c] sm:$0xf] }
 0x36f   :  { %v1855_v53 = vadd.f32 0.5, %v1854_v7  ;;  %v3801_v7 = vor.u32 %v4211_v14, %v3798_v16  ;;  %2386 = vmatpush.bf16.msrb.mxu2 %v3797_v22  ;;  %v3734_v22 = vld [vmem:[#allocation9 + $0x38] sm:$0xf0]  ;;  %v3708_v16 = vld [vmem:[#allocation9] sm:$0xf] }
 0x370   :  { %v1859_v11 = vadd.f32 0.5, %v1858_v47  ;;  %v1833_v62 = vpop.f32.mrf.mxu2  ;;  %v1846_v1 = vpop.f32.mrf.mxu3  ;;  %v3772_v47 = vld [vmem:[#allocation9 + $0x80] sm:$0xf]  ;;  %v3737_v14 = vor.u32 %v4195_v45, %v3734_v22  ;;  %v4251_v22 = vld [vmem:[#allocation9 + $0xec] sm:$0xf] }
 0x371   :  { %v4306_v2 = vpop.eup %4305  ;;  %2399 = vmatpush.bf16.msrb.mxu3 %v3801_v7  ;;  %v3774_v1 = vld [vmem:[#allocation9 + $0x90] sm:$0xf0]  ;;  %v4192_v7 = vld [vmem:[#allocation9 + $0xc] sm:$0xf0] }
 0x372   :  { %v1866_v3 = vmul.f32 %v1859_v11, %v4606_v37  ;;  %v1867_v20 = vmul.f32 %v4306_v2, %v1855_v53  ;;  %v4220_v37 = vld [vmem:[#allocation9 + $0xec] sm:$0xf0]  ;;  %v4206_v11 = vld [vmem:[#allocation9 + $0x84] sm:$0xf]  ;;  %v3780_v2 = vld [vmem:[#allocation9 + $0x88] sm:$0xf] }
 0x373   :  { %v4308_v13 = vpop.eup %4307  ;;  %v3821_v26 = vor.u32 %v4220_v37, %v3820_v32  ;;  %v4208_v53 = vld [vmem:[#allocation9 + $0x8c] sm:$0xf0]  ;;  %v4202_v32 = vld [vmem:[#allocation9 + $0x64] sm:$0xf] }
 0x374   :  { %v4617_v23 = vadd.f32 %v1867_v20, %v1866_v3  ;;  %v1863_v29 = vmul.f32 0.5, %v4308_v13  ;;  %v3773_v62 = vor.u32 %v4208_v53, %v3772_v47  ;;  %v4209_v3 = vld [vmem:[#allocation9 + $0x94] sm:$0xf0]  ;;  %v3777_v20 = vor.u32 %v4206_v11, %v3774_v1  ;;  %v4190_v47 = vld [vmem:[#allocation9 + $0x4] sm:$0xf] }
 0x375   :  { %2358 = vmatpush.bf16.msrb.mxu0 %v3821_v26  ;;  %v3781_v13 = vor.u32 %v4209_v3, %v3780_v2  ;;  %v3764_v26 = vld [vmem:[#allocation9 + $0x68] sm:$0xf]  ;;  %v3761_v35 = vor.u32 %v4202_v32, %v3758_v34  ;;  %v3709_v53 = vor.u32 %v4192_v7, %v3708_v16  ;;  %v3710_v11 = vld [vmem:[#allocation9 + $0x10] sm:$0xf0]  ;;  %v4193_v1 = vld [vmem:[#allocation9 + $0x14] sm:$0xf0] }
 0x376   :  { %4309 = vtanh.f32 %v4617_v23  ;;  %v1864_v15 = vadd.f32 0.5, %v1863_v29  ;;  %v4207_v29 = vld [vmem:[#allocation9 + $0x8c] sm:$0xf]  ;;  %2374 = vmatpush.bf16.msrb.mxu1 %v3777_v20  ;;  %v3765_v36 = vor.u32 %v4205_v41, %v3764_v26  ;;  %v3713_v2 = vor.u32 %v4190_v47, %v3710_v11  ;;  %v4248_v7 = vld [vmem:[#allocation9 + $0xcc] sm:$0xf0] }
 0x377   :  { %2387 = vmatpush.bf16.msrb.mxu2 %v3781_v13  ;;  %v4191_v20 = vld [vmem:[#allocation9 + $0xc] sm:$0xf]  ;;  %v3718_v13 = vld [vmem:[#allocation9 + $0x18] sm:$0xf0]  ;;  %v4246_v47 = vld [vmem:[#allocation9 + $0xc4] sm:$0xf] }
 0x378   :  { %v3934_v11 = vld [vmem:[#allocation9 + $0xd0] sm:$0xf0] }
 0x37a   :  { %2375 = vmatpush.bf16.msrb.mxu1 %v3761_v35 }
 0x37b   :  { %2388 = vmatpush.bf16.msrb.mxu2 %v3765_v36 }
 0x37c   :  { %v4310_v21 = vpop.eup %4309 }
 0x37d   :  { %v1870_v27 = vmul.f32 %v4310_v21, %v1864_v15  ;;  %v3782_v15 = vld [vmem:[#allocation9 + $0x98] sm:$0xf0] }
 0x37e   :  { %v3785_v21 = vor.u32 %v4207_v29, %v3782_v15  ;;  %v3721_v29 = vor.u32 %v4191_v20, %v3718_v13  ;;  %v4247_v20 = vld [vmem:[#allocation9 + $0xcc] sm:$0xf]  ;;  %v3942_v13 = vld [vmem:[#allocation9 + $0xd8] sm:$0xf0] }
 0x37f   :  { %v4621_v33 = vadd.f32 %v1870_v27, %v4610_v18  ;;  %v1884_v24 = vpack.c.bf16 %v1870_v27, %v1870_v27  ;;  %v3804_v18 = vld [vmem:[#allocation9 + $0xc0] sm:$0xf] }
 0x380   :  { %v3805_v42 = vor.u32 %v4216_v31, %v3804_v18  ;;  %v3756_v27 = vld [vmem:[#allocation9 + $0x60] sm:$0xf]  ;;  %2400 = vmatpush.bf16.msrb.mxu3 %v3785_v21  ;;  %v4198_v18 = vld [vmem:[#allocation9 + $0x44] sm:$0xf]  ;;  %v3741_v31 = vor.u32 %v4200_v28, %v3740_v46 }
 0x381   :  { %2085 = vmatmul.bf16.vlgmr.msra.gmra.mxu0 %v1884_v24  ;;  %2098 = vmatmul.bf16.vlgmr.msra.gmra.mxu1 %v1884_v24  ;;  %v3745_v38 = vor.u32 %v4198_v18, %v3742_v12 }
 0x382   :  { %2111 = vmatmul.bf16.vlgmr.msra.gmra.mxu2 %v1884_v24  ;;  %2124 = vmatmul.bf16.vlgmr.msra.gmra.mxu3 %v1884_v24  ;;  %v4204_v24 = vld [vmem:[#allocation9 + $0x6c] sm:$0xf0] }
 0x383   :  { %2359 = vmatpush.bf16.msrb.mxu0 %v3805_v42  ;;  %v3757_v37 = vor.u32 %v4204_v24, %v3756_v27  ;;  %v3748_v42 = vld [vmem:[#allocation9 + $0x48] sm:$0xf]  ;;  %2376 = vmatpush.bf16.msrb.mxu1 %v3745_v38 }
 0x384   :  { %2401 = vmatpush.bf16.msrb.mxu3 %v3769_v39  ;;  %v3749_v48 = vor.u32 %v4201_v43, %v3748_v42 }
 0x386   :  { %2389 = vmatpush.bf16.msrb.mxu2 %v3749_v48 }
 0x387   :  { %2360 = vmatpush.bf16.msrb.mxu0 %v3789_v60  ;;  %v3732_v60 = vld [vmem:[#allocation9 + $0x28] sm:$0xf]  ;;  %2377 = vmatpush.bf16.msrb.mxu1 %v3729_v6  ;;  %v4253_v6 = vld [vmem:[#allocation9 + $0xf4] sm:$0xf0] }
 0x388   :  { %2402 = vmatpush.bf16.msrb.mxu3 %v3753_v50  ;;  %v3733_v9 = vor.u32 %v4197_v44, %v3732_v60  ;;  %v3950_v60 = vld [vmem:[#allocation9 + $0xf0] sm:$0xf0]  ;;  %v3956_v44 = vld [vmem:[#allocation9 + $0xe8] sm:$0xf] }
 0x389   :  { %v3957_v45 = vor.u32 %v4253_v6, %v3956_v44  ;;  %v3868_v6 = vld [vmem:[#allocation9 + $0x40] sm:$0xf] }
 0x38a   :  { %2390 = vmatpush.bf16.msrb.mxu2 %v3733_v9 }
 0x38b   :  { %2361 = vmatpush.bf16.msrb.mxu0 %v3773_v62  ;;  %v3716_v62 = vld [vmem:[#allocation9 + $0x8] sm:$0xf]  ;;  %2378 = vmatpush.bf16.msrb.mxu1 %v3713_v2  ;;  %v3937_v2 = vor.u32 %v4246_v47, %v3934_v11  ;;  %v3878_v11 = vld [vmem:[#allocation9 + $0x58] sm:$0xf0] }
 0x38c   :  { %2403 = vmatpush.bf16.msrb.mxu3 %v3737_v14  ;;  %v3717_v3 = vor.u32 %v4193_v1, %v3716_v62  ;;  %v3958_v14 = vld [vmem:[#allocation9 + $0xf8] sm:$0xf0]  ;;  %v3940_v62 = vld [vmem:[#allocation9 + $0xc8] sm:$0xf]  ;;  %v4249_v1 = vld [vmem:[#allocation9 + $0xd4] sm:$0xf0] }
 0x38d   :  { %v3961_v16 = vor.u32 %v4251_v22, %v3958_v14  ;;  %v3870_v14 = vld [vmem:[#allocation9 + $0x50] sm:$0xf0] }
 0x38e   :  { %2391 = vmatpush.bf16.msrb.mxu2 %v3717_v3  ;;  %v3941_v3 = vor.u32 %v4249_v1, %v3940_v62  ;;  %v3852_v1 = vld [vmem:[#allocation9 + $0x20] sm:$0xf] }
 0x38f   :  { %2362 = vmatpush.bf16.msrb.mxu0 %v3757_v37 }
 0x390   :  { %2404 = vmatpush.bf16.msrb.mxu3 %v3721_v29  ;;  %v3945_v29 = vor.u32 %v4247_v20, %v3942_v13  ;;  %v3854_v13 = vld [vmem:[#allocation9 + $0x30] sm:$0xf0] }
 0x392   :  { %2665 = vmatpush.bf16.msra.mxu2 %v3957_v45  ;;  %v4230_v45 = vld [vmem:[#allocation9 + $0x44] sm:$0xf] }
 0x393   :  { %2363 = vmatpush.bf16.msrb.mxu0 %v3741_v31 }
 0x394   :  { %2678 = vmatpush.bf16.msra.mxu3 %v3961_v16  ;;  %v3876_v16 = vld [vmem:[#allocation9 + $0x48] sm:$0xf] }
 0x396   :  { %2666 = vmatpush.bf16.msra.mxu2 %v3941_v3  ;;  %v4226_v3 = vld [vmem:[#allocation9 + $0x24] sm:$0xf] }
 0x397   :  { %2364 = vmatpush.bf16.msrb.mxu0 %v3725_v58  ;;  %v4250_v58 = vld [vmem:[#allocation9 + $0xe4] sm:$0xf] }
 0x398   :  { %v3953_v9 = vor.u32 %v4250_v58, %v3950_v60  ;;  %2679 = vmatpush.bf16.msra.mxu3 %v3945_v29  ;;  %v3894_v60 = vld [vmem:[#allocation9 + $0x78] sm:$0xf0]  ;;  %v3860_v29 = vld [vmem:[#allocation9 + $0x28] sm:$0xf] }
 0x39a   :  { %2652 = vmatpush.bf16.msra.mxu1 %v3953_v9  ;;  %v4232_v9 = vld [vmem:[#allocation9 + $0x4c] sm:$0xf0] }
 0x39b   :  { %2365 = vmatpush.bf16.msrb.mxu0 %v3709_v53  ;;  %v3869_v22 = vor.u32 %v4232_v9, %v3868_v6 }
 0x39e   :  { %2653 = vmatpush.bf16.msra.mxu1 %v3937_v2  ;;  %v4228_v2 = vld [vmem:[#allocation9 + $0x2c] sm:$0xf0] }
 0x39f   :  { %v3853_v20 = vor.u32 %v4228_v2, %v3852_v1 }
 0x3fe   :  { %v2086_v15 = vpop.f32.mrf.mxu0  ;;  %v2099_v21 = vpop.f32.mrf.mxu1 }
 0x3ff   :  { %v2129_v27 = vadd.f32 %v2086_v15, %v4527_v30  ;;  %v2130_v24 = vadd.f32 %v2099_v21, %v4530_v40  ;;  %v3916_v15 = vld [vmem:[#allocation9 + $0xa0] sm:$0xf]  ;;  %v4244_v21 = vld [vmem:[#allocation9 + $0xac] sm:$0xf0] }
 0x401   :  { %v2133_v32 = vmul.f32 0.5, %v2129_v27  ;;  %v2137_v37 = vmul.f32 0.5, %v2130_v24  ;;  %v4242_v27 = vld [vmem:[#allocation9 + $0xa4] sm:$0xf]  ;;  %v3917_v24 = vor.u32 %v4244_v21, %v3916_v15  ;;  %v4229_v15 = vld [vmem:[#allocation9 + $0x34] sm:$0xf0]  ;;  %v3857_v21 = vor.u32 %v4226_v3, %v3854_v13 }
 0x402   :  { %v2746_v13 = vld [vmem:[%s4706_s5 + $0x68] sm:$0xff] }
 0x403   :  { %4311 = vtanh.f32 %v2133_v32  ;;  %v3918_v32 = vld [vmem:[#allocation9 + $0xb0] sm:$0xf0] }
 0x404   :  { %4313 = vtanh.f32 %v2137_v37  ;;  %v3924_v37 = vld [vmem:[#allocation9 + $0xa8] sm:$0xf] }
 0x405   :  { %v2112_v34 = vpop.f32.mrf.mxu2  ;;  %v2125_v26 = vpop.f32.mrf.mxu3 }
 0x406   :  { %v2131_v41 = vadd.f32 %v2112_v34, %v4533_v61  ;;  %v2132_v35 = vadd.f32 %v2125_v26, %v4536_v4  ;;  %v2088_v36 = vpop.f32.mrf.mxu0  ;;  %v2101_v10 = vpop.f32.mrf.mxu1  ;;  %v4245_v34 = vld [vmem:[#allocation9 + $0xb4] sm:$0xf0]  ;;  %v3921_v26 = vor.u32 %v4242_v27, %v3918_v32  ;;  %v3861_v27 = vor.u32 %v4229_v15, %v3860_v29  ;;  %v3862_v32 = vld [vmem:[#allocation9 + $0x38] sm:$0xf0] }
 0x407   :  { %v3926_v36 = vld [vmem:[#allocation9 + $0xb8] sm:$0xf0] }
 0x408   :  { %4315 = vtanh.f32 %v2131_v41  ;;  %v2142_v17 = vmul.f32 0.5, %v2132_v35  ;;  %v3925_v41 = vor.u32 %v4245_v34, %v3924_v37  ;;  %v4243_v35 = vld [vmem:[#allocation9 + $0xac] sm:$0xf]  ;;  %2654 = vmatpush.bf16.msra.mxu1 %v3921_v26  ;;  %v3836_v34 = vld [vmem:[#allocation9] sm:$0xf] }
 0x409   :  { %v4312_v39 = vpop.eup %4311  ;;  %v3929_v10 = vor.u32 %v4243_v35, %v3926_v36  ;;  %v4224_v26 = vld [vmem:[#allocation9 + $0xc] sm:$0xf0]  ;;  %v3838_v36 = vld [vmem:[#allocation9 + $0x10] sm:$0xf0] }
 0x40a   :  { %v4314_v46 = vpop.eup %4313  ;;  %v2135_v28 = vmul.f32 0.5, %v4312_v39  ;;  %4317 = vtanh.f32 %v2142_v17  ;;  %2667 = vmatpush.bf16.msra.mxu2 %v3925_v41  ;;  %v3900_v17 = vld [vmem:[#allocation9 + $0x80] sm:$0xf]  ;;  %v4240_v39 = vld [vmem:[#allocation9 + $0x8c] sm:$0xf0]  ;;  %v3837_v35 = vor.u32 %v4224_v26, %v3836_v34 }
 0x40b   :  { %v2139_v30 = vmul.f32 0.5, %v4314_v46  ;;  %v4238_v46 = vld [vmem:[#allocation9 + $0x84] sm:$0xf]  ;;  %2680 = vmatpush.bf16.msra.mxu3 %v3929_v10  ;;  %v3844_v10 = vld [vmem:[#allocation9 + $0x8] sm:$0xf] }
 0x40c   :  { %v2136_v40 = vadd.f32 0.5, %v2135_v28  ;;  %v3901_v28 = vor.u32 %v4240_v39, %v3900_v17  ;;  %v4222_v41 = vld [vmem:[#allocation9 + $0x4] sm:$0xf]  ;;  %v4225_v17 = vld [vmem:[#allocation9 + $0x14] sm:$0xf0] }
 0x40d   :  { %v2140_v18 = vadd.f32 0.5, %v2139_v30  ;;  %v2114_v31 = vpop.f32.mrf.mxu2  ;;  %v2127_v12 = vpop.f32.mrf.mxu3  ;;  %v3902_v30 = vld [vmem:[#allocation9 + $0x90] sm:$0xf0]  ;;  %v3841_v39 = vor.u32 %v4222_v41, %v3838_v36  ;;  %v2742_v36 = vld [vmem:[%s4706_s5 + $0x48] sm:$0xff] }
 0x40e   :  { %v4316_v42 = vpop.eup %4315  ;;  %v3905_v31 = vor.u32 %v4238_v46, %v3902_v30  ;;  %v3845_v46 = vor.u32 %v4225_v17, %v3844_v10  ;;  %v3846_v30 = vld [vmem:[#allocation9 + $0x18] sm:$0xf0] }
 0x40f   :  { %v2147_v43 = vmul.f32 %v2140_v18, %v4617_v23  ;;  %v2148_v38 = vmul.f32 %v4316_v42, %v2136_v40  ;;  %v4252_v23 = vld [vmem:[#allocation9 + $0xec] sm:$0xf0]  ;;  %v3908_v40 = vld [vmem:[#allocation9 + $0x88] sm:$0xf]  ;;  %v4241_v18 = vld [vmem:[#allocation9 + $0x94] sm:$0xf0] }
 0x410   :  { %v4318_v61 = vpop.eup %4317  ;;  %v3949_v59 = vor.u32 %v4252_v23, %v3948_v57  ;;  %v3909_v12 = vor.u32 %v4241_v18, %v3908_v40  ;;  %v4239_v42 = vld [vmem:[#allocation9 + $0x8c] sm:$0xf]  ;;  %2655 = vmatpush.bf16.msra.mxu1 %v3905_v31  ;;  %v4237_v57 = vld [vmem:[#allocation9 + $0x74] sm:$0xf0] }
 0x411   :  { %v4628_v48 = vadd.f32 %v2148_v38, %v2147_v43  ;;  %v2144_v4 = vmul.f32 0.5, %v4318_v61  ;;  %v3910_v43 = vld [vmem:[#allocation9 + $0x98] sm:$0xf0]  ;;  %v3884_v61 = vld [vmem:[#allocation9 + $0x60] sm:$0xf] }
 0x412   :  { %2639 = vmatpush.bf16.msra.mxu0 %v3949_v59  ;;  %v3913_v38 = vor.u32 %v4239_v42, %v3910_v43  ;;  %2668 = vmatpush.bf16.msra.mxu2 %v3909_v12  ;;  %v4235_v59 = vld [vmem:[#allocation9 + $0x6c] sm:$0xf] }
 0x413   :  { %4319 = vtanh.f32 %v4628_v48  ;;  %v2145_v8 = vadd.f32 0.5, %v2144_v4  ;;  %v4236_v4 = vld [vmem:[#allocation9 + $0x6c] sm:$0xf0]  ;;  %v3897_v44 = vor.u32 %v4235_v59, %v3894_v60 }
 0x414   :  { %2681 = vmatpush.bf16.msra.mxu3 %v3913_v38 }
 0x418   :  { %2682 = vmatpush.bf16.msra.mxu3 %v3897_v44 }
 0x419   :  { %v4320_v49 = vpop.eup %4319 }
 0x41a   :  { %v2151_v50 = vmul.f32 %v4320_v49, %v2145_v8  ;;  %v4234_v8 = vld [vmem:[#allocation9 + $0x64] sm:$0xf]  ;;  %v3885_v49 = vor.u32 %v4236_v4, %v3884_v61 }
 0x41c   :  { %v4632_v52 = vadd.f32 %v2151_v50, %v4621_v33  ;;  %v2165_v54 = vpack.c.bf16 %v2151_v50, %v2151_v50  ;;  %v3932_v33 = vld [vmem:[#allocation9 + $0xc0] sm:$0xf]  ;;  %v3886_v50 = vld [vmem:[#allocation9 + $0x70] sm:$0xf0] }
 0x41d   :  { %v3933_v53 = vor.u32 %v4248_v7, %v3932_v33  ;;  %v3889_v23 = vor.u32 %v4234_v8, %v3886_v50  ;;  %v4233_v33 = vld [vmem:[#allocation9 + $0x54] sm:$0xf0]  ;;  %v3873_v7 = vor.u32 %v4230_v45, %v3870_v14 }
 0x41e   :  { %2366 = vmatmul.bf16.vlgmr.msrb.gmra.mxu0 %v2165_v54  ;;  %2379 = vmatmul.bf16.vlgmr.msrb.gmra.mxu1 %v2165_v54  ;;  %v3877_v47 = vor.u32 %v4233_v33, %v3876_v16 }
 0x41f   :  { %2392 = vmatmul.bf16.vlgmr.msrb.gmra.mxu2 %v2165_v54  ;;  %2405 = vmatmul.bf16.vlgmr.msrb.gmra.mxu3 %v2165_v54  ;;  %v3892_v54 = vld [vmem:[#allocation9 + $0x68] sm:$0xf] }
 0x420   :  { %2640 = vmatpush.bf16.msra.mxu0 %v3933_v53  ;;  %v3893_v58 = vor.u32 %v4237_v57, %v3892_v54  ;;  %2656 = vmatpush.bf16.msra.mxu1 %v3889_v23  ;;  %v4231_v53 = vld [vmem:[#allocation9 + $0x4c] sm:$0xf] }
 0x421   :  { %v3881_v62 = vor.u32 %v4231_v53, %v3878_v11 }
 0x422   :  { %2669 = vmatpush.bf16.msra.mxu2 %v3893_v58 }
 0x423   :  { %2683 = vmatpush.bf16.msra.mxu3 %v3881_v62 }
 0x424   :  { %2641 = vmatpush.bf16.msra.mxu0 %v3917_v24  ;;  %2657 = vmatpush.bf16.msra.mxu1 %v3873_v7  ;;  %v4227_v24 = vld [vmem:[#allocation9 + $0x2c] sm:$0xf] }
 0x425   :  { %v3865_v37 = vor.u32 %v4227_v24, %v3862_v32  ;;  %v2745_v24 = vld [vmem:[%s4706_s5 + $0x60] sm:$0xff] }
 0x426   :  { %2670 = vmatpush.bf16.msra.mxu2 %v3877_v47 }
 0x427   :  { %2684 = vmatpush.bf16.msra.mxu3 %v3865_v37  ;;  %v2744_v37 = vld [vmem:[%s4706_s5 + $0x58] sm:$0xff] }
 0x428   :  { %2642 = vmatpush.bf16.msra.mxu0 %v3901_v28  ;;  %2658 = vmatpush.bf16.msra.mxu1 %v3857_v21  ;;  %v4223_v28 = vld [vmem:[#allocation9 + $0xc] sm:$0xf] }
 0x429   :  { %v3849_v40 = vor.u32 %v4223_v28, %v3846_v30  ;;  %v2741_v28 = vld [vmem:[%s4706_s5 + $0x40] sm:$0xff] }
 0x42a   :  { %2671 = vmatpush.bf16.msra.mxu2 %v3861_v27 }
 0x42b   :  { %2685 = vmatpush.bf16.msra.mxu3 %v3849_v40 }
 0x42c   :  { %2643 = vmatpush.bf16.msra.mxu0 %v3885_v49  ;;  %2659 = vmatpush.bf16.msra.mxu1 %v3841_v39 }
 0x42e   :  { %2672 = vmatpush.bf16.msra.mxu2 %v3845_v46 }
 0x430   :  { %2644 = vmatpush.bf16.msra.mxu0 %v3869_v22 }
 0x434   :  { %2645 = vmatpush.bf16.msra.mxu0 %v3853_v20  ;;  %v2748_v20 = vld [vmem:[%s4706_s5 + $0x78] sm:$0xff] }
 0x438   :  { %2646 = vmatpush.bf16.msra.mxu0 %v3837_v35 }
 0x43c   :  { %2753 = vmatpush.msrb.mxu0 %v2748_v20 }
 0x49b   :  { %v2367_v18 = vpop.f32.mrf.mxu0  ;;  %v2380_v31 = vpop.f32.mrf.mxu1 }
 0x49c   :  { %v2410_v12 = vadd.f32 %v2367_v18, %v4539_v5  ;;  %v2411_v42 = vadd.f32 %v2380_v31, %v4542_v25  ;;  %v2740_v18 = vld [vmem:[%s4706_s5 + $0x38] sm:$0xff] }
 0x49e   :  { %v2414_v43 = vmul.f32 0.5, %v2410_v12  ;;  %v2418_v38 = vmul.f32 0.5, %v2411_v42  ;;  %v2739_v42 = vld [vmem:[%s4706_s5 + $0x30] sm:$0xff] }
 0x4a0   :  { %4321 = vtanh.f32 %v2414_v43 }
 0x4a1   :  { %4323 = vtanh.f32 %v2418_v38  ;;  %v2738_v38 = vld [vmem:[%s4706_s5 + $0x28] sm:$0xff] }
 0x4a2   :  { %v2393_v61 = vpop.f32.mrf.mxu2  ;;  %v2406_v4 = vpop.f32.mrf.mxu3 }
 0x4a3   :  { %v2412_v8 = vadd.f32 %v2393_v61, %v4545_v55  ;;  %v2413_v49 = vadd.f32 %v2406_v4, %v4548_v63  ;;  %v2369_v50 = vpop.f32.mrf.mxu0  ;;  %v2382_v54 = vpop.f32.mrf.mxu1  ;;  %v2737_v61 = vld [vmem:[%s4706_s5 + $0x20] sm:$0xff] }
 0x4a4   :  { %v2735_v54 = vld [vmem:[%s4706_s5 + $0x10] sm:$0xff] }
 0x4a5   :  { %4325 = vtanh.f32 %v2412_v8  ;;  %v2423_v57 = vmul.f32 0.5, %v2413_v49  ;;  %v2736_v8 = vld [vmem:[%s4706_s5 + $0x18] sm:$0xff] }
 0x4a6   :  { %v4322_v23 = vpop.eup %4321 }
 0x4a7   :  { %v4324_v58 = vpop.eup %4323  ;;  %v2416_v59 = vmul.f32 0.5, %v4322_v23  ;;  %4327 = vtanh.f32 %v2423_v57  ;;  %v4259_v23 = vld [vmem:[%s4705_s4] ss:$0 sm:$0xff] }
 0x4a8   :  { %v2420_v5 = vmul.f32 0.5, %v4324_v58 }
 0x4a9   :  { %v2417_v25 = vadd.f32 0.5, %v2416_v59 }
 0x4aa   :  { %v2421_v60 = vadd.f32 0.5, %v2420_v5  ;;  %v2395_v44 = vpop.f32.mrf.mxu2  ;;  %v2408_v6 = vpop.f32.mrf.mxu3  ;;  %v2734_v5 = vld [vmem:[%s4706_s5 + $0x8] sm:$0xff] }
 0x4ab   :  { %v4326_v9 = vpop.eup %4325  ;;  %v4260_v6 = vld [vmem:[#allocation6] ss:$0 sm:$0xff] }
 0x4ac   :  { %v2428_v45 = vmul.f32 %v2421_v60, %v4628_v48  ;;  %v2429_v22 = vmul.f32 %v4326_v9, %v2417_v25  ;;  %v2733_v25 = vld [vmem:[%s4706_s5] sm:$0xff] }
 0x4ad   :  { %v4328_v55 = vpop.eup %4327 }
 0x4ae   :  { %v2430_v14 = vadd.f32 %v2429_v22, %v2428_v45  ;;  %v2425_v63 = vmul.f32 0.5, %v4328_v55 }
 0x4b0   :  { %4329 = vtanh.f32 %v2430_v14  ;;  %v2426_v16 = vadd.f32 0.5, %v2425_v63 }
 0x4b6   :  { %v4330_v33 = vpop.eup %4329 }
 0x4b7   :  { %v2432_v7 = vmul.f32 %v4330_v33, %v2426_v16 }
 0x4b9   :  { %v2446_v47 = vpack.c.bf16 %v2432_v7, %v2432_v7  ;;  %v4640_v53 = vadd.f32 %v2432_v7, %v4632_v52  ;;  %v2747_v52 = vld [vmem:[%s4706_s5 + $0x70] sm:$0xff] }
 0x4ba   :  { %2754 = vmatpush.msrb.mxu0 %v2747_v52 }
 0x4bb   :  { %2647 = vmatmul.bf16.vlgmr.msra.gmra.mxu0 %v2446_v47  ;;  %2660 = vmatmul.bf16.vlgmr.msra.gmra.mxu1 %v2446_v47 }
 0x4bc   :  { %2673 = vmatmul.bf16.vlgmr.msra.gmra.mxu2 %v2446_v47  ;;  %2686 = vmatmul.bf16.vlgmr.msra.gmra.mxu3 %v2446_v47 }
 0x4bd   :  { %2755 = vmatpush.msrb.mxu0 %v2746_v13 }
 0x4bf   :  { %2756 = vmatpush.msrb.mxu0 %v2745_v24 }
 0x4c1   :  { %2757 = vmatpush.msrb.mxu0 %v2744_v37 }
 0x538   :  { %v2648_v11 = vpop.f32.mrf.mxu0  ;;  %v2661_v62 = vpop.f32.mrf.mxu1 }
 0x539   :  { %v2691_v48 = vadd.f32 %v2648_v11, %v4551_v0  ;;  %v2692_v1 = vadd.f32 %v2661_v62, %v4554_v19 }
 0x53b   :  { %v2695_v2 = vmul.f32 0.5, %v2691_v48  ;;  %v2699_v3 = vmul.f32 0.5, %v2692_v1 }
 0x53d   :  { %4331 = vtanh.f32 %v2695_v2 }
 0x53e   :  { %4333 = vtanh.f32 %v2699_v3 }
 0x53f   :  { %v2674_v0 = vpop.f32.mrf.mxu2  ;;  %v2687_v29 = vpop.f32.mrf.mxu3 }
 0x540   :  { %v2693_v19 = vadd.f32 %v2674_v0, %v4561_v51  ;;  %v2694_v15 = vadd.f32 %v2687_v29, %v4564_v56  ;;  %v2650_v21 = vpop.f32.mrf.mxu0  ;;  %v2663_v27 = vpop.f32.mrf.mxu1  ;;  %v2743_v51 = vld [vmem:[%s4706_s5 + $0x50] sm:$0xff] }
 0x541   :  { %2758 = vmatpush.msrb.mxu0 %v2743_v51 }
 0x542   :  { %4335 = vtanh.f32 %v2693_v19  ;;  %v2704_v32 = vmul.f32 0.5, %v2694_v15 }
 0x543   :  { %v4332_v34 = vpop.eup %4331  ;;  %2759 = vmatpush.msrb.mxu0 %v2742_v36 }
 0x544   :  { %v4334_v26 = vpop.eup %4333  ;;  %v2697_v41 = vmul.f32 0.5, %v4332_v34  ;;  %4337 = vtanh.f32 %v2704_v32 }
 0x545   :  { %v2701_v56 = vmul.f32 0.5, %v4334_v26  ;;  %2760 = vmatpush.msrb.mxu0 %v2741_v28 }
 0x546   :  { %v2698_v35 = vadd.f32 0.5, %v2697_v41 }
 0x547   :  { %v2702_v10 = vadd.f32 0.5, %v2701_v56  ;;  %v2676_v17 = vpop.f32.mrf.mxu2  ;;  %v2689_v39 = vpop.f32.mrf.mxu3  ;;  %2761 = vmatpush.msrb.mxu0 %v2740_v18 }
 0x548   :  { %v4336_v46 = vpop.eup %4335 }
 0x549   :  { %v2709_v30 = vmul.f32 %v2702_v10, %v2430_v14  ;;  %v2710_v40 = vmul.f32 %v4336_v46, %v2698_v35  ;;  %2762 = vmatpush.msrb.mxu0 %v2739_v42 }
 0x54a   :  { %v4338_v31 = vpop.eup %4337 }
 0x54b   :  { %v2711_v12 = vadd.f32 %v2710_v40, %v2709_v30  ;;  %v2706_v43 = vmul.f32 0.5, %v4338_v31  ;;  %2763 = vmatpush.msrb.mxu0 %v2738_v38 }
 0x54d   :  { %4339 = vtanh.f32 %v2711_v12  ;;  %v2707_v4 = vadd.f32 0.5, %v2706_v43  ;;  %2764 = vmatpush.msrb.mxu0 %v2737_v61 }
 0x54f   :  { %2765 = vmatpush.msrb.mxu0 %v2736_v8 }
 0x551   :  { %2766 = vmatpush.msrb.mxu0 %v2735_v54 }
 0x553   :  { %v4340_v49 = vpop.eup %4339  ;;  %2767 = vmatpush.msrb.mxu0 %v2734_v5 }
 0x554   :  { %v2713_v50 = vmul.f32 %v4340_v49, %v2707_v4 }
 0x555   :  { %2768 = vmatpush.msrb.mxu0 %v2733_v25 }
 0x556   :  { %v2717_v57 = vadd.f32 %v2713_v50, %v4640_v53 }
 0x558   :  { %v2724_v58 = vmul.f32 %v2717_v57, %v2713_v50 }
 0x55a   :  { %v2729_v59 = vmul.f32 %v4259_v23, %v2724_v58 }
 0x55c   :  { %2730 = vadd.xlane.f32.xlu0 %v2729_v59 }
 0x5cf   :  { %v2731_v60 = vpop.xlane.xlu0 %2730 }
 0x5d0   :  { %v2732_v44 = vmul.f32 %v2731_v60, %v2713_v50 }
 0x5d2   :  { %2769 = vmatmul.f32.vlgmr.msrb.gmra.mxu0 %v2732_v44 }
 0x64f   :  { %v2770_v9 = vpop.f32.mrf.mxu0 }
 0x650   :  { %v2771_v45 = vadd.f32 %v4260_v6, %v2770_v9 }
 0x652   :  { %2774 = vst.msk [vmem:[%s4708_s7] sm:$0xff] %vm2773_vm0, %v2771_v45 }
 0x653   :  { %2779 = vsyncpa [#allocation8], 1 }
 0x654   :  { %2780 = vsyncpa [#allocation10], 1 }

</bundles_post_ra>
